<compile_context>
chip_gen: v7x
topology: tpu7x:2x2x1
jax: 0.10.0
libtpu: 0.0.40
codegen_flags: <defaults>
</compile_context>

<pallas_src>
import functools

import jax
import jax.numpy as jnp
from jax import lax
from jax.experimental import pallas as pl
from jax.experimental.pallas import tpu as pltpu


def _round_up(v, m):
    return (v + m - 1) // m * m


def _bottleneck_kernel(H, W, PAD,
                       x_ref, w1_ref, s1_ref, b1_ref,
                       w2_ref, s2_ref, b2_ref,
                       w3_ref, s3_ref, b3_ref,
                       o_ref, pad_ref):
    HW = H * W
    Pp = pad_ref.shape[1]                                     # padded planes

    x = x_ref[0]                                              # (HW, Cp) f32

    # ---- conv1 (1x1) + bn1 + relu (bf16 MXU, f32 accumulate / BN) -------
    y1 = jnp.dot(x.astype(jnp.bfloat16), w1_ref[...],
                 preferred_element_type=jnp.float32)
    y1 = jnp.maximum(y1 * s1_ref[...] + b1_ref[...], 0.0)     # (HW, Pp) f32

    # ---- conv2 (3x3, stride=1, padding=1) + bn2 + relu ------------------
    # Only the two halo strips need to be zero: taps whose neighbour row is
    # out of bounds read from them.  Column wrap-around is corrected by two
    # hoisted lane masks (dw = -1 / +1); the centre column needs no mask.
    pad_ref[0:PAD, :] = jnp.zeros((PAD, Pp), jnp.float32)
    pad_ref[PAD + HW:PAD + HW + PAD, :] = jnp.zeros((PAD, Pp), jnp.float32)
    pad_ref[PAD:PAD + HW, :] = y1

    ww = lax.broadcasted_iota(jnp.int32, (HW, 1), 0) % W      # col index w
    mask_l = jnp.broadcast_to(ww >= 1, (HW, Pp))              # valid for dw=-1
    mask_r = jnp.broadcast_to(ww <= W - 2, (HW, Pp))          # valid for dw=+1

    acc = jnp.zeros((HW, Pp), jnp.float32)
    for kh in range(3):
        dh = kh - 1
        for kw in range(3):
            dw = kw - 1
            shift = dh * W + dw
            if dh == 0 and dw == 0:
                tap = y1                                      # centre: reuse
            else:
                tap = pad_ref[pl.ds(PAD + shift, HW), :]      # y1[s + shift]
            if dw == -1:
                tap = jnp.where(mask_l, tap, 0.0)
            elif dw == 1:
                tap = jnp.where(mask_r, tap, 0.0)
            acc = acc + jnp.dot(tap.astype(jnp.bfloat16), w2_ref[kh * 3 + kw],
                                preferred_element_type=jnp.float32)
    y2 = jnp.maximum(acc * s2_ref[...] + b2_ref[...], 0.0)    # (HW, Pp)

    # ---- conv3 (1x1) + bn3 ----------------------------------------------
    y3 = jnp.dot(y2.astype(jnp.bfloat16), w3_ref[...],
                 preferred_element_type=jnp.float32)
    y3 = y3 * s3_ref[...] + b3_ref[...]                       # (HW, C4p)

    # ---- residual add + relu (residual x kept in f32) --------------------
    o_ref[0] = jnp.maximum(y3 + x, 0.0)


def bottleneck_forward(x_nchw, w1, s1, b1, w2, s2, b2, w3, s3, b3):
    """x_nchw: (N, Cin, H, W) f32.  w1:(Cin,P), w2:(9,P,P), w3:(P,4P).
    s*/b*: folded inference BN scale/bias as (1, C) rows.  Returns NCHW."""
    N, Cin, H, W = x_nchw.shape
    P = w1.shape[1]
    C4 = w3.shape[1]
    assert C4 == Cin, "residual add requires inplanes == planes * expansion"
    HW = H * W

    LANE = 128
    Cin_p = _round_up(Cin, LANE)
    Pp = _round_up(P, LANE)
    C4p = _round_up(C4, LANE)
    assert Cin_p == C4p

    x_flat = jnp.transpose(x_nchw, (0, 2, 3, 1)).reshape(N, HW, Cin)
    x_flat = jnp.pad(x_flat, ((0, 0), (0, 0), (0, Cin_p - Cin)))

    # zero-pad weights / BN params to lane-dense widths; weights in bf16
    w1_p = jnp.pad(w1, ((0, Cin_p - Cin), (0, Pp - P))).astype(jnp.bfloat16)
    w2_p = jnp.pad(w2, ((0, 0), (0, Pp - P), (0, Pp - P))).astype(jnp.bfloat16)
    w3_p = jnp.pad(w3, ((0, Pp - P), (0, C4p - C4))).astype(jnp.bfloat16)

    def padv(v, c):
        return jnp.pad(v, ((0, 0), (0, c - v.shape[1])))

    s1p, b1p = padv(s1, Pp), padv(b1, Pp)
    s2p, b2p = padv(s2, Pp), padv(b2, Pp)
    s3p, b3p = padv(s3, C4p), padv(b3, C4p)

    PAD = _round_up(W + 1, 8)        # halo rows (8-aligned for clean stores)

    kernel = functools.partial(_bottleneck_kernel, H, W, PAD)
    out_flat = pl.pallas_call(
        kernel,
        out_shape=jax.ShapeDtypeStruct((N, HW, C4p), jnp.float32),
        grid_spec=pltpu.PrefetchScalarGridSpec(
            num_scalar_prefetch=0,
            grid=(N,),
            in_specs=[
                pl.BlockSpec((1, HW, Cin_p), lambda n: (n, 0, 0)),  # x
                pl.BlockSpec((Cin_p, Pp), lambda n: (0, 0)),        # w1 (bf16)
                pl.BlockSpec((1, Pp), lambda n: (0, 0)),            # bn1 scale
                pl.BlockSpec((1, Pp), lambda n: (0, 0)),            # bn1 bias
                pl.BlockSpec((9, Pp, Pp), lambda n: (0, 0, 0)),     # w2 taps
                pl.BlockSpec((1, Pp), lambda n: (0, 0)),            # bn2 scale
                pl.BlockSpec((1, Pp), lambda n: (0, 0)),            # bn2 bias
                pl.BlockSpec((Pp, C4p), lambda n: (0, 0)),          # w3 (bf16)
                pl.BlockSpec((1, C4p), lambda n: (0, 0)),           # bn3 scale
                pl.BlockSpec((1, C4p), lambda n: (0, 0)),           # bn3 bias
            ],
            out_specs=pl.BlockSpec((1, HW, C4p), lambda n: (n, 0, 0)),
            scratch_shapes=[pltpu.VMEM((HW + 2 * PAD, Pp), jnp.float32)],
        ),
        compiler_params=pltpu.CompilerParams(
            dimension_semantics=("parallel",)),   # batch axis: v7x megacore
    )(x_flat, w1_p, s1p, b1p, w2_p, s2p, b2p, w3_p, s3p, b3p)

    out = out_flat[:, :, :C4]
    return jnp.transpose(out.reshape(N, H, W, C4), (0, 3, 1, 2))


# ------------------------- plain-JAX reference --------------------------
def _reference(x, c1w, s1, b1, c2w, s2, b2, c3w, s3, b3):
    dn = ("NCHW", "OIHW", "NCHW")
    hp = lax.Precision.HIGHEST

    def bn(y, s, b):
        return y * s[None, :, None, None] + b[None, :, None, None]

    out = lax.conv_general_dilated(x, c1w, (1, 1), "VALID",
                                   dimension_numbers=dn, precision=hp)
    out = jnp.maximum(bn(out, s1, b1), 0.0)
    out = lax.conv_general_dilated(out, c2w, (1, 1), ((1, 1), (1, 1)),
                                   dimension_numbers=dn, precision=hp)
    out = jnp.maximum(bn(out, s2, b2), 0.0)
    out = lax.conv_general_dilated(out, c3w, (1, 1), "VALID",
                                   dimension_numbers=dn, precision=hp)
    out = bn(out, s3, b3)
    return jnp.maximum(out + x, 0.0)


def _fold_bn(key, c, eps=1e-5):
    k1, k2, k3, k4 = jax.random.split(key, 4)
    gamma = jax.random.uniform(k1, (c,), jnp.float32, 0.5, 1.5)
    beta = 0.1 * jax.random.normal(k2, (c,), jnp.float32)
    mean = 0.1 * jax.random.normal(k3, (c,), jnp.float32)
    var = jax.random.uniform(k4, (c,), jnp.float32, 0.5, 1.5)
    scale = gamma / jnp.sqrt(var + eps)
    bias = beta - mean * scale
    return scale, bias


if __name__ == "__main__":
    key = jax.random.PRNGKey(0)
    N, H, Wd = 2, 16, 16
    planes = 8
    expansion = 4
    inplanes = planes * expansion      # 32 — needed since downsample=None

    ks = jax.random.split(key, 8)
    x = jax.random.normal(ks[0], (N, inplanes, H, Wd), jnp.float32)

    # conv weights in PyTorch OIHW layout, deterministic init
    conv1_w = 0.1 * jax.random.normal(ks[1], (planes, inplanes, 1, 1), jnp.float32)
    conv2_w = 0.1 * jax.random.normal(ks[2], (planes, planes, 3, 3), jnp.float32)
    conv3_w = 0.1 * jax.random.normal(ks[3], (planes * expansion, planes, 1, 1),
                                      jnp.float32)
    s1, b1 = _fold_bn(ks[4], planes)
    s2, b2 = _fold_bn(ks[5], planes)
    s3, b3 = _fold_bn(ks[6], planes * expansion)

    # reshape conv weights for the kernel's (in, out) matmul convention
    w1 = jnp.transpose(conv1_w[:, :, 0, 0])                               # (Cin, P)
    w2 = jnp.transpose(conv2_w, (2, 3, 1, 0)).reshape(9, planes, planes)  # (9,Pin,Pout)
    w3 = jnp.transpose(conv3_w[:, :, 0, 0])                               # (P, 4P)

    def r2(v):  # per-channel vectors as (1, C) rows for lane broadcasting
        return v.reshape(1, -1)

    out = bottleneck_forward(x, w1, r2(s1), r2(b1), w2, r2(s2), r2(b2),
                             w3, r2(s3), r2(b3))
    out = jax.block_until_ready(out)

    ref = _reference(x, conv1_w, s1, b1, conv2_w, s2, b2, conv3_w, s3, b3)
    if not jnp.allclose(out, ref, atol=5e-2, rtol=5e-2):
        raise AssertionError("Pallas Bottleneck output mismatch vs reference")

    print("KERNEL_OK")
</pallas_src>

<mosaic_0001>
module attributes {stable_mosaic.version = 11 : i64} {
  func.func @_bottleneck_kernel(%arg0: i32, %arg1: memref<1x256x128xf32, #tpu.memory_space<vmem>>, %arg2: memref<128x128xbf16, #tpu.memory_space<vmem>>, %arg3: memref<1x128xf32, #tpu.memory_space<vmem>>, %arg4: memref<1x128xf32, #tpu.memory_space<vmem>>, %arg5: memref<9x128x128xbf16, #tpu.memory_space<vmem>>, %arg6: memref<1x128xf32, #tpu.memory_space<vmem>>, %arg7: memref<1x128xf32, #tpu.memory_space<vmem>>, %arg8: memref<128x128xbf16, #tpu.memory_space<vmem>>, %arg9: memref<1x128xf32, #tpu.memory_space<vmem>>, %arg10: memref<1x128xf32, #tpu.memory_space<vmem>>, %arg11: memref<1x256x128xf32, #tpu.memory_space<vmem>>, %arg12: memref<304x128xf32, #tpu.memory_space<vmem>>) attributes {dimension_semantics = [#tpu.dimension_semantics<parallel>], iteration_bounds = array<i64: 2>, scalar_prefetch = 0 : i64, scratch_operands = 1 : i64, tpu.core_type = #tpu.core_type<tc>, window_params = [{transform_indices = @transform_0, window_bounds = array<i64: 1, 256, 128>}, {pipeline_mode = #tpu.pipeline_mode<synchronous>, transform_indices = @transform_1, window_bounds = array<i64: 128, 128>}, {pipeline_mode = #tpu.pipeline_mode<synchronous>, transform_indices = @transform_2, window_bounds = array<i64: 1, 128>}, {pipeline_mode = #tpu.pipeline_mode<synchronous>, transform_indices = @transform_3, window_bounds = array<i64: 1, 128>}, {pipeline_mode = #tpu.pipeline_mode<synchronous>, transform_indices = @transform_4, window_bounds = array<i64: 9, 128, 128>}, {pipeline_mode = #tpu.pipeline_mode<synchronous>, transform_indices = @transform_5, window_bounds = array<i64: 1, 128>}, {pipeline_mode = #tpu.pipeline_mode<synchronous>, transform_indices = @transform_6, window_bounds = array<i64: 1, 128>}, {pipeline_mode = #tpu.pipeline_mode<synchronous>, transform_indices = @transform_7, window_bounds = array<i64: 128, 128>}, {pipeline_mode = #tpu.pipeline_mode<synchronous>, transform_indices = @transform_8, window_bounds = array<i64: 1, 128>}, {pipeline_mode = #tpu.pipeline_mode<synchronous>, transform_indices = @transform_9, window_bounds = array<i64: 1, 128>}, {transform_indices = @transform_10, window_bounds = array<i64: 1, 256, 128>}]} {
    %c0 = arith.constant 0 : index
    %c0_0 = arith.constant 0 : index
    %c0_1 = arith.constant 0 : index
    %0 = vector.load %arg1[%c0, %c0_0, %c0_1] : memref<1x256x128xf32, #tpu.memory_space<vmem>>, vector<1x256x128xf32>
    %1 = vector.shape_cast %0 : vector<1x256x128xf32> to vector<256x128xf32>
    %2 = arith.truncf %1 : vector<256x128xf32> to vector<256x128xbf16>
    %c0_2 = arith.constant 0 : index
    %c0_3 = arith.constant 0 : index
    %3 = vector.load %arg2[%c0_2, %c0_3] : memref<128x128xbf16, #tpu.memory_space<vmem>>, vector<128x128xbf16>
    %cst = arith.constant dense<0.000000e+00> : vector<256x128xf32>
    %4 = tpu.matmul %2, %3, %cst {dimension_numbers = #tpu.dot_dimension_numbers<[1], [0], [0], [1], [0, 0, 1, 1], [], []>} : vector<256x128xbf16>, vector<128x128xbf16>, vector<256x128xf32> -> vector<256x128xf32>
    %c0_4 = arith.constant 0 : index
    %c0_5 = arith.constant 0 : index
    %5 = vector.load %arg3[%c0_4, %c0_5] : memref<1x128xf32, #tpu.memory_space<vmem>>, vector<1x128xf32>
    %6 = vector.broadcast %5 : vector<1x128xf32> to vector<256x128xf32>
    %7 = arith.mulf %4, %6 : vector<256x128xf32>
    %c0_6 = arith.constant 0 : index
    %c0_7 = arith.constant 0 : index
    %8 = vector.load %arg4[%c0_6, %c0_7] : memref<1x128xf32, #tpu.memory_space<vmem>>, vector<1x128xf32>
    %9 = vector.broadcast %8 : vector<1x128xf32> to vector<256x128xf32>
    %10 = arith.addf %7, %9 : vector<256x128xf32>
    %cst_8 = arith.constant 0.000000e+00 : f32
    %11 = vector.broadcast %cst_8 : f32 to vector<256x128xf32>
    %12 = arith.maximumf %10, %11 : vector<256x128xf32>
    %cst_9 = arith.constant 0.000000e+00 : f32
    %13 = vector.broadcast %cst_9 : f32 to vector<24x128xf32>
    %c0_10 = arith.constant 0 : index
    %c0_11 = arith.constant 0 : index
    %14 = vector.load %arg12[%c0_10, %c0_11] : memref<304x128xf32, #tpu.memory_space<vmem>>, vector<24x128xf32>
    tpu.vector_store %arg12[%c0_10, %c0_11], %13 {strides = array<i32>} : memref<304x128xf32, #tpu.memory_space<vmem>>, vector<24x128xf32>,
    %cst_12 = arith.constant 0.000000e+00 : f32
    %15 = vector.broadcast %cst_12 : f32 to vector<24x128xf32>
    %c280 = arith.constant 280 : index
    %c0_13 = arith.constant 0 : index
    %16 = vector.load %arg12[%c280, %c0_13] : memref<304x128xf32, #tpu.memory_space<vmem>>, vector<24x128xf32>
    tpu.vector_store %arg12[%c280, %c0_13], %15 {strides = array<i32>} : memref<304x128xf32, #tpu.memory_space<vmem>>, vector<24x128xf32>,
    %c24 = arith.constant 24 : index
    %c0_14 = arith.constant 0 : index
    %17 = vector.load %arg12[%c24, %c0_14] : memref<304x128xf32, #tpu.memory_space<vmem>>, vector<256x128xf32>
    tpu.vector_store %arg12[%c24, %c0_14], %12 {strides = array<i32>} : memref<304x128xf32, #tpu.memory_space<vmem>>, vector<256x128xf32>,
    %18 = tpu.iota {dimensions = array<i32: 0>} : vector<256x1xi32>
    %c16_i32 = arith.constant 16 : i32
    %c0_i32 = arith.constant 0 : i32
    %19 = arith.cmpi eq, %c16_i32, %c0_i32 : i32
    %c1_i32 = arith.constant 1 : i32
    %20 = arith.select %19, %c1_i32, %c16_i32 : i32
    %21 = vector.broadcast %20 : i32 to vector<256x1xi32>
    %22 = arith.remsi %18, %21 : vector<256x1xi32>
    %c0_i32_15 = arith.constant 0 : i32
    %23 = vector.broadcast %c0_i32_15 : i32 to vector<256x1xi32>
    %24 = arith.cmpi ne, %22, %23 : vector<256x1xi32>
    %c0_i32_16 = arith.constant 0 : i32
    %25 = vector.broadcast %c0_i32_16 : i32 to vector<256x1xi32>
    %26 = arith.cmpi slt, %22, %25 : vector<256x1xi32>
    %c0_i32_17 = arith.constant 0 : i32
    %27 = arith.cmpi slt, %20, %c0_i32_17 : i32
    %28 = vector.broadcast %27 : i1 to vector<256x1xi1>
    %29 = vector.broadcast %28 : vector<256x1xi1> to vector<256x1xi1>
    %30 = arith.xori %26, %29 : vector<256x1xi1>
    %31 = arith.andi %30, %24 : vector<256x1xi1>
    %32 = vector.broadcast %20 : i32 to vector<256x1xi32>
    %33 = arith.addi %22, %32 : vector<256x1xi32>
    %34 = arith.select %31, %33, %22 : vector<256x1xi1>, vector<256x1xi32>
    %c1_i32_18 = arith.constant 1 : i32
    %35 = vector.broadcast %c1_i32_18 : i32 to vector<256x1xi32>
    %36 = arith.cmpi sge, %34, %35 : vector<256x1xi32>
    %37 = vector.shape_cast %36 : vector<256x1xi1> to vector<256x1xi1>
    %38 = vector.broadcast %37 : vector<256x1xi1> to vector<256x128xi1>
    %c14_i32 = arith.constant 14 : i32
    %39 = vector.broadcast %c14_i32 : i32 to vector<256x1xi32>
    %40 = arith.cmpi sle, %34, %39 : vector<256x1xi32>
    %41 = vector.shape_cast %40 : vector<256x1xi1> to vector<256x1xi1>
    %42 = vector.broadcast %41 : vector<256x1xi1> to vector<256x128xi1>
    %cst_19 = arith.constant 0.000000e+00 : f32
    %43 = vector.broadcast %cst_19 : f32 to vector<256x128xf32>
    %c7 = arith.constant 7 : index
    %c0_20 = arith.constant 0 : index
    %44 = vector.load %arg12[%c7, %c0_20] : memref<304x128xf32, #tpu.memory_space<vmem>>, vector<256x128xf32>
    %cst_21 = arith.constant 0.000000e+00 : f32
    %45 = vector.broadcast %cst_21 : f32 to vector<256x128xf32>
    %46 = arith.select %38, %44, %45 : vector<256x128xi1>, vector<256x128xf32>
    %47 = arith.truncf %46 : vector<256x128xf32> to vector<256x128xbf16>
    %c0_22 = arith.constant 0 : index
    %c0_23 = arith.constant 0 : index
    %c0_24 = arith.constant 0 : index
    %48 = vector.load %arg5[%c0_22, %c0_23, %c0_24] : memref<9x128x128xbf16, #tpu.memory_space<vmem>>, vector<1x128x128xbf16>
    %49 = vector.shape_cast %48 : vector<1x128x128xbf16> to vector<128x128xbf16>
    %cst_25 = arith.constant dense<0.000000e+00> : vector<256x128xf32>
    %50 = tpu.matmul %47, %49, %cst_25 {dimension_numbers = #tpu.dot_dimension_numbers<[1], [0], [0], [1], [0, 0, 1, 1], [], []>} : vector<256x128xbf16>, vector<128x128xbf16>, vector<256x128xf32> -> vector<256x128xf32>
    %51 = arith.addf %43, %50 : vector<256x128xf32>
    %c8 = arith.constant 8 : index
    %c0_26 = arith.constant 0 : index
    %52 = vector.load %arg12[%c8, %c0_26] : memref<304x128xf32, #tpu.memory_space<vmem>>, vector<256x128xf32>
    %53 = arith.truncf %52 : vector<256x128xf32> to vector<256x128xbf16>
    %c1 = arith.constant 1 : index
    %c0_27 = arith.constant 0 : index
    %c0_28 = arith.constant 0 : index
    %54 = vector.load %arg5[%c1, %c0_27, %c0_28] : memref<9x128x128xbf16, #tpu.memory_space<vmem>>, vector<1x128x128xbf16>
    %55 = vector.shape_cast %54 : vector<1x128x128xbf16> to vector<128x128xbf16>
    %cst_29 = arith.constant dense<0.000000e+00> : vector<256x128xf32>
    %56 = tpu.matmul %53, %55, %cst_29 {dimension_numbers = #tpu.dot_dimension_numbers<[1], [0], [0], [1], [0, 0, 1, 1], [], []>} : vector<256x128xbf16>, vector<128x128xbf16>, vector<256x128xf32> -> vector<256x128xf32>
    %57 = arith.addf %51, %56 : vector<256x128xf32>
    %c9 = arith.constant 9 : index
    %c0_30 = arith.constant 0 : index
    %58 = vector.load %arg12[%c9, %c0_30] : memref<304x128xf32, #tpu.memory_space<vmem>>, vector<256x128xf32>
    %cst_31 = arith.constant 0.000000e+00 : f32
    %59 = vector.broadcast %cst_31 : f32 to vector<256x128xf32>
    %60 = arith.select %42, %58, %59 : vector<256x128xi1>, vector<256x128xf32>
    %61 = arith.truncf %60 : vector<256x128xf32> to vector<256x128xbf16>
    %c2 = arith.constant 2 : index
    %c0_32 = arith.constant 0 : index
    %c0_33 = arith.constant 0 : index
    %62 = vector.load %arg5[%c2, %c0_32, %c0_33] : memref<9x128x128xbf16, #tpu.memory_space<vmem>>, vector<1x128x128xbf16>
    %63 = vector.shape_cast %62 : vector<1x128x128xbf16> to vector<128x128xbf16>
    %cst_34 = arith.constant dense<0.000000e+00> : vector<256x128xf32>
    %64 = tpu.matmul %61, %63, %cst_34 {dimension_numbers = #tpu.dot_dimension_numbers<[1], [0], [0], [1], [0, 0, 1, 1], [], []>} : vector<256x128xbf16>, vector<128x128xbf16>, vector<256x128xf32> -> vector<256x128xf32>
    %65 = arith.addf %57, %64 : vector<256x128xf32>
    %c23 = arith.constant 23 : index
    %c0_35 = arith.constant 0 : index
    %66 = vector.load %arg12[%c23, %c0_35] : memref<304x128xf32, #tpu.memory_space<vmem>>, vector<256x128xf32>
    %cst_36 = arith.constant 0.000000e+00 : f32
    %67 = vector.broadcast %cst_36 : f32 to vector<256x128xf32>
    %68 = arith.select %38, %66, %67 : vector<256x128xi1>, vector<256x128xf32>
    %69 = arith.truncf %68 : vector<256x128xf32> to vector<256x128xbf16>
    %c3 = arith.constant 3 : index
    %c0_37 = arith.constant 0 : index
    %c0_38 = arith.constant 0 : index
    %70 = vector.load %arg5[%c3, %c0_37, %c0_38] : memref<9x128x128xbf16, #tpu.memory_space<vmem>>, vector<1x128x128xbf16>
    %71 = vector.shape_cast %70 : vector<1x128x128xbf16> to vector<128x128xbf16>
    %cst_39 = arith.constant dense<0.000000e+00> : vector<256x128xf32>
    %72 = tpu.matmul %69, %71, %cst_39 {dimension_numbers = #tpu.dot_dimension_numbers<[1], [0], [0], [1], [0, 0, 1, 1], [], []>} : vector<256x128xbf16>, vector<128x128xbf16>, vector<256x128xf32> -> vector<256x128xf32>
    %73 = arith.addf %65, %72 : vector<256x128xf32>
    %74 = arith.truncf %12 : vector<256x128xf32> to vector<256x128xbf16>
    %c4 = arith.constant 4 : index
    %c0_40 = arith.constant 0 : index
    %c0_41 = arith.constant 0 : index
    %75 = vector.load %arg5[%c4, %c0_40, %c0_41] : memref<9x128x128xbf16, #tpu.memory_space<vmem>>, vector<1x128x128xbf16>
    %76 = vector.shape_cast %75 : vector<1x128x128xbf16> to vector<128x128xbf16>
    %cst_42 = arith.constant dense<0.000000e+00> : vector<256x128xf32>
    %77 = tpu.matmul %74, %76, %cst_42 {dimension_numbers = #tpu.dot_dimension_numbers<[1], [0], [0], [1], [0, 0, 1, 1], [], []>} : vector<256x128xbf16>, vector<128x128xbf16>, vector<256x128xf32> -> vector<256x128xf32>
    %78 = arith.addf %73, %77 : vector<256x128xf32>
    %c25 = arith.constant 25 : index
    %c0_43 = arith.constant 0 : index
    %79 = vector.load %arg12[%c25, %c0_43] : memref<304x128xf32, #tpu.memory_space<vmem>>, vector<256x128xf32>
    %cst_44 = arith.constant 0.000000e+00 : f32
    %80 = vector.broadcast %cst_44 : f32 to vector<256x128xf32>
    %81 = arith.select %42, %79, %80 : vector<256x128xi1>, vector<256x128xf32>
    %82 = arith.truncf %81 : vector<256x128xf32> to vector<256x128xbf16>
    %c5 = arith.constant 5 : index
    %c0_45 = arith.constant 0 : index
    %c0_46 = arith.constant 0 : index
    %83 = vector.load %arg5[%c5, %c0_45, %c0_46] : memref<9x128x128xbf16, #tpu.memory_space<vmem>>, vector<1x128x128xbf16>
    %84 = vector.shape_cast %83 : vector<1x128x128xbf16> to vector<128x128xbf16>
    %cst_47 = arith.constant dense<0.000000e+00> : vector<256x128xf32>
    %85 = tpu.matmul %82, %84, %cst_47 {dimension_numbers = #tpu.dot_dimension_numbers<[1], [0], [0], [1], [0, 0, 1, 1], [], []>} : vector<256x128xbf16>, vector<128x128xbf16>, vector<256x128xf32> -> vector<256x128xf32>
    %86 = arith.addf %78, %85 : vector<256x128xf32>
    %c39 = arith.constant 39 : index
    %c0_48 = arith.constant 0 : index
    %87 = vector.load %arg12[%c39, %c0_48] : memref<304x128xf32, #tpu.memory_space<vmem>>, vector<256x128xf32>
    %cst_49 = arith.constant 0.000000e+00 : f32
    %88 = vector.broadcast %cst_49 : f32 to vector<256x128xf32>
    %89 = arith.select %38, %87, %88 : vector<256x128xi1>, vector<256x128xf32>
    %90 = arith.truncf %89 : vector<256x128xf32> to vector<256x128xbf16>
    %c6 = arith.constant 6 : index
    %c0_50 = arith.constant 0 : index
    %c0_51 = arith.constant 0 : index
    %91 = vector.load %arg5[%c6, %c0_50, %c0_51] : memref<9x128x128xbf16, #tpu.memory_space<vmem>>, vector<1x128x128xbf16>
    %92 = vector.shape_cast %91 : vector<1x128x128xbf16> to vector<128x128xbf16>
    %cst_52 = arith.constant dense<0.000000e+00> : vector<256x128xf32>
    %93 = tpu.matmul %90, %92, %cst_52 {dimension_numbers = #tpu.dot_dimension_numbers<[1], [0], [0], [1], [0, 0, 1, 1], [], []>} : vector<256x128xbf16>, vector<128x128xbf16>, vector<256x128xf32> -> vector<256x128xf32>
    %94 = arith.addf %86, %93 : vector<256x128xf32>
    %c40 = arith.constant 40 : index
    %c0_53 = arith.constant 0 : index
    %95 = vector.load %arg12[%c40, %c0_53] : memref<304x128xf32, #tpu.memory_space<vmem>>, vector<256x128xf32>
    %96 = arith.truncf %95 : vector<256x128xf32> to vector<256x128xbf16>
    %c7_54 = arith.constant 7 : index
    %c0_55 = arith.constant 0 : index
    %c0_56 = arith.constant 0 : index
    %97 = vector.load %arg5[%c7_54, %c0_55, %c0_56] : memref<9x128x128xbf16, #tpu.memory_space<vmem>>, vector<1x128x128xbf16>
    %98 = vector.shape_cast %97 : vector<1x128x128xbf16> to vector<128x128xbf16>
    %cst_57 = arith.constant dense<0.000000e+00> : vector<256x128xf32>
    %99 = tpu.matmul %96, %98, %cst_57 {dimension_numbers = #tpu.dot_dimension_numbers<[1], [0], [0], [1], [0, 0, 1, 1], [], []>} : vector<256x128xbf16>, vector<128x128xbf16>, vector<256x128xf32> -> vector<256x128xf32>
    %100 = arith.addf %94, %99 : vector<256x128xf32>
    %c41 = arith.constant 41 : index
    %c0_58 = arith.constant 0 : index
    %101 = vector.load %arg12[%c41, %c0_58] : memref<304x128xf32, #tpu.memory_space<vmem>>, vector<256x128xf32>
    %cst_59 = arith.constant 0.000000e+00 : f32
    %102 = vector.broadcast %cst_59 : f32 to vector<256x128xf32>
    %103 = arith.select %42, %101, %102 : vector<256x128xi1>, vector<256x128xf32>
    %104 = arith.truncf %103 : vector<256x128xf32> to vector<256x128xbf16>
    %c8_60 = arith.constant 8 : index
    %c0_61 = arith.constant 0 : index
    %c0_62 = arith.constant 0 : index
    %105 = vector.load %arg5[%c8_60, %c0_61, %c0_62] : memref<9x128x128xbf16, #tpu.memory_space<vmem>>, vector<1x128x128xbf16>
    %106 = vector.shape_cast %105 : vector<1x128x128xbf16> to vector<128x128xbf16>
    %cst_63 = arith.constant dense<0.000000e+00> : vector<256x128xf32>
    %107 = tpu.matmul %104, %106, %cst_63 {dimension_numbers = #tpu.dot_dimension_numbers<[1], [0], [0], [1], [0, 0, 1, 1], [], []>} : vector<256x128xbf16>, vector<128x128xbf16>, vector<256x128xf32> -> vector<256x128xf32>
    %108 = arith.addf %100, %107 : vector<256x128xf32>
    %c0_64 = arith.constant 0 : index
    %c0_65 = arith.constant 0 : index
    %109 = vector.load %arg6[%c0_64, %c0_65] : memref<1x128xf32, #tpu.memory_space<vmem>>, vector<1x128xf32>
    %110 = vector.broadcast %109 : vector<1x128xf32> to vector<256x128xf32>
    %111 = arith.mulf %108, %110 : vector<256x128xf32>
    %c0_66 = arith.constant 0 : index
    %c0_67 = arith.constant 0 : index
    %112 = vector.load %arg7[%c0_66, %c0_67] : memref<1x128xf32, #tpu.memory_space<vmem>>, vector<1x128xf32>
    %113 = vector.broadcast %112 : vector<1x128xf32> to vector<256x128xf32>
    %114 = arith.addf %111, %113 : vector<256x128xf32>
    %cst_68 = arith.constant 0.000000e+00 : f32
    %115 = vector.broadcast %cst_68 : f32 to vector<256x128xf32>
    %116 = arith.maximumf %114, %115 : vector<256x128xf32>
    %117 = arith.truncf %116 : vector<256x128xf32> to vector<256x128xbf16>
    %c0_69 = arith.constant 0 : index
    %c0_70 = arith.constant 0 : index
    %118 = vector.load %arg8[%c0_69, %c0_70] : memref<128x128xbf16, #tpu.memory_space<vmem>>, vector<128x128xbf16>
    %cst_71 = arith.constant dense<0.000000e+00> : vector<256x128xf32>
    %119 = tpu.matmul %117, %118, %cst_71 {dimension_numbers = #tpu.dot_dimension_numbers<[1], [0], [0], [1], [0, 0, 1, 1], [], []>} : vector<256x128xbf16>, vector<128x128xbf16>, vector<256x128xf32> -> vector<256x128xf32>
    %c0_72 = arith.constant 0 : index
    %c0_73 = arith.constant 0 : index
    %120 = vector.load %arg9[%c0_72, %c0_73] : memref<1x128xf32, #tpu.memory_space<vmem>>, vector<1x128xf32>
    %121 = vector.broadcast %120 : vector<1x128xf32> to vector<256x128xf32>
    %122 = arith.mulf %119, %121 : vector<256x128xf32>
    %c0_74 = arith.constant 0 : index
    %c0_75 = arith.constant 0 : index
    %123 = vector.load %arg10[%c0_74, %c0_75] : memref<1x128xf32, #tpu.memory_space<vmem>>, vector<1x128xf32>
    %124 = vector.broadcast %123 : vector<1x128xf32> to vector<256x128xf32>
    %125 = arith.addf %122, %124 : vector<256x128xf32>
    %126 = arith.addf %125, %1 : vector<256x128xf32>
    %cst_76 = arith.constant 0.000000e+00 : f32
    %127 = vector.broadcast %cst_76 : f32 to vector<256x128xf32>
    %128 = arith.maximumf %126, %127 : vector<256x128xf32>
    %c0_77 = arith.constant 0 : index
    %c0_78 = arith.constant 0 : index
    %c0_79 = arith.constant 0 : index
    %129 = vector.load %arg11[%c0_77, %c0_78, %c0_79] : memref<1x256x128xf32, #tpu.memory_space<vmem>>, vector<1x256x128xf32>
    %130 = vector.shape_cast %129 : vector<1x256x128xf32> to vector<256x128xf32>
    %131 = vector.shape_cast %128 : vector<256x128xf32> to vector<1x256x128xf32>
    tpu.vector_store %arg11[%c0_77, %c0_78, %c0_79], %131 {strides = array<i32>} : memref<1x256x128xf32, #tpu.memory_space<vmem>>, vector<1x256x128xf32>,
    return
  }
  func.func @transform_0(%arg0: i32) -> (i32, i32, i32) {
    %c0_i32 = arith.constant 0 : i32
    %c0_i32_0 = arith.constant 0 : i32
    %c0_i32_1 = arith.constant 0 : i32
    return %arg0, %c0_i32, %c0_i32_0 : i32, i32, i32
  }
  func.func @transform_1(%arg0: i32) -> (i32, i32) {
    %c0_i32 = arith.constant 0 : i32
    %c0_i32_0 = arith.constant 0 : i32
    %c0_i32_1 = arith.constant 0 : i32
    return %c0_i32, %c0_i32_0 : i32, i32
  }
  func.func @transform_2(%arg0: i32) -> (i32, i32) {
    %c0_i32 = arith.constant 0 : i32
    %c0_i32_0 = arith.constant 0 : i32
    %c0_i32_1 = arith.constant 0 : i32
    return %c0_i32, %c0_i32_0 : i32, i32
  }
  func.func @transform_3(%arg0: i32) -> (i32, i32) {
    %c0_i32 = arith.constant 0 : i32
    %c0_i32_0 = arith.constant 0 : i32
    %c0_i32_1 = arith.constant 0 : i32
    return %c0_i32, %c0_i32_0 : i32, i32
  }
  func.func @transform_4(%arg0: i32) -> (i32, i32, i32) {
    %c0_i32 = arith.constant 0 : i32
    %c0_i32_0 = arith.constant 0 : i32
    %c0_i32_1 = arith.constant 0 : i32
    %c0_i32_2 = arith.constant 0 : i32
    return %c0_i32, %c0_i32_0, %c0_i32_1 : i32, i32, i32
  }
  func.func @transform_5(%arg0: i32) -> (i32, i32) {
    %c0_i32 = arith.constant 0 : i32
    %c0_i32_0 = arith.constant 0 : i32
    %c0_i32_1 = arith.constant 0 : i32
    return %c0_i32, %c0_i32_0 : i32, i32
  }
  func.func @transform_6(%arg0: i32) -> (i32, i32) {
    %c0_i32 = arith.constant 0 : i32
    %c0_i32_0 = arith.constant 0 : i32
    %c0_i32_1 = arith.constant 0 : i32
    return %c0_i32, %c0_i32_0 : i32, i32
  }
  func.func @transform_7(%arg0: i32) -> (i32, i32) {
    %c0_i32 = arith.constant 0 : i32
    %c0_i32_0 = arith.constant 0 : i32
    %c0_i32_1 = arith.constant 0 : i32
    return %c0_i32, %c0_i32_0 : i32, i32
  }
  func.func @transform_8(%arg0: i32) -> (i32, i32) {
    %c0_i32 = arith.constant 0 : i32
    %c0_i32_0 = arith.constant 0 : i32
    %c0_i32_1 = arith.constant 0 : i32
    return %c0_i32, %c0_i32_0 : i32, i32
  }
  func.func @transform_9(%arg0: i32) -> (i32, i32) {
    %c0_i32 = arith.constant 0 : i32
    %c0_i32_0 = arith.constant 0 : i32
    %c0_i32_1 = arith.constant 0 : i32
    return %c0_i32, %c0_i32_0 : i32, i32
  }
  func.func @transform_10(%arg0: i32) -> (i32, i32, i32) {
    %c0_i32 = arith.constant 0 : i32
    %c0_i32_0 = arith.constant 0 : i32
    %c0_i32_1 = arith.constant 0 : i32
    return %arg0, %c0_i32, %c0_i32_0 : i32, i32, i32
  }
}

</mosaic_0001>

<bundles_post_ra>
// kernel: tpu_custom_call.1
= control target key start
LH: loop header
LB: loop body
LE: loop exit
PB: predicated region body
PF: predicated region fallthrough
CT: control target
= control target key end

     0   :  { %s8196_s0 = inlined_call_operand.hbm [shape: f32[2,256,128], index: 0, kind: input, shape index: {}]   ;;  %s8197_s1 = inlined_call_operand.hbm [shape: bf16[128,128], index: 1, kind: input, shape index: {}]   ;;  %s8198_s2 = inlined_call_operand.vmem [shape: f32[1,128], index: 2, kind: input, shape index: {}]   ;;  %s8199_s3 = inlined_call_operand.vmem [shape: f32[1,128], index: 3, kind: input, shape index: {}]   ;;  %s8200_s4 = inlined_call_operand.hbm [shape: bf16[9,128,128], index: 4, kind: input, shape index: {}]   ;;  %s8201_s5 = inlined_call_operand.vmem [shape: f32[1,128], index: 5, kind: input, shape index: {}]   ;;  %s8202_s6 = inlined_call_operand.vmem [shape: f32[1,128], index: 6, kind: input, shape index: {}]   ;;  %s8203_s7 = inlined_call_operand.hbm [shape: bf16[128,128], index: 7, kind: input, shape index: {}]   ;;  %s8204_s8 = inlined_call_operand.vmem [shape: f32[1,128], index: 8, kind: input, shape index: {}]   ;;  %s8205_s9 = inlined_call_operand.vmem [shape: f32[1,128], index: 9, kind: input, shape index: {}]   ;;  %s8206_s10 = inlined_call_operand.hbm [shape: f32[2,256,128], index: 10, kind: output, shape index: {}]  }
   0x1   :  { %8233 = sst [smem:[#allocation18_spill]] %s8205_s9 }
   0x2   :  { %8234 = sst [smem:[#allocation19_spill]] %s8206_s10 }
   0x3   :  { %15 = vsyncpa [#allocation4], 0 }
   0x4   :  { %17 = vsyncpa [#allocation4 + $0x1], 0 }
   0x5   :  { %18 = vsyncpa [#allocation7], 0 }
   0x6   :  { %19 = vsyncpa [#allocation10], 0 }
   0x7   :  { %20 = vsyncpa [#allocation5], 0 }
   0x8   :  { %22 = vsyncpa [#allocation5 + $0x1], 0  ;;  %s6883_s13 = smov 0   ;;  %s6885_s14 = smov 0  }
   0x9   :  { %s6887_s15 = smov 0   ;;  %s6889_s16 = smov 0  }
   0xa LB: > { %8235 = sst [smem:[#allocation16_spill]] %s6800_s13  ;;  %s6904_s17 = sadd.s32 4294967295, %s6812_s16   ;;  %s6812_s16 = sphi %s6889_s16, %s8355_s16   ;;  %s6808_s15 = sphi %s6887_s15, %s8354_s15   ;;  %s6804_s14 = sphi %s6885_s14, %s8353_s14   ;;  %s6800_s13 = sphi %s6883_s13, %s8352_s13  }
   0xb   : > { %s4943_s18 = sadd.s32 4294967294, %s6812_s16   ;;  %p48_p0 = scmp.ne.s32.totalorder %s6804_s14, %s6800_s13 }
   0xc   : > { %p8207_p1 = scmp.eq.s32.totalorder %s6904_s17, 0  ;;  %p267_p3 = scmp.eq.s32.totalorder %s4943_s18, 1 }
   0xd   : > { %p4944_p5 = scmp.ge.s32.totalorder %s6812_s16, 1  ;;  %p274_p7 = scmp.lt.s32.totalorder %s6812_s16, 3 }
   0xe   : > { %p6913_p4 = por %p8207_p1, %p48_p0  ;;  %p6918_p6 = por %p267_p3, %p48_p0 }
   0xf   : > { %p6923_p8 = pnand %p4944_p5, %p274_p7  ;;  %s6814_s22 = smov [#allocation6]  }
  0x10   : > { %s8236_s19 = scalar_select %p6913_p4, 1, 0 }
  0x11   : > { %s8237_s20 = scalar_select %p6918_p6, 1, 0 }
  0x12   : > { %s8239_s21 = scalar_select %p6923_p8, 1, 0 }
  0x13   : > { %8238 = sst [smem:[#allocation17_spill]] %s8237_s20  ;;  %s286_s23 = sshll.u32 %s6814_s22, 4  ;;  %s6927_s23 = int_to_ptr.vmem [resolvable:$true] %s286_s23 }
  0x14   : > { %p6427_p9 = pneg %p6923_p8  ;;  %s6815_s25 = smov [#allocation8]  }
  0x15   : > { %s305_s26 = sshll.u32 %s6815_s25, 4  ;;  %s6816_s27 = smov [#allocation9]   ;;  %s6938_s26 = int_to_ptr.vmem [resolvable:$true] %s305_s26 }
  0x16   : > { %p6934_p11 = pnand %p6427_p9, %p8207_p1  ;;  %s6940_s28 = sshll.u32 %s6816_s27, 4  ;;  %s325_s28 = int_to_ptr.vmem [resolvable:$true] %s6940_s28 }
  0x17   : > { %s6624_s11 = scalar_lea.hbm %s8197_s1, 1024 }
  0x18   : > { %p6625_p12 = scmp.ne.s32.totalorder %s8197_s1, %s6624_s11  ;;  %p6950_p13 = pneg %p6934_p11 }
  0x19   : > { %p6631_p5 = scmp.lt.u32.totalorder %s6624_s11, %s8197_s1 }
  0x1a   : > { %p6627_p0 = pnand %p6950_p13, %p6625_p12 }
  0x1c   : > { %p6628_p3 = pneg %p6627_p0 }
  0x1e   : > { %p6633_p7 = pnand %p6631_p5, %p6628_p3 }
  0x20   : > { %6636 = shalt.err (!%p6633_p7)
}
  0x21   : > { %s6637_s29 = scalar_lea.vmem %s6927_s23, 1024  ;;  %p6645_p2 = scmp.lt.s32.totalorder %s6927_s23, %s6927_s23 }
  0x22   : > { %p6638_p9 = scmp.ne.s32.totalorder %s6927_s23, %s6637_s29  ;;  %p6646_p6 = scmp.lt.s32.totalorder %s6637_s29, %s6637_s29 }
  0x24   : > { %p6640_p10 = pnand %p6638_p9, %p6950_p13  ;;  %p6647_p12 = por %p6646_p6, %p6645_p2 }
  0x26   : > { %p6641_p1 = pneg %p6640_p10 }
  0x28   : > { %p6648_p0 = pnand %p6647_p12, %p6641_p1 }
  0x2a   : > { %6651 = shalt.err (!%p6648_p0)
}
  0x2b   : > { %s6817_s30 = smov 64   ;;  %s6818_s11 = smov 4  }
  0x2c   : > { %6430 = dma.hbm_to_vmem [thread:$0]  (!%p6934_p11), %s8197_s1, 1024, %s6927_s23, [#allocation7], %s6817_s30, %s6817_s30, %s6818_s11  }
  0x2d   : > { %s6652_s29 = scalar_lea.hbm %s8200_s4, 9216 }
  0x2e   : > { %p6653_p1 = scmp.ne.s32.totalorder %s8200_s4, %s6652_s29  ;;  %p6659_p10 = scmp.lt.u32.totalorder %s6652_s29, %s8200_s4 }
  0x30   : > { %p6655_p2 = pnand %p6653_p1, %p6950_p13 }
  0x32   : > { %p6656_p6 = pneg %p6655_p2 }
  0x34   : > { %p6661_p3 = pnand %p6659_p10, %p6656_p6 }
  0x36   : > { %6664 = shalt.err (!%p6661_p3)
}
  0x37   : > { %s6665_s23 = scalar_lea.vmem %s6938_s26, 9216  ;;  %p6673_p12 = scmp.lt.s32.totalorder %s6938_s26, %s6938_s26 }
  0x38   : > { %p6666_p5 = scmp.ne.s32.totalorder %s6938_s26, %s6665_s23  ;;  %p6674_p0 = scmp.lt.s32.totalorder %s6665_s23, %s6665_s23 }
  0x3a   : > { %p6668_p7 = pnand %p6666_p5, %p6950_p13  ;;  %p6675_p1 = por %p6674_p0, %p6673_p12 }
  0x3c   : > { %p6669_p9 = pneg %p6668_p7 }
  0x3e   : > { %p6676_p2 = pnand %p6675_p1, %p6669_p9 }
  0x40   : > { %6679 = shalt.err (!%p6676_p2)
}
  0x41   : > { %6433 = dma.hbm_to_vmem [thread:$0]  (!%p6934_p11), %s8200_s4, 9216, %s6938_s26, [#allocation7], %s6817_s30, %s6817_s30, %s6818_s11  }
  0x42   : > { %s6680_s12 = scalar_lea.hbm %s8203_s7, 1024 }
  0x43   : > { %p6681_p6 = scmp.ne.s32.totalorder %s8203_s7, %s6680_s12  ;;  %p6687_p5 = scmp.lt.u32.totalorder %s6680_s12, %s8203_s7 }
  0x45   : > { %p6683_p10 = pnand %p6681_p6, %p6950_p13 }
  0x47   : > { %p6684_p3 = pneg %p6683_p10 }
  0x49   : > { %p6689_p7 = pnand %p6687_p5, %p6684_p3 }
  0x4b   : > { %6692 = shalt.err (!%p6689_p7)
}
  0x4c   : > { %s6693_s23 = scalar_lea.vmem %s325_s28, 1024  ;;  %p6701_p1 = scmp.lt.s32.totalorder %s325_s28, %s325_s28 }
  0x4d   : > { %p6694_p9 = scmp.ne.s32.totalorder %s325_s28, %s6693_s23  ;;  %p6702_p2 = scmp.lt.s32.totalorder %s6693_s23, %s6693_s23 }
  0x4f   : > { %p6696_p12 = pnand %p6694_p9, %p6950_p13  ;;  %p6703_p4 = por %p6702_p2, %p6701_p1 }
  0x51   : > { %p6697_p0 = pneg %p6696_p12 }
  0x53   : > { %p6704_p8 = pnand %p6703_p4, %p6697_p0 }
  0x55   : > { %6707 = shalt.err (!%p6704_p8)
}
  0x56   : > { %6436 = dma.hbm_to_vmem [thread:$0]  (!%p6934_p11), %s8203_s7, 1024, %s325_s28, [#allocation10], %s6817_s30, %s6817_s30, %s6818_s11  }
  0x57   : > { %s7023_s22 = sadd.s32 1, %s6812_s16   ;;  %s35_s10 = sadd.s32 1, %s6808_s15 }
  0x58   : > { %s32_s24 = ssub.s32 %s6812_s16, %s7023_s22  ;;  %p42_p8 = scmp.ne.s32.totalorder %s6808_s15, %s6804_s14 }
  0x59   : > { %p33_p4 = scmp.eq.s32.totalorder %s32_s24, 0  ;;  %p43_p13 = scmp.eq.s32.totalorder %s6812_s16, 0 }
  0x5a   : > { %p6448_p6 = scmp.lt.s32.totalorder %s6812_s16, 2  ;;  %p8242_p3 = scmp.eq.s32.totalorder %s6904_s17, 1 }
  0x5b   : > { %s7033_s13 = scalar_select %p33_p4, %s6808_s15, %s35_s10  }
  0x5c   : > { %p44_p10 = por %p43_p13, %p42_p8  ;;  %p7037_p5 = por %p8242_p3, %p42_p8 }
  0x5d   : > { %s344_s12 = sand.u32 1, %s6808_s15   ;;  %s5345_s18 = sshll.u32 %s6812_s16, 12 }
  0x5e   : > { %s4949_s28 = sshll.u32 %s344_s12, 8  ;;  %s7046_s25 = scalar_lea.hbm %s8196_s0, %s5345_s18 }
  0x5f   : > { %s348_s27 = scalar_lea.vmem [#allocation3], %s4949_s28  ;;  %p7048_p11 = pnand %p6448_p6, %p44_p10 }
  0x60   : > { %s355_s29 = sshll.u32 %s348_s27, 4  ;;  %s7054_s26 = scalar_lea.sflag [#allocation4], %s344_s12  ;;  %s7052_s29 = int_to_ptr.vmem [resolvable:$true] %s355_s29 }
  0x61   : > { %s6708_s9 = scalar_lea.hbm %s7046_s25, 4096  ;;  %p6710_p9 = pneg %p7048_p11 }
  0x62   : > { %p6709_p7 = scmp.ne.s32.totalorder %s7046_s25, %s6708_s9  ;;  %s6713_s18 = scalar_lea.hbm %s8196_s0, 8192 }
  0x63   : > { %p6714_p1 = scmp.lt.u32.totalorder %s7046_s25, %s8196_s0  ;;  %p6715_p2 = scmp.lt.u32.totalorder %s6713_s18, %s6708_s9 }
  0x64   : > { %p6711_p12 = pnand %p6710_p9, %p6709_p7  ;;  %p6717_p8 = scmp.lt.u32.totalorder %s6708_s9, %s7046_s25 }
  0x65   : > { %p6716_p4 = por %p6715_p2, %p6714_p1 }
  0x66   : > { %p6712_p0 = pneg %p6711_p12 }
  0x67   : > { %p6718_p13 = por %p6717_p8, %p6716_p4 }
  0x69   : > { %p6719_p6 = pnand %p6718_p13, %p6712_p0 }
  0x6b   : > { %6722 = shalt.err (!%p6719_p6)
}
  0x6c   : > { %s6723_s12 = scalar_lea.vmem %s7052_s29, 4096  ;;  %s6819_s11 = smov [#allocation3]  }
  0x6d   : > { %p6724_p10 = scmp.ne.s32.totalorder %s7052_s29, %s6723_s12  ;;  %s6728_s27 = sshll.u32 %s6819_s11, 4  ;;  %s6729_s27 = int_to_ptr.vmem [resolvable:$false] %s6728_s27 }
  0x6e   : > { %s6730_s24 = scalar_lea.vmem %s6729_s27, 8192  ;;  %p6731_p12 = scmp.lt.s32.totalorder %s7052_s29, %s6729_s27 }
  0x6f   : > { %p6726_p3 = pnand %p6724_p10, %p6710_p9  ;;  %p6732_p1 = scmp.lt.s32.totalorder %s6730_s24, %s6723_s12 }
  0x71   : > { %p6727_p7 = pneg %p6726_p3  ;;  %p6733_p2 = por %p6732_p1, %p6731_p12 }
  0x73   : > { %p6734_p4 = pnand %p6733_p2, %p6727_p7 }
  0x75   : > { %6737 = shalt.err (!%p6734_p4)
}
  0x76   : > { %s6820_s9 = smov 128   ;;  %s6821_s10 = smov 8  }
  0x77   : > { %6440 = dma.hbm_to_vmem [thread:$0]  (!%p7048_p11), %s7046_s25, 4096, %s7052_s29, %s7054_s26, %s6820_s9, %s6820_s9, %s6821_s10  }
  0x78   : > { %p8245_p9 = scmp.ne.s32.totalorder %s8239_s21, 0 }
  0x79   : > { %s7085_s18 = sand.u32 (!%p8245_p9), 1, %s6804_s14   ;;  %p8246_p0 = scmp.ne.s32.totalorder (!%p8245_p9), %s8236_s19, 0 }
  0x7a   : > { %367 = sbr.rel (%p8245_p9) target bundleno = 1243 (0x4db), region = 60  ;;  %s4953_s28 = sshll.u32 (!%p8245_p9), %s7085_s18, 8 }
  0x7b   : > { %s370_s30 = scalar_lea.sflag (!%p8245_p9), [#allocation4], %s7085_s18  ;;  %s7091_s12 = scalar_lea.vmem (!%p8245_p9), [#allocation3], %s4953_s28 }
  0x81   : > { %6783 = dma.done.wait (%p8246_p0), %s370_s30, 4096  }
  0x82   : > { %6785 = vsyncadd (%p8246_p0), %s370_s30, 4294963200  ;;  %p8247_p11 = scmp.eq.s32.totalorder %s6904_s17, 0 }
  0x84   : > { %6787 = dma.done.wait (%p8247_p11), [#allocation7], 10240   ;;  %p8248_p8 = pmov %p8247_p11 }
  0x86   : > { %6789 = vsyncadd (%p8248_p8), [#allocation7], 4294957056  ;;  %p8249_p13 = pmov %p8248_p8 }
  0x87   : > { %p8250_p6 = pmov %p8248_p8 }
  0x88   : > { %6791 = dma.done.wait (%p8249_p13), [#allocation10], 1024  }
  0x89   : > { %6793 = vsyncadd (%p8250_p6), [#allocation10], 4294966272  ;;  %v6496_v0 = vld [vmem:[#allocation6] sm:$0xff]   ;;  %v6497_v1 = vld [vmem:[#allocation6 + $0x8] sm:$0xff]   ;;  %vm6824_vm2 = vmmov 1   ;;  %s8345_s19 = sld [smem:[#allocation18_spill]] }
  0x8a   : > { %5611 = vmatprep.subr.bf16.mxu0 %v6496_v0  ;;  %v6498_v2 = vld [vmem:[#allocation6 + $0x10] sm:$0xff]   ;;  %v6499_v3 = vld [vmem:[#allocation6 + $0x18] sm:$0xff]   ;;  %v423_v4 = vld [vmem:[%s7091_s12] sm:$0xff]  ;;  %s8027_s21 = scalar_lea.vmem [#allocation11], %s4953_s28  ;;  %s5346_s28 = sshll.u32 %s6904_s17, 12 }
  0x8b   : > { %5612 = vmatpush3.bf16.msra.mxu0 %v6496_v0  ;;  %v424_v5 = vld [vmem:[%s7091_s12 + $0x8] sm:$0xff]  ;;  %v6500_v7 = vld [vmem:[#allocation6 + $0x20] sm:$0xff]   ;;  %v6502_v9 = vld [vmem:[#allocation6 + $0x30] sm:$0xff]   ;;  %v6822_v0 = vmov 0.0   ;;  %s4841_s25 = sshll.u32 %s8027_s21, 4  ;;  %s8346_s26 = sld [smem:[#allocation19_spill]]  ;;  %s8149_s25 = int_to_ptr.vmem [resolvable:$true] %s4841_s25 }
  0x8c   : > { %5613 = vmatprep.subr.bf16.mxu0 %v6497_v1  ;;  %v455_v6 = vpack.c.bf16 %v424_v5, %v423_v4  ;;  %v6501_v8 = vld [vmem:[#allocation6 + $0x28] sm:$0xff]   ;;  %v6503_v10 = vld [vmem:[#allocation6 + $0x38] sm:$0xff]   ;;  %v425_v11 = vld [vmem:[%s7091_s12 + $0x10] sm:$0xff]  ;;  %807 = vst [vmem:[#allocation2 + $0x8] sm:$0xff] %v6822_v0  ;;  %s4828_s17 = scalar_lea.sflag [#allocation5], %s7085_s18  ;;  %s6738_s27 = scalar_lea.vmem %s8149_s25, 4096 }
  0x8d   : > { %v426_v12 = vld [vmem:[%s7091_s12 + $0x18] sm:$0xff]  ;;  %v427_v13 = vld [vmem:[%s7091_s12 + $0x20] sm:$0xff]  ;;  %v428_v14 = vld [vmem:[%s7091_s12 + $0x28] sm:$0xff]  ;;  %808 = vst [vmem:[#allocation2 + $0x10] sm:$0xff] %v6822_v0  ;;  %p6739_p10 = scmp.ne.s32.totalorder %s8149_s25, %s6738_s27 }
  0x8e   : > { %5627 = vmatprep.mubr.bf16.mxu0 %v455_v6  ;;  %v6504_v15 = vld [vmem:[#allocation8 + $0x40] sm:$0xff]   ;;  %v456_v16 = vpack.c.bf16 %v426_v12, %v425_v11  ;;  %v6505_v17 = vld [vmem:[#allocation8 + $0x48] sm:$0xff]   ;;  %v457_v18 = vpack.c.bf16 %v428_v14, %v427_v13  ;;  %v429_v19 = vld [vmem:[%s7091_s12 + $0x30] sm:$0xff]  ;;  %806 = vst [vmem:[#allocation2] sm:$0xff] %v6822_v0 }
  0x8f   : > { %5614 = vmatpush3.bf16.msra.mxu0 %v6497_v1  ;;  %v430_v20 = vld [vmem:[%s7091_s12 + $0x38] sm:$0xff]  ;;  %v431_v21 = vld [vmem:[%s7091_s12 + $0x40] sm:$0xff]  ;;  %v432_v22 = vld [vmem:[%s7091_s12 + $0x48] sm:$0xff]  ;;  %809 = vst [vmem:[#allocation2 + $0x118] sm:$0xff] %v6822_v0  ;;  %v6823_v1 = vmov 0.0|0.0   ;;  %p6740_p3 = pnand %p6739_p10, %p7037_p5 }
  0x90   : > { %5615 = vmatprep.subr.bf16.mxu0 %v6498_v2  ;;  %v6506_v23 = vld [vmem:[#allocation8 + $0x50] sm:$0xff]   ;;  %v458_v24 = vpack.c.bf16 %v430_v20, %v429_v19  ;;  %v459_v25 = vpack.c.bf16 %v432_v22, %v431_v21  ;;  %v434_v27 = vld [vmem:[%s7091_s12 + $0x58] sm:$0xff]  ;;  %v435_v28 = vld [vmem:[%s7091_s12 + $0x60] sm:$0xff]  ;;  %810 = vst [vmem:[#allocation2 + $0x120] sm:$0xff] %v6822_v0 }
  0x91   : > { %v433_v26 = vld [vmem:[%s7091_s12 + $0x50] sm:$0xff]  ;;  %v436_v29 = vld [vmem:[%s7091_s12 + $0x68] sm:$0xff]  ;;  %v438_v33 = vld [vmem:[%s7091_s12 + $0x78] sm:$0xff]  ;;  %811 = vst [vmem:[#allocation2 + $0x128] sm:$0xff] %v6822_v0  ;;  %s8147_s11 = scalar_lea.hbm %s8346_s26, %s5346_s28  ;;  %p6741_p7 = pneg %p6740_p3 }
  0x92   : > { %v460_v30 = vpack.c.bf16 %v434_v27, %v433_v26  ;;  %v461_v31 = vpack.c.bf16 %v436_v29, %v435_v28  ;;  %v437_v32 = vld [vmem:[%s7091_s12 + $0x70] sm:$0xff]  ;;  %v439_v34 = vld [vmem:[%s7091_s12 + $0x80] sm:$0xff]  ;;  %v440_v35 = vld [vmem:[%s7091_s12 + $0x88] sm:$0xff] }
  0x93   : > { %5616 = vmatpush3.bf16.msra.mxu0 %v6498_v2  ;;  %v462_v36 = vpack.c.bf16 %v438_v33, %v437_v32  ;;  %v463_v37 = vpack.c.bf16 %v440_v35, %v439_v34  ;;  %v441_v38 = vld [vmem:[%s7091_s12 + $0x90] sm:$0xff]  ;;  %v442_v39 = vld [vmem:[%s7091_s12 + $0x98] sm:$0xff]  ;;  %v443_v40 = vld [vmem:[%s7091_s12 + $0xa0] sm:$0xff] }
  0x94   : > { %5617 = vmatprep.subr.bf16.mxu0 %v6499_v3  ;;  %v444_v41 = vld [vmem:[%s7091_s12 + $0xa8] sm:$0xff]  ;;  %v464_v42 = vpack.c.bf16 %v442_v39, %v441_v38  ;;  %v445_v44 = vld [vmem:[%s7091_s12 + $0xb0] sm:$0xff]  ;;  %v446_v45 = vld [vmem:[%s7091_s12 + $0xb8] sm:$0xff] }
  0x95   : > { %v465_v43 = vpack.c.bf16 %v444_v41, %v443_v40  ;;  %v447_v46 = vld [vmem:[%s7091_s12 + $0xc0] sm:$0xff]  ;;  %v448_v47 = vld [vmem:[%s7091_s12 + $0xc8] sm:$0xff]  ;;  %v466_v48 = vpack.c.bf16 %v446_v45, %v445_v44  ;;  %v449_v50 = vld [vmem:[%s7091_s12 + $0xd0] sm:$0xff] }
  0x96   : > { %v467_v49 = vpack.c.bf16 %v448_v47, %v447_v46  ;;  %v450_v51 = vld [vmem:[%s7091_s12 + $0xd8] sm:$0xff]  ;;  %v451_v52 = vld [vmem:[%s7091_s12 + $0xe0] sm:$0xff]  ;;  %v452_v53 = vld [vmem:[%s7091_s12 + $0xe8] sm:$0xff] }
  0x97   : > { %5618 = vmatpush3.bf16.msra.mxu0 %v6499_v3  ;;  %v468_v54 = vpack.c.bf16 %v450_v51, %v449_v50  ;;  %v469_v55 = vpack.c.bf16 %v452_v53, %v451_v52  ;;  %v453_v56 = vld [vmem:[%s7091_s12 + $0xf0] sm:$0xff]  ;;  %v454_v57 = vld [vmem:[%s7091_s12 + $0xf8] sm:$0xff]  ;;  %v6508_v60 = vld [vmem:[#allocation8 + $0x60] sm:$0xff]  }
  0x98   : > { %5619 = vmatprep.subr.bf16.mxu0 %v6500_v7  ;;  %v470_v58 = vpack.c.bf16 %v454_v57, %v453_v56  ;;  %v6507_v59 = vld [vmem:[#allocation8 + $0x58] sm:$0xff]   ;;  %v6509_v61 = vld [vmem:[#allocation8 + $0x68] sm:$0xff]   ;;  %v6510_v62 = vld [vmem:[#allocation8 + $0x70] sm:$0xff]  }
  0x99   : > { %v6511_v63 = vld [vmem:[#allocation8 + $0x78] sm:$0xff]   ;;  %v7137_v2 = vld [vmem:[#allocation8 + $0xc0] sm:$0xff]   ;;  %v7141_v3 = vld [vmem:[#allocation8 + $0xc8] sm:$0xff]  }
  0x9a   : > { %6139 = vmatprep.subr.bf16.mxu1 %v7137_v2  ;;  %v6514_v4 = vld [vmem:[#allocation8 + $0xd0] sm:$0xff]   ;;  %v6515_v5 = vld [vmem:[#allocation8 + $0xd8] sm:$0xff]   ;;  %v6516_v6 = vld [vmem:[#allocation8 + $0xe0] sm:$0xff]  }
  0x9b   : > { %5620 = vmatpush3.bf16.msra.mxu0 %v6500_v7  ;;  %6147 = vmatpush3.bf16.msra.mxu1 %v7137_v2  ;;  %v6517_v7 = vld [vmem:[#allocation8 + $0xe8] sm:$0xff]   ;;  %v7145_v11 = vld [vmem:[#allocation8 + $0x100] sm:$0xff]   ;;  %v7151_v12 = vld [vmem:[%s8198_s2] ss:$0 sm:$0xff] }
  0x9c   : > { %5621 = vmatprep.subr.bf16.mxu0 %v6501_v8  ;;  %6140 = vmatprep.subr.bf16.mxu1 %v7141_v3  ;;  %v7156_v14 = vld [vmem:[%s8199_s3] ss:$0 sm:$0xff]  ;;  %v6526_v57 = vld [vmem:[#allocation8 + $0x18] sm:$0xff]  }
  0x9d   : > { %v6524_v47 = vld [vmem:[#allocation8 + $0x10] sm:$0xff]  }
  0x9f   : > { %5622 = vmatpush3.bf16.msra.mxu0 %v6501_v8  ;;  %6148 = vmatpush3.bf16.msra.mxu1 %v7141_v3  ;;  %v6520_v8 = vld [vmem:[#allocation8] sm:$0xff]  }
  0xa0   : > { %5623 = vmatprep.subr.bf16.mxu0 %v6502_v9  ;;  %6141 = vmatprep.subr.bf16.mxu1 %v6514_v4 }
  0xa3   : > { %5624 = vmatpush3.bf16.msra.mxu0 %v6502_v9  ;;  %6149 = vmatpush3.bf16.msra.mxu1 %v6514_v4  ;;  %v6518_v9 = vld [vmem:[#allocation8 + $0xf0] sm:$0xff]  }
  0xa4   : > { %5625 = vmatprep.subr.bf16.mxu0 %v6503_v10  ;;  %6142 = vmatprep.subr.bf16.mxu1 %v6515_v5 }
  0xa7   : > { %5626 = vmatpush3.bf16.msra.mxu0 %v6503_v10  ;;  %6150 = vmatpush3.bf16.msra.mxu1 %v6515_v5  ;;  %v6519_v10 = vld [vmem:[#allocation8 + $0xf8] sm:$0xff]   ;;  %v6528_v5 = vld [vmem:[#allocation8 + $0x20] sm:$0xff]  }
  0xa8   : > { %5659 = vmatprep.subr.bf16.mxu0 %v6504_v15  ;;  %6143 = vmatprep.subr.bf16.mxu1 %v6516_v6 }
  0xaa   : > { %5628 = vmatmul.mubr.bf16.vlgmr.msra.gmra.mrb[0].mxu0 %v456_v16 }
  0xab   : > { %5631 = vmatprep.mubr.bf16.mxu0 %v457_v18  ;;  %5660 = vmatpush3.bf16.msra.mxu0 %v6504_v15 }
  0xac   : > { %5661 = vmatprep.subr.bf16.mxu0 %v6505_v17  ;;  %6151 = vmatpush3.bf16.msra.mxu1 %v6516_v6 }
  0xad   : > { %6144 = vmatprep.subr.bf16.mxu1 %v6517_v7 }
  0xaf   : > { %5662 = vmatpush3.bf16.msra.mxu0 %v6505_v17 }
  0xb0   : > { %5663 = vmatprep.subr.bf16.mxu0 %v6506_v23  ;;  %6152 = vmatpush3.bf16.msra.mxu1 %v6517_v7 }
  0xb1   : > { %6145 = vmatprep.subr.bf16.mxu1 %v6518_v9 }
  0xb2   : > { %5632 = vmatmul.mubr.bf16.gmra.mrb[4].mxu0 %v458_v24 }
  0xb3   : > { %5635 = vmatprep.mubr.bf16.mxu0 %v459_v25  ;;  %5664 = vmatpush3.bf16.msra.mxu0 %v6506_v23 }
  0xb4   : > { %5665 = vmatprep.subr.bf16.mxu0 %v6507_v59  ;;  %6153 = vmatpush3.bf16.msra.mxu1 %v6518_v9 }
  0xb5   : > { %6146 = vmatprep.subr.bf16.mxu1 %v6519_v10 }
  0xb7   : > { %5666 = vmatpush3.bf16.msra.mxu0 %v6507_v59 }
  0xb8   : > { %5667 = vmatprep.subr.bf16.mxu0 %v6508_v60  ;;  %6154 = vmatpush3.bf16.msra.mxu1 %v6519_v10 }
  0xb9   : > { %5851 = vmatprep.subr.bf16.mxu1 %v7145_v11 }
  0xba   : > { %5636 = vmatmul.mubr.bf16.gmra.mrb[8].mxu0 %v460_v30 }
  0xbb   : > { %5639 = vmatprep.mubr.bf16.mxu0 %v461_v31  ;;  %5668 = vmatpush3.bf16.msra.mxu0 %v6508_v60 }
  0xbc   : > { %5669 = vmatprep.subr.bf16.mxu0 %v6509_v61 }
  0xbf   : > { %5670 = vmatpush3.bf16.msra.mxu0 %v6509_v61 }
  0xc0   : > { %5671 = vmatprep.subr.bf16.mxu0 %v6510_v62 }
  0xc2   : > { %5640 = vmatmul.mubr.bf16.gmra.mrb[12].mxu0 %v462_v36 }
  0xc3   : > { %5643 = vmatprep.mubr.bf16.mxu0 %v463_v37  ;;  %5672 = vmatpush3.bf16.msra.mxu0 %v6510_v62  ;;  %v6522_v37 = vld [vmem:[#allocation8 + $0x8] sm:$0xff]  }
  0xc4   : > { %5673 = vmatprep.subr.bf16.mxu0 %v6511_v63 }
  0xc7   : > { %5674 = vmatpush3.bf16.msra.mxu0 %v6511_v63 }
  0xc8   : > { %5707 = vmatprep.subr.bf16.mxu0 %v6520_v8 }
  0xca   : > { %5644 = vmatmul.mubr.bf16.gmra.mrb[16].mxu0 %v464_v42 }
  0xcb   : > { %5647 = vmatprep.mubr.bf16.mxu0 %v465_v43 }
  0xd2   : > { %5648 = vmatmul.mubr.bf16.gmra.mrb[20].mxu0 %v466_v48 }
  0xd3   : > { %5651 = vmatprep.mubr.bf16.mxu0 %v467_v49 }
  0xda   : > { %5652 = vmatmul.mubr.bf16.gmra.mrb[24].mxu0 %v468_v54 }
  0xdb   : > { %5655 = vmatprep.mubr.bf16.mxu0 %v469_v55 }
  0xe2   : > { %5656 = vmatmul.mubr.bf16.gmra.mrb[28].mxu0 %v470_v58 }
  0xe3   : > { %5675 = vmatprep.mubr.bf16.mxu0 %v6823_v1 }
 0x17d   : > { %v5629_v13 = vpop.f32.mrb[0].mxu0 }
 0x17e   : > { %v705_v15 = vmul.f32 %v5629_v13, %v7151_v12  ;;  %v569_v16 = vpop.f32.mrb[1].mxu0 }
 0x17f   : > { %v703_v17 = vmul.f32 %v7151_v12, %v569_v16  ;;  %v5630_v18 = vpop.f32.mrb[2].mxu0 }
 0x180   : > { %v744_v19 = vadd.f32 %v7156_v14, %v705_v15  ;;  %v706_v20 = vmul.f32 %v5630_v18, %v7151_v12  ;;  %v572_v21 = vpop.f32.mrb[3].mxu0  ;;  %v6530_v18 = vld [vmem:[#allocation8 + $0x28] sm:$0xff]  }
 0x181   : > { %v742_v22 = vadd.f32 %v7156_v14, %v703_v17  ;;  %v704_v23 = vmul.f32 %v7151_v12, %v572_v21 }
 0x182   : > { %v776_v24 = vmax.f32 %v744_v19, 0.0  ;;  %v745_v25 = vadd.f32 %v7156_v14, %v706_v20 }
 0x183   : > { %v774_v26 = vmax.f32 %v742_v22, 0.0  ;;  %v743_v27 = vadd.f32 %v7156_v14, %v704_v23 }
 0x184   : > { %814 = vst [vmem:[#allocation2 + $0x28] sm:$0xff] %v776_v24  ;;  %v777_v28 = vmax.f32 %v745_v25, 0.0 }
 0x185   : > { %812 = vst [vmem:[#allocation2 + $0x18] sm:$0xff] %v774_v26  ;;  %v775_v29 = vmax.f32 %v743_v27, 0.0  ;;  %v5633_v30 = vpop.f32.mrb[4].mxu0 }
 0x186   : > { %815 = vst [vmem:[#allocation2 + $0x30] sm:$0xff] %v777_v28  ;;  %v7166_v31 = vpack.c.bf16 %v777_v28, %v776_v24  ;;  %v709_v32 = vmul.f32 %v5633_v30, %v7151_v12  ;;  %v585_v33 = vpop.f32.mrb[5].mxu0  ;;  %v844_v24 = vlaneseq }
 0x187   : > { %813 = vst [vmem:[#allocation2 + $0x20] sm:$0xff] %v775_v29  ;;  %v707_v34 = vmul.f32 %v7151_v12, %v585_v33  ;;  %v5634_v35 = vpop.f32.mrb[6].mxu0  ;;  %v7170_v36 = vpack.c.bf16 %v775_v29, %v774_v26  ;;  %v6532_v29 = vld [vmem:[#allocation8 + $0x30] sm:$0xff]  }
 0x188   : > { %v748_v38 = vadd.f32 %v7156_v14, %v709_v32  ;;  %v710_v39 = vmul.f32 %v5634_v35, %v7151_v12  ;;  %v588_v40 = vpop.f32.mrb[7].mxu0 }
 0x189   : > { %v746_v41 = vadd.f32 %v7156_v14, %v707_v34  ;;  %v708_v42 = vmul.f32 %v7151_v12, %v588_v40  ;;  %5676 = vmatmul.mubr.bf16.vlgmr.msra.gmra.mrb[32].mxu0 %v7170_v36  ;;  %v7208_v34 = vshrl.u32 %v844_v24, 7 }
 0x18a   : > { %v780_v43 = vmax.f32 %v748_v38, 0.0  ;;  %v749_v44 = vadd.f32 %v7156_v14, %v710_v39  ;;  %5679 = vmatprep.mubr.bf16.mxu0 %v7166_v31  ;;  %5708 = vmatpush3.bf16.msra.mxu0 %v6520_v8 }
 0x18b   : > { %v778_v45 = vmax.f32 %v746_v41, 0.0  ;;  %v747_v46 = vadd.f32 %v7156_v14, %v708_v42  ;;  %5709 = vmatprep.subr.bf16.mxu0 %v6522_v37  ;;  %v6534_v42 = vld [vmem:[#allocation8 + $0x38] sm:$0xff]   ;;  %v867_v24 = vadd.s32 176, %v7208_v34 }
 0x18c   : > { %818 = vst [vmem:[#allocation2 + $0x48] sm:$0xff] %v780_v43  ;;  %v781_v48 = vmax.f32 %v749_v44, 0.0 }
 0x18d   : > { %816 = vst [vmem:[#allocation2 + $0x38] sm:$0xff] %v778_v45  ;;  %v779_v49 = vmax.f32 %v747_v46, 0.0  ;;  %v5637_v50 = vpop.f32.mrb[8].mxu0 }
 0x18e   : > { %819 = vst [vmem:[#allocation2 + $0x50] sm:$0xff] %v781_v48  ;;  %v713_v51 = vmul.f32 %v5637_v50, %v7151_v12  ;;  %v601_v52 = vpop.f32.mrb[9].mxu0  ;;  %v7181_v53 = vpack.c.bf16 %v781_v48, %v780_v43  ;;  %5710 = vmatpush3.bf16.msra.mxu0 %v6522_v37  ;;  %v861_v48 = vadd.s32 128, %v7208_v34 }
 0x18f   : > { %817 = vst [vmem:[#allocation2 + $0x40] sm:$0xff] %v779_v49  ;;  %v711_v54 = vmul.f32 %v7151_v12, %v601_v52  ;;  %v5638_v55 = vpop.f32.mrb[10].mxu0  ;;  %v7184_v56 = vpack.c.bf16 %v779_v49, %v778_v45  ;;  %5711 = vmatprep.subr.bf16.mxu0 %v6524_v47 }
 0x190   : > { %v752_v58 = vadd.f32 %v7156_v14, %v713_v51  ;;  %v714_v59 = vmul.f32 %v5638_v55, %v7151_v12  ;;  %v604_v60 = vpop.f32.mrb[11].mxu0 }
 0x191   : > { %v750_v61 = vadd.f32 %v7156_v14, %v711_v54  ;;  %v712_v62 = vmul.f32 %v7151_v12, %v604_v60  ;;  %5680 = vmatmul.mubr.bf16.gmra.mrb[36].mxu0 %v7184_v56  ;;  %v7225_v54 = vld [vmem:[#allocation8 + $0x80] sm:$0xff]   ;;  %v993_v60 = vand.u32 15, %v861_v48 }
 0x192   : > { %v784_v63 = vmax.f32 %v752_v58, 0.0  ;;  %v753_v0 = vadd.f32 %v7156_v14, %v714_v59  ;;  %5683 = vmatprep.mubr.bf16.mxu0 %v7181_v53  ;;  %5712 = vmatpush3.bf16.msra.mxu0 %v6524_v47 }
 0x193   : > { %v782_v1 = vmax.f32 %v750_v61, 0.0  ;;  %v751_v4 = vadd.f32 %v7156_v14, %v712_v62  ;;  %5713 = vmatprep.subr.bf16.mxu0 %v6526_v57  ;;  %vm7240_vm0 = vcmp.ge.s32.totalorder %v993_v60, 1  ;;  %v871_v60 = vadd.s32 208, %v7208_v34 }
 0x194   : > { %822 = vst [vmem:[#allocation2 + $0x68] sm:$0xff] %v784_v63  ;;  %v785_v6 = vmax.f32 %v753_v0, 0.0  ;;  %vm7256_vm3 = vmpackc.low %vm6824_vm2, %vm7240_vm0 }
 0x195   : > { %820 = vst [vmem:[#allocation2 + $0x58] sm:$0xff] %v782_v1  ;;  %v783_v7 = vmax.f32 %v751_v4, 0.0  ;;  %v5641_v8 = vpop.f32.mrb[12].mxu0 }
 0x196   : > { %823 = vst [vmem:[#allocation2 + $0x70] sm:$0xff] %v785_v6  ;;  %v717_v9 = vmul.f32 %v5641_v8, %v7151_v12  ;;  %v617_v10 = vpop.f32.mrb[13].mxu0  ;;  %v7195_v13 = vpack.c.bf16 %v785_v6, %v784_v63  ;;  %5714 = vmatpush3.bf16.msra.mxu0 %v6526_v57  ;;  %v863_v57 = vadd.s32 144, %v7208_v34 }
 0x197   : > { %821 = vst [vmem:[#allocation2 + $0x60] sm:$0xff] %v783_v7  ;;  %v715_v15 = vmul.f32 %v7151_v12, %v617_v10  ;;  %v5642_v16 = vpop.f32.mrb[14].mxu0  ;;  %v7198_v17 = vpack.c.bf16 %v783_v7, %v782_v1  ;;  %5715 = vmatprep.subr.bf16.mxu0 %v6528_v5 }
 0x198   : > { %v756_v19 = vadd.f32 %v7156_v14, %v717_v9  ;;  %v718_v20 = vmul.f32 %v5642_v16, %v7151_v12  ;;  %v620_v21 = vpop.f32.mrb[15].mxu0  ;;  %v1007_v8 = vand.u32 15, %v863_v57  ;;  %v869_v57 = vadd.s32 192, %v7208_v34 }
 0x199   : > { %v754_v22 = vadd.f32 %v7156_v14, %v715_v15  ;;  %v716_v23 = vmul.f32 %v7151_v12, %v620_v21  ;;  %5684 = vmatmul.mubr.bf16.gmra.mrb[40].mxu0 %v7198_v17 }
 0x19a   : > { %v788_v25 = vmax.f32 %v756_v19, 0.0  ;;  %v757_v26 = vadd.f32 %v7156_v14, %v718_v20  ;;  %5687 = vmatprep.mubr.bf16.mxu0 %v7195_v13  ;;  %5716 = vmatpush3.bf16.msra.mxu0 %v6528_v5  ;;  %v865_v19 = vadd.s32 160, %v7208_v34  ;;  %vm7248_vm1 = vcmp.ge.s32.totalorder %v1007_v8, 1 }
 0x19b   : > { %v786_v27 = vmax.f32 %v754_v22, 0.0  ;;  %v755_v28 = vadd.f32 %v7156_v14, %v716_v23  ;;  %5717 = vmatprep.subr.bf16.mxu0 %v6530_v18  ;;  %vm7269_vm4 = vmpackc.low %vm6824_vm2, %vm7248_vm1  ;;  %v8261_v8 = vmov 0 }
 0x19c   : > { %826 = vst [vmem:[#allocation2 + $0x88] sm:$0xff] %v788_v25  ;;  %v789_v30 = vmax.f32 %v757_v26, 0.0 }
 0x19d   : > { %824 = vst [vmem:[#allocation2 + $0x78] sm:$0xff] %v786_v27  ;;  %v787_v32 = vmax.f32 %v755_v28, 0.0  ;;  %v5645_v33 = vpop.f32.mrb[16].mxu0 }
 0x19e   : > { %827 = vst [vmem:[#allocation2 + $0x90] sm:$0xff] %v789_v30  ;;  %v721_v35 = vmul.f32 %v5645_v33, %v7151_v12  ;;  %v633_v37 = vpop.f32.mrb[17].mxu0  ;;  %v7211_v38 = vpack.c.bf16 %v789_v30, %v788_v25  ;;  %5718 = vmatpush3.bf16.msra.mxu0 %v6530_v18 }
 0x19f   : > { %825 = vst [vmem:[#allocation2 + $0x80] sm:$0xff] %v787_v32  ;;  %v719_v39 = vmul.f32 %v7151_v12, %v633_v37  ;;  %v5646_v40 = vpop.f32.mrb[18].mxu0  ;;  %v7214_v41 = vpack.c.bf16 %v787_v32, %v786_v27  ;;  %5719 = vmatprep.subr.bf16.mxu0 %v6532_v29  ;;  %v1021_v37 = vand.u32 15, %v865_v19 }
 0x1a0   : > { %v760_v43 = vadd.f32 %v7156_v14, %v721_v35  ;;  %v722_v44 = vmul.f32 %v5646_v40, %v7151_v12  ;;  %v636_v45 = vpop.f32.mrb[19].mxu0 }
 0x1a1   : > { %v758_v46 = vadd.f32 %v7156_v14, %v719_v39  ;;  %v720_v47 = vmul.f32 %v7151_v12, %v636_v45  ;;  %5688 = vmatmul.mubr.bf16.gmra.mrb[44].mxu0 %v7214_v41  ;;  %vm1281_vm5 = vcmp.ge.s32.totalorder %v1021_v37, 1  ;;  %v875_v37 = vadd.s32 240, %v7208_v34 }
 0x1a2   : > { %v792_v49 = vmax.f32 %v760_v43, 0.0  ;;  %v761_v50 = vadd.f32 %v7156_v14, %v722_v44  ;;  %5691 = vmatprep.mubr.bf16.mxu0 %v7211_v38  ;;  %5720 = vmatpush3.bf16.msra.mxu0 %v6532_v29  ;;  %vm7299_vm7 = vmpackc.low %vm6824_vm2, %vm1281_vm5 }
 0x1a3   : > { %v790_v51 = vmax.f32 %v758_v46, 0.0  ;;  %v759_v52 = vadd.f32 %v7156_v14, %v720_v47  ;;  %5721 = vmatprep.subr.bf16.mxu0 %v6534_v42  ;;  %v8262_v8 = vsel %vm7299_vm7, 4294967295, %v8261_v8 }
 0x1a4   : > { %830 = vst [vmem:[#allocation2 + $0xa8] sm:$0xff] %v792_v49  ;;  %v793_v55 = vmax.f32 %v761_v50, 0.0  ;;  %v6523_v50 = vld [vmem:[#allocation8 + $0x108] sm:$0xff]  }
 0x1a5   : > { %828 = vst [vmem:[#allocation2 + $0x98] sm:$0xff] %v790_v51  ;;  %v791_v58 = vmax.f32 %v759_v52, 0.0  ;;  %v5649_v59 = vpop.f32.mrb[20].mxu0 }
 0x1a6   : > { %831 = vst [vmem:[#allocation2 + $0xb0] sm:$0xff] %v793_v55  ;;  %v725_v61 = vmul.f32 %v5649_v59, %v7151_v12  ;;  %v649_v62 = vpop.f32.mrb[21].mxu0  ;;  %v7229_v63 = vpack.c.bf16 %v793_v55, %v792_v49  ;;  %5722 = vmatpush3.bf16.msra.mxu0 %v6534_v42 }
 0x1a7   : > { %829 = vst [vmem:[#allocation2 + $0xa0] sm:$0xff] %v791_v58  ;;  %v723_v0 = vmul.f32 %v7151_v12, %v649_v62  ;;  %v5650_v1 = vpop.f32.mrb[22].mxu0  ;;  %v7232_v4 = vpack.c.bf16 %v791_v58, %v790_v51  ;;  %5755 = vmatprep.subr.bf16.mxu0 %v7225_v54  ;;  %v1035_v51 = vand.u32 15, %v867_v24 }
 0x1a8   : > { %v764_v5 = vadd.f32 %v7156_v14, %v725_v61  ;;  %v726_v6 = vmul.f32 %v5650_v1, %v7151_v12  ;;  %v652_v7 = vpop.f32.mrb[23].mxu0  ;;  %v6525_v1 = vld [vmem:[#allocation8 + $0x110] sm:$0xff]  }
 0x1a9   : > { %v762_v9 = vadd.f32 %v7156_v14, %v723_v0  ;;  %v724_v10 = vmul.f32 %v7151_v12, %v652_v7  ;;  %5692 = vmatmul.mubr.bf16.gmra.mrb[48].mxu0 %v7232_v4  ;;  %vm7294_vm6 = vcmp.ge.s32.totalorder %v1035_v51, 1 }
 0x1aa   : > { %v796_v16 = vmax.f32 %v764_v5, 0.0  ;;  %v765_v18 = vadd.f32 %v7156_v14, %v726_v6  ;;  %5695 = vmatprep.mubr.bf16.mxu0 %v7229_v63  ;;  %vm7313_vm8 = vmpackc.low %vm6824_vm2, %vm7294_vm6 }
 0x1ab   : > { %v794_v20 = vmax.f32 %v762_v9, 0.0  ;;  %v763_v21 = vadd.f32 %v7156_v14, %v724_v10  ;;  %v1049_v10 = vand.u32 15, %v869_v57 }
 0x1ac   : > { %834 = vst [vmem:[#allocation2 + $0xc8] sm:$0xff] %v796_v16  ;;  %v797_v22 = vmax.f32 %v765_v18, 0.0  ;;  %v2386_v32 = vld [vmem:[#allocation2 + $0x97] sm:$0xff] }
 0x1ad   : > { %832 = vst [vmem:[#allocation2 + $0xb8] sm:$0xff] %v794_v20  ;;  %v795_v25 = vmax.f32 %v763_v21, 0.0  ;;  %v5653_v26 = vpop.f32.mrb[24].mxu0  ;;  %v2389_v28 = vld [vmem:[#allocation2 + $0xaf] sm:$0xff]  ;;  %v1063_v21 = vand.u32 15, %v871_v60  ;;  %vm7331_vm9 = vcmp.ge.s32.totalorder %v1049_v10, 1 }
 0x1ae   : > { %835 = vst [vmem:[#allocation2 + $0xd0] sm:$0xff] %v797_v22  ;;  %v729_v29 = vmul.f32 %v5653_v26, %v7151_v12  ;;  %v665_v30 = vpop.f32.mrb[25].mxu0  ;;  %v2387_v33 = vld [vmem:[#allocation2 + $0x9f] sm:$0xff]  ;;  %v2388_v35 = vld [vmem:[#allocation2 + $0xa7] sm:$0xff]  ;;  %v7261_v39 = vpack.c.bf16 %v797_v22, %v796_v16  ;;  %v873_v22 = vadd.s32 224, %v7208_v34  ;;  %v8263_v26 = vmov 0  ;;  %vm7349_vm11 = vmpackc.low %vm6824_vm2, %vm7331_vm9 }
 0x1af   : > { %833 = vst [vmem:[#allocation2 + $0xc0] sm:$0xff] %v795_v25  ;;  %v727_v40 = vmul.f32 %v7151_v12, %v665_v30  ;;  %v5654_v42 = vpop.f32.mrb[26].mxu0  ;;  %v7264_v43 = vpack.c.bf16 %v2387_v33, %v2386_v32  ;;  %v7273_v45 = vpack.c.bf16 %v2389_v28, %v2388_v35  ;;  %v7275_v46 = vpack.c.bf16 %v795_v25, %v794_v20  ;;  %v6527_v35 = vld [vmem:[#allocation8 + $0x118] sm:$0xff]  }
 0x1b0   : > { %v768_v47 = vadd.f32 %v7156_v14, %v729_v29  ;;  %v730_v48 = vmul.f32 %v5654_v42, %v7151_v12  ;;  %v668_v49 = vpop.f32.mrb[27].mxu0  ;;  %v8264_v26 = vsel %vm7313_vm8, 4294967295, %v8263_v26  ;;  %vm7341_vm10 = vcmp.ge.s32.totalorder %v1063_v21, 1 }
 0x1b1   : > { %v766_v52 = vadd.f32 %v7156_v14, %v727_v40  ;;  %v728_v55 = vmul.f32 %v7151_v12, %v668_v49  ;;  %5835 = vmatprep.mubr.msk.bf16.mxu1 %vm7256_vm3, %v7264_v43  ;;  %5696 = vmatmul.mubr.bf16.gmra.mrb[52].mxu0 %v7275_v46  ;;  %v881_v40 = vand.u32 15, %v7208_v34  ;;  %v847_v49 = vadd.s32 16, %v7208_v34  ;;  %vm7361_vm13 = vmpackc.low %vm6824_vm2, %vm7341_vm10 }
 0x1b2   : > { %v800_v58 = vmax.f32 %v768_v47, 0.0  ;;  %v769_v59 = vadd.f32 %v7156_v14, %v730_v48  ;;  %5836 = vmatmul.mubr.msk.bf16.vlgmr.msra.gmra.mrb[0].mxu1 %vm7269_vm4, %v7273_v45  ;;  %5699 = vmatprep.mubr.bf16.mxu0 %v7261_v39  ;;  %v1077_v57 = vand.u32 15, %v873_v22  ;;  %v853_v48 = vadd.s32 64, %v7208_v34 }
 0x1b3   : > { %v798_v61 = vmax.f32 %v766_v52, 0.0  ;;  %v767_v62 = vadd.f32 %v7156_v14, %v728_v55  ;;  %5852 = vmatpush3.bf16.msra.mxu1 %v7145_v11  ;;  %vm7353_vm12 = vcmp.ge.s32.totalorder %v881_v40, 1  ;;  %v1455_v40 = vld [vmem:[#allocation2 + $0x17] sm:$0xff] }
 0x1b4   : > { %838 = vst [vmem:[#allocation2 + $0xe8] sm:$0xff] %v800_v58  ;;  %v801_v0 = vmax.f32 %v769_v59, 0.0  ;;  %5853 = vmatprep.subr.bf16.mxu1 %v6523_v50  ;;  %v2390_v16 = vld [vmem:[#allocation2 + $0xb7] sm:$0xff]  ;;  %v1454_v59 = vld [vmem:[#allocation2 + $0xf] sm:$0xff]  ;;  %vm1289_vm14 = vcmp.ge.s32.totalorder %v1077_v57, 1  ;;  %vm7376_vm15 = vmpackc.low %vm6824_vm2, %vm7353_vm12 }
 0x1b5   : > { %836 = vst [vmem:[#allocation2 + $0xd8] sm:$0xff] %v798_v61  ;;  %v799_v6 = vmax.f32 %v767_v62, 0.0  ;;  %v5657_v7 = vpop.f32.mrb[28].mxu0  ;;  %v2393_v9 = vld [vmem:[#allocation2 + $0xcf] sm:$0xff]  ;;  %vm7388_vm5 = vmpackc.low %vm6824_vm2, %vm1289_vm14 }
 0x1b6   : > { %839 = vst [vmem:[#allocation2 + $0xf0] sm:$0xff] %v801_v0  ;;  %v733_v11 = vmul.f32 %v5657_v7, %v7151_v12  ;;  %v681_v15 = vpop.f32.mrb[29].mxu0  ;;  %v2391_v18 = vld [vmem:[#allocation2 + $0xbf] sm:$0xff]  ;;  %v2392_v19 = vld [vmem:[#allocation2 + $0xc7] sm:$0xff]  ;;  %v7304_v20 = vpack.c.bf16 %v801_v0, %v800_v58  ;;  %v6529_v62 = vld [vmem:[#allocation8 + $0x120] sm:$0xff]   ;;  %v1091_v0 = vand.u32 15, %v875_v37 }
 0x1b7   : > { %837 = vst [vmem:[#allocation2 + $0xe0] sm:$0xff] %v799_v6  ;;  %v731_v23 = vmul.f32 %v7151_v12, %v681_v15  ;;  %5854 = vmatpush3.bf16.msra.mxu1 %v6523_v50  ;;  %v5658_v24 = vpop.f32.mrb[30].mxu0  ;;  %v7308_v25 = vpack.c.bf16 %v2391_v18, %v2390_v16  ;;  %v7317_v28 = vpack.c.bf16 %v2393_v9, %v2392_v19  ;;  %v1453_v58 = vld [vmem:[#allocation2 + $0x7] sm:$0xff]  ;;  %v895_v9 = vand.u32 15, %v847_v49 }
 0x1b8   : > { %v7319_v29 = vpack.c.bf16 %v799_v6, %v798_v61  ;;  %v772_v30 = vadd.f32 %v7156_v14, %v733_v11  ;;  %v734_v32 = vmul.f32 %v5658_v24, %v7151_v12  ;;  %v684_v33 = vpop.f32.mrb[31].mxu0  ;;  %5855 = vmatprep.subr.bf16.mxu1 %v6525_v1  ;;  %v8269_v61 = vmov 0  ;;  %v6531_v24 = vld [vmem:[#allocation8 + $0x128] sm:$0xff]  }
 0x1b9   : > { %v770_v42 = vadd.f32 %v7156_v14, %v731_v23  ;;  %v732_v47 = vmul.f32 %v7151_v12, %v684_v33  ;;  %5839 = vmatprep.mubr.msk.bf16.mxu1 %vm7299_vm7, %v7308_v25  ;;  %v8270_v61 = vsel %vm7349_vm11, 4294967295, %v8269_v61  ;;  %v8273_v6 = vmov 0  ;;  %v6533_v33 = vld [vmem:[#allocation8 + $0x130] sm:$0xff]  }
 0x1ba   : > { %5700 = vmatmul.mubr.bf16.gmra.mrb[56].mxu0 %v7319_v29  ;;  %v804_v50 = vmax.f32 %v772_v30, 0.0  ;;  %v773_v51 = vadd.f32 %v7156_v14, %v734_v32  ;;  %5840 = vmatmul.mubr.msk.bf16.gmra.mrb[4].mxu1 %vm7313_vm8, %v7317_v28  ;;  %v8274_v6 = vsel %vm7361_vm13, 4294967295, %v8273_v6  ;;  %v4985_v16 = vpack.c.bf16 %v1454_v59, %v1453_v58  ;;  %v6562_v23 = vld [vmem:[#allocation8 + $0x1d0] sm:$0xff]  }
 0x1bb   : > { %5703 = vmatprep.mubr.bf16.mxu0 %v7304_v20  ;;  %v802_v52 = vmax.f32 %v770_v42, 0.0  ;;  %v771_v55 = vadd.f32 %v7156_v14, %v732_v47  ;;  %5856 = vmatpush3.bf16.msra.mxu1 %v6525_v1  ;;  %v849_v14 = vadd.s32 32, %v7208_v34  ;;  %vm1291_vm0 = vcmp.ge.s32.totalorder %v1091_v0, 1  ;;  %v1456_v42 = vld [vmem:[#allocation2 + $0x1f] sm:$0xff]  ;;  %v6535_v0 = vld [vmem:[#allocation8 + $0x138] sm:$0xff]   ;;  %v6564_v47 = vld [vmem:[#allocation8 + $0x1e0] sm:$0xff]  }
 0x1bc   : > { %842 = vst [vmem:[#allocation2 + $0x108] sm:$0xff] %v804_v50  ;;  %v805_v60 = vmax.f32 %v773_v51, 0.0  ;;  %5857 = vmatprep.subr.bf16.mxu1 %v6527_v35  ;;  %v2394_v10 = vld [vmem:[#allocation2 + $0xd7] sm:$0xff]  ;;  %vm1263_vm1 = vcmp.ge.s32.totalorder %v895_v9, 1  ;;  %v8277_v32 = vmov 0  ;;  %vm7395_vm6 = vmpackc.low %vm6824_vm2, %vm1291_vm0  ;;  %v851_v37 = vadd.s32 48, %v7208_v34 }
 0x1bd   : > { %840 = vst [vmem:[#allocation2 + $0xf8] sm:$0xff] %v802_v52  ;;  %v803_v1 = vmax.f32 %v771_v55, 0.0  ;;  %v2397_v7 = vld [vmem:[#allocation2 + $0xef] sm:$0xff]  ;;  %v909_v30 = vand.u32 15, %v849_v14  ;;  %v8278_v32 = vsel %vm7388_vm5, 4294967295, %v8277_v32  ;;  %vm7401_vm9 = vmpackc.low %vm6824_vm2, %vm1263_vm1  ;;  %v7408_v59 = vpack.c.bf16 %v1456_v42, %v1455_v40 }
 0x1be   : > { %843 = vst [vmem:[#allocation2 + $0x110] sm:$0xff] %v805_v60  ;;  %v2395_v11 = vld [vmem:[#allocation2 + $0xdf] sm:$0xff]  ;;  %v2396_v15 = vld [vmem:[#allocation2 + $0xe7] sm:$0xff]  ;;  %v7365_v18 = vpack.c.bf16 %v805_v60, %v804_v50  ;;  %v1458_v51 = vld [vmem:[#allocation2 + $0x2f] sm:$0xff]  ;;  %v937_v14 = vand.u32 15, %v853_v48 }
 0x1bf   : > { %841 = vst [vmem:[#allocation2 + $0x100] sm:$0xff] %v803_v1  ;;  %5858 = vmatpush3.bf16.msra.mxu1 %v6527_v35  ;;  %v7367_v19 = vpack.c.bf16 %v2395_v11, %v2394_v10  ;;  %v7369_v21 = vpack.c.bf16 %v2397_v7, %v2396_v15  ;;  %v7371_v22 = vpack.c.bf16 %v803_v1, %v802_v52  ;;  %v8279_v35 = vmov 0  ;;  %v1457_v50 = vld [vmem:[#allocation2 + $0x27] sm:$0xff]  ;;  %v6542_v1 = vld [vmem:[#allocation8 + $0x88] sm:$0xff]   ;;  %v6536_v9 = vld [vmem:[#allocation8 + $0x140] sm:$0xff]  }
 0x1c0   : > { %5859 = vmatprep.subr.bf16.mxu1 %v6529_v62  ;;  %v8280_v35 = vsel %vm7395_vm6, 4294967295, %v8279_v35  ;;  %vm1265_vm10 = vcmp.ge.s32.totalorder %v909_v30, 1  ;;  %v7415_v5 = vpack.c.bf16 %v1458_v51, %v1457_v50  ;;  %v855_v7 = vadd.s32 80, %v7208_v34  ;;  %v1460_v10 = vld [vmem:[#allocation2 + $0x3f] sm:$0xff]  ;;  %v1461_v15 = vld [vmem:[#allocation2 + $0x47] sm:$0xff]  ;;  %v1459_v30 = vld [vmem:[#allocation2 + $0x37] sm:$0xff] }
 0x1c1   : > { %5843 = vmatprep.mubr.msk.bf16.mxu1 %vm7349_vm11, %v7367_v19  ;;  %vm7411_vm12 = vmpackc.low %vm6824_vm2, %vm1265_vm10  ;;  %vm1269_vm0 = vcmp.ge.s32.totalorder %v937_v14, 1  ;;  %v857_v11 = vadd.s32 96, %v7208_v34  ;;  %v859_v50 = vadd.s32 112, %v7208_v34  ;;  %v1464_v51 = vld [vmem:[#allocation2 + $0x5f] sm:$0xff]  ;;  %v3344_v27 = vld [vmem:[#allocation2 + $0xe7] sm:$0xff] }
 0x1c2   : > { %5704 = vmatmul.mubr.bf16.gmra.mrb[60].mxu0 %v7371_v22  ;;  %5844 = vmatmul.mubr.msk.bf16.gmra.mrb[8].mxu1 %vm7361_vm13, %v7369_v21  ;;  %vm7440_vm10 = vmpackc.low %vm6824_vm2, %vm1269_vm0  ;;  %v951_v40 = vand.u32 15, %v855_v7  ;;  %v6539_v7 = vld [vmem:[#allocation8 + $0x158] sm:$0xff]   ;;  %v6565_v60 = vld [vmem:[#allocation8 + $0x1e8] sm:$0xff]  }
 0x1c3   : > { %5723 = vmatprep.mubr.msk.bf16.mxu0 %vm7376_vm15, %v4985_v16  ;;  %5860 = vmatpush3.bf16.msra.mxu1 %v6529_v62  ;;  %v923_v62 = vand.u32 15, %v851_v37  ;;  %v1462_v16 = vld [vmem:[#allocation2 + $0x4f] sm:$0xff]  ;;  %v8287_v37 = vmov 0  ;;  %v965_v48 = vand.u32 15, %v857_v11  ;;  %v979_v14 = vand.u32 15, %v859_v50 }
 0x1c4   : > { %5861 = vmatprep.subr.bf16.mxu1 %v6531_v24  ;;  %v2398_v12 = vld [vmem:[#allocation2 + $0xf7] sm:$0xff]  ;;  %v8288_v37 = vsel %vm7440_vm10, 4294967295, %v8287_v37  ;;  %v7444_v42 = vpack.c.bf16 %v1462_v16, %v1461_v15  ;;  %v1469_v15 = vld [vmem:[#allocation2 + $0x87] sm:$0xff]  ;;  %v1470_v16 = vld [vmem:[#allocation2 + $0x8f] sm:$0xff] }
 0x1c5   : > { %v2401_v49 = vld [vmem:[#allocation2 + $0x10f] sm:$0xff]  ;;  %vm1267_vm14 = vcmp.ge.s32.totalorder %v923_v62, 1  ;;  %vm1273_vm0 = vcmp.ge.s32.totalorder %v965_v48, 1  ;;  %v3346_v44 = vld [vmem:[#allocation2 + $0xf7] sm:$0xff] }
 0x1c6   : > { %v2399_v52 = vld [vmem:[#allocation2 + $0xff] sm:$0xff]  ;;  %v2400_v55 = vld [vmem:[#allocation2 + $0x107] sm:$0xff]  ;;  %vm7433_vm1 = vmpackc.low %vm6824_vm2, %vm1267_vm14  ;;  %vm1271_vm14 = vcmp.ge.s32.totalorder %v951_v40, 1 }
 0x1c7   : > { %5862 = vmatpush3.bf16.msra.mxu1 %v6531_v24  ;;  %v7406_v57 = vpack.c.bf16 %v2399_v52, %v2398_v12  ;;  %v5142_v58 = vpack.c.bf16 %v2401_v49, %v2400_v55  ;;  %v6543_v24 = vld [vmem:[#allocation8 + $0x90] sm:$0xff]   ;;  %v6545_v49 = vld [vmem:[#allocation8 + $0x98] sm:$0xff]   ;;  %v6541_v11 = vld [vmem:[#allocation8 + $0x160] sm:$0xff]  }
 0x1c8   : > { %5863 = vmatprep.subr.bf16.mxu1 %v6533_v33  ;;  %v6538_v12 = vld [vmem:[#allocation8 + $0x150] sm:$0xff]   ;;  %v1466_v55 = vld [vmem:[#allocation2 + $0x6f] sm:$0xff] }
 0x1c9   : > { %5847 = vmatprep.mubr.msk.bf16.mxu1 %vm7388_vm5, %v7406_v57  ;;  %v1465_v52 = vld [vmem:[#allocation2 + $0x67] sm:$0xff]  ;;  %v6568_v62 = vld [vmem:[#allocation8 + $0x200] sm:$0xff]  }
 0x1ca   : > { %5724 = vmatmul.mubr.msk.bf16.vlgmr.msra.gmra.mrb[32].mxu0 %vm7401_vm9, %v7408_v59  ;;  %5848 = vmatmul.mubr.msk.bf16.gmra.mrb[12].mxu1 %vm7395_vm6, %v5142_v58  ;;  %v6546_v58 = vld [vmem:[#allocation8 + $0xa0] sm:$0xff]   ;;  %v6551_v48 = vld [vmem:[#allocation8 + $0xb8] sm:$0xff]  }
 0x1cb   : > { %5727 = vmatprep.mubr.msk.bf16.mxu0 %vm7411_vm12, %v7415_v5  ;;  %5864 = vmatpush3.bf16.msra.mxu1 %v6533_v33  ;;  %v8285_v33 = vmov 0  ;;  %v6550_v50 = vld [vmem:[#allocation8 + $0x178] sm:$0xff]  }
 0x1cc   : > { %5867 = vmatprep.mubr.bf16.mxu1 %v7170_v36  ;;  %5865 = vmatprep.subr.bf16.mxu1 %v6535_v0  ;;  %v8286_v33 = vsel %vm7433_vm1, 4294967295, %v8285_v33  ;;  %v7437_v36 = vpack.c.bf16 %v1460_v10, %v1459_v30  ;;  %v1468_v10 = vld [vmem:[#allocation2 + $0x7f] sm:$0xff]  ;;  %v1467_v30 = vld [vmem:[#allocation2 + $0x77] sm:$0xff] }
 0x1cd   : > { %5756 = vmatpush3.bf16.msra.mxu0 %v7225_v54  ;;  %v6537_v54 = vld [vmem:[#allocation8 + $0x148] sm:$0xff]   ;;  %v7482_v40 = vpack.c.bf16 %v1468_v10, %v1467_v30  ;;  %v858_v10 = vadd.s32 104, %v7208_v34 }
 0x1ce   : > { %5757 = vmatprep.subr.bf16.mxu0 %v6542_v1  ;;  %v6584_v30 = vld [vmem:[#allocation8 + $0xc8] sm:$0xff]  }
 0x1cf   : > { %5866 = vmatpush3.bf16.msra.mxu1 %v6535_v0  ;;  %v3339_v0 = vld [vmem:[#allocation2 + $0xbf] sm:$0xff] }
 0x1d0   : > { %5899 = vmatprep.subr.bf16.mxu1 %v6536_v9 }
 0x1d1   : > { %5758 = vmatpush3.bf16.msra.mxu0 %v6542_v1  ;;  %v7467_v1 = vpack.c.bf16 %v1466_v55, %v1465_v52  ;;  %v8297_v52 = vmov 0  ;;  %v8299_v55 = vmov 0 }
 0x1d2   : > { %5728 = vmatmul.mubr.msk.bf16.gmra.mrb[36].mxu0 %vm7433_vm1, %v7437_v36  ;;  %5759 = vmatprep.subr.bf16.mxu0 %v6543_v24  ;;  %vm7456_vm1 = vmpackc.low %vm6824_vm2, %vm1271_vm14  ;;  %vm1275_vm14 = vcmp.ge.s32.totalorder %v979_v14, 1  ;;  %v856_v14 = vadd.s32 88, %v7208_v34 }
 0x1d3   : > { %5868 = vmatmul.mubr.bf16.vlgmr.msra.gmra.mrb[16].mxu1 %v7166_v31  ;;  %5731 = vmatprep.mubr.msk.bf16.mxu0 %vm7440_vm10, %v7444_v42  ;;  %v1463_v31 = vld [vmem:[#allocation2 + $0x57] sm:$0xff]  ;;  %vm7463_vm10 = vmpackc.low %vm6824_vm2, %vm1273_vm0 }
 0x1d4   : > { %5900 = vmatpush3.bf16.msra.mxu1 %v6536_v9  ;;  %5871 = vmatprep.mubr.bf16.mxu1 %v7184_v56  ;;  %v7460_v56 = vpack.c.bf16 %v1464_v51, %v1463_v31  ;;  %v6548_v9 = vld [vmem:[#allocation8 + $0xa8] sm:$0xff]   ;;  %vm7478_vm0 = vmpackc.low %vm6824_vm2, %vm1275_vm14  ;;  %v854_v51 = vadd.s32 72, %v7208_v34 }
 0x1d5   : > { %5901 = vmatprep.subr.bf16.mxu1 %v6537_v54  ;;  %5760 = vmatpush3.bf16.msra.mxu0 %v6543_v24  ;;  %v6549_v24 = vld [vmem:[#allocation8 + $0xb0] sm:$0xff]  }
 0x1d6   : > { %5761 = vmatprep.subr.bf16.mxu0 %v6545_v49  ;;  %v944_v31 = vand.u32 15, %v854_v51 }
 0x1d8   : > { %5902 = vmatpush3.bf16.msra.mxu1 %v6537_v54  ;;  %v6544_v54 = vld [vmem:[#allocation8 + $0x168] sm:$0xff]  }
 0x1d9   : > { %5903 = vmatprep.subr.bf16.mxu1 %v6538_v12  ;;  %5762 = vmatpush3.bf16.msra.mxu0 %v6545_v49  ;;  %v6547_v49 = vld [vmem:[#allocation8 + $0x170] sm:$0xff]  }
 0x1da   : > { %5732 = vmatmul.mubr.msk.bf16.gmra.mrb[40].mxu0 %vm7456_vm1, %v7460_v56  ;;  %5763 = vmatprep.subr.bf16.mxu0 %v6546_v58 }
 0x1db   : > { %5872 = vmatmul.mubr.bf16.gmra.mrb[20].mxu1 %v7181_v53  ;;  %5735 = vmatprep.mubr.msk.bf16.mxu0 %vm7463_vm10, %v7467_v1  ;;  %v3343_v53 = vld [vmem:[#allocation2 + $0xdf] sm:$0xff] }
 0x1dc   : > { %5875 = vmatprep.mubr.bf16.mxu1 %v7198_v17  ;;  %5904 = vmatpush3.bf16.msra.mxu1 %v6538_v12  ;;  %v7484_v17 = vpack.c.bf16 %v1470_v16, %v1469_v15  ;;  %v2037_v12 = vld [vmem:[#allocation2 + $0x31] sm:$0xff]  ;;  %v2040_v16 = vld [vmem:[#allocation2 + $0x49] sm:$0xff] }
 0x1dd   : > { %5905 = vmatprep.subr.bf16.mxu1 %v6539_v7  ;;  %5764 = vmatpush3.bf16.msra.mxu0 %v6546_v58 }
 0x1de   : > { %5765 = vmatprep.subr.bf16.mxu0 %v6548_v9 }
 0x1e0   : > { %5906 = vmatpush3.bf16.msra.mxu1 %v6539_v7  ;;  %v2986_v7 = vld [vmem:[#allocation2 + $0x39] sm:$0xff] }
 0x1e1   : > { %5907 = vmatprep.subr.bf16.mxu1 %v6541_v11  ;;  %5766 = vmatpush3.bf16.msra.mxu0 %v6548_v9  ;;  %v2987_v9 = vld [vmem:[#allocation2 + $0x41] sm:$0xff] }
 0x1e2   : > { %5736 = vmatmul.mubr.msk.bf16.gmra.mrb[44].mxu0 %vm7478_vm0, %v7482_v40  ;;  %5767 = vmatprep.subr.bf16.mxu0 %v6549_v24  ;;  %v7568_v15 = vpack.c.bf16 %v2987_v9, %v2986_v7  ;;  %v2049_v7 = vld [vmem:[#allocation2 + $0x91] sm:$0xff] }
 0x1e3   : > { %5876 = vmatmul.mubr.bf16.gmra.mrb[24].mxu1 %v7195_v13  ;;  %5739 = vmatprep.mubr.msk.bf16.mxu0 %vm7256_vm3, %v7484_v17  ;;  %v7503_v13 = vld [vmem:[#allocation8 + $0x180] sm:$0xff]   ;;  %v6588_v9 = vld [vmem:[#allocation8 + $0xe8] sm:$0xff]  }
 0x1e4   : > { %5879 = vmatprep.mubr.bf16.mxu1 %v7214_v41  ;;  %5908 = vmatpush3.bf16.msra.mxu1 %v6541_v11  ;;  %v8301_v11 = vmov 0 }
 0x1e5   : > { %5909 = vmatprep.subr.bf16.mxu1 %v6544_v54  ;;  %5768 = vmatpush3.bf16.msra.mxu0 %v6549_v24  ;;  %v8303_v24 = vmov 0 }
 0x1e6   : > { %5769 = vmatprep.subr.bf16.mxu0 %v6551_v48 }
 0x1e8   : > { %5910 = vmatpush3.bf16.msra.mxu1 %v6544_v54  ;;  %v6553_v54 = vld [vmem:[#allocation8 + $0x188] sm:$0xff]  }
 0x1e9   : > { %5911 = vmatprep.subr.bf16.mxu1 %v6547_v49  ;;  %5770 = vmatpush3.bf16.msra.mxu0 %v6551_v48 }
 0x1ea   : > { %5740 = vmatmul.mubr.msk.bf16.gmra.mrb[48].mxu0 %vm7269_vm4, %v7264_v43  ;;  %5803 = vmatprep.subr.bf16.mxu0 %v7137_v2  ;;  %v2032_v43 = vld [vmem:[#allocation2 + $0x9] sm:$0xff] }
 0x1eb   : > { %5880 = vmatmul.mubr.bf16.gmra.mrb[28].mxu1 %v7211_v38  ;;  %5743 = vmatprep.mubr.msk.bf16.mxu0 %vm7299_vm7, %v7273_v45  ;;  %v846_v38 = vadd.s32 8, %v7208_v34  ;;  %v2033_v45 = vld [vmem:[#allocation2 + $0x11] sm:$0xff] }
 0x1ec   : > { %5883 = vmatprep.mubr.bf16.mxu1 %v7232_v4  ;;  %5912 = vmatpush3.bf16.msra.mxu1 %v6547_v49  ;;  %v850_v4 = vadd.s32 40, %v7208_v34  ;;  %v6585_v49 = vld [vmem:[#allocation8 + $0xd0] sm:$0xff]  }
 0x1ed   : > { %5913 = vmatprep.subr.bf16.mxu1 %v6550_v50  ;;  %v888_v41 = vand.u32 15, %v846_v38  ;;  %v2990_v38 = vld [vmem:[#allocation2 + $0x59] sm:$0xff] }
 0x1ef   : > { %vm1358_vm14 = vcmp.le.s32.totalorder %v888_v41, 14  ;;  %v2991_v41 = vld [vmem:[#allocation2 + $0x61] sm:$0xff] }
 0x1f0   : > { %5914 = vmatpush3.bf16.msra.mxu1 %v6550_v50  ;;  %v860_v50 = vadd.s32 120, %v7208_v34 }
 0x1f1   : > { %5947 = vmatprep.subr.bf16.mxu1 %v7503_v13 }
 0x1f2   : > { %5744 = vmatmul.mubr.msk.bf16.gmra.mrb[52].mxu0 %vm7313_vm8, %v7308_v25 }
 0x1f3   : > { %5884 = vmatmul.mubr.bf16.gmra.mrb[0].mxu1 %v7229_v63  ;;  %5747 = vmatprep.mubr.msk.bf16.mxu0 %vm7349_vm11, %v7317_v28  ;;  %v848_v63 = vadd.s32 24, %v7208_v34  ;;  %vm7526_vm11 = vmpackc.low %vm1358_vm14, %vm6824_vm2  ;;  %v916_v28 = vand.u32 15, %v850_v4  ;;  %v862_v4 = vadd.s32 136, %v7208_v34 }
 0x1f4   : > { %5887 = vmatprep.mubr.bf16.mxu1 %v7275_v46  ;;  %v8295_v46 = vmov 0 }
 0x1f5   : > { %v8296_v46 = vsel %vm7526_vm11, 4294967295, %v8295_v46  ;;  %v902_v25 = vand.u32 15, %v848_v63  ;;  %vm1362_vm14 = vcmp.le.s32.totalorder %v916_v28, 14  ;;  %v6554_v63 = vld [vmem:[#allocation8 + $0x190] sm:$0xff]   ;;  %v8307_v28 = vmov 0 }
 0x1f6   : > { %v1000_v51 = vand.u32 15, %v862_v4  ;;  %v870_v4 = vadd.s32 200, %v7208_v34 }
 0x1fa   : > { %5748 = vmatmul.mubr.msk.bf16.gmra.mrb[56].mxu0 %vm7361_vm13, %v7367_v19  ;;  %v2982_v19 = vld [vmem:[#allocation2 + $0x19] sm:$0xff] }
 0x1fb   : > { %5888 = vmatmul.mubr.bf16.gmra.mrb[4].mxu1 %v7261_v39  ;;  %5751 = vmatprep.mubr.msk.bf16.mxu0 %vm7388_vm5, %v7369_v21  ;;  %v5041_v39 = vpack.c.bf16 %v2033_v45, %v2032_v43  ;;  %vm1360_vm5 = vcmp.le.s32.totalorder %v902_v25, 14  ;;  %v2983_v21 = vld [vmem:[#allocation2 + $0x21] sm:$0xff]  ;;  %v2045_v43 = vld [vmem:[#allocation2 + $0x71] sm:$0xff]  ;;  %v7597_v25 = vpack.c.bf16 %v2991_v41, %v2990_v38  ;;  %v868_v38 = vadd.s32 184, %v7208_v34  ;;  %v2998_v41 = vld [vmem:[#allocation2 + $0x99] sm:$0xff] }
 0x1fc   : > { %5891 = vmatprep.mubr.bf16.mxu1 %v7319_v29  ;;  %v852_v29 = vadd.s32 56, %v7208_v34  ;;  %vm7540_vm13 = vmpackc.low %vm1360_vm5, %vm6824_vm2  ;;  %v6586_v45 = vld [vmem:[#allocation8 + $0xd8] sm:$0xff]  }
 0x1fd   : > { %v8298_v52 = vsel %vm7540_vm13, 4294967295, %v8297_v52 }
 0x202   : > { %5752 = vmatmul.mubr.msk.bf16.gmra.mrb[60].mxu0 %vm7395_vm6, %v7406_v57  ;;  %v2036_v57 = vld [vmem:[#allocation2 + $0x29] sm:$0xff]  ;;  %vm7545_vm6 = vmpackc.low %vm1362_vm14, %vm6824_vm2  ;;  %vm1366_vm14 = vcmp.le.s32.totalorder %v944_v31, 14 }
 0x203   : > { %5892 = vmatmul.mubr.bf16.gmra.mrb[8].mxu1 %v7304_v20  ;;  %5771 = vmatprep.mubr.msk.bf16.mxu0 %vm7526_vm11, %v5041_v39  ;;  %v5161_v20 = vpack.c.bf16 %v2983_v21, %v2982_v19  ;;  %v8300_v55 = vsel %vm7545_vm6, 4294967295, %v8299_v55  ;;  %v7549_v58 = vpack.c.bf16 %v2037_v12, %v2036_v57  ;;  %v2044_v39 = vld [vmem:[#allocation2 + $0x69] sm:$0xff]  ;;  %v2994_v57 = vld [vmem:[#allocation2 + $0x79] sm:$0xff] }
 0x204   : > { %5895 = vmatprep.mubr.bf16.mxu1 %v7371_v22  ;;  %v930_v22 = vand.u32 15, %v852_v29  ;;  %v986_v29 = vand.u32 15, %v860_v50  ;;  %v7604_v19 = vpack.c.bf16 %v2045_v43, %v2044_v39  ;;  %v6555_v21 = vld [vmem:[#allocation8 + $0x198] sm:$0xff]   ;;  %v6587_v12 = vld [vmem:[#allocation8 + $0xe0] sm:$0xff]   ;;  %v6589_v50 = vld [vmem:[#allocation8 + $0xf0] sm:$0xff]  }
 0x205   : > { %v6556_v31 = vld [vmem:[#allocation8 + $0x1a0] sm:$0xff]   ;;  %v6558_v43 = vld [vmem:[#allocation8 + $0x1b0] sm:$0xff]   ;;  %v6590_v39 = vld [vmem:[#allocation8 + $0xf8] sm:$0xff]  }
 0x206   : > { %vm1364_vm5 = vcmp.le.s32.totalorder %v930_v22, 14  ;;  %v2995_v22 = vld [vmem:[#allocation2 + $0x81] sm:$0xff] }
 0x207   : > { %vm7564_vm8 = vmpackc.low %vm1364_vm5, %vm6824_vm2 }
 0x208   : > { %v8302_v11 = vsel %vm7564_vm8, 4294967295, %v8301_v11 }
 0x20a   : > { %5772 = vmatmul.mubr.msk.bf16.vlgmr.msra.gmra.mrb[32].mxu0 %vm7540_vm13, %v5161_v20 }
 0x20b   : > { %5896 = vmatmul.mubr.bf16.gmra.mrb[12].mxu1 %v7365_v18  ;;  %5775 = vmatprep.mubr.msk.bf16.mxu0 %vm7545_vm6, %v7549_v58  ;;  %v2041_v18 = vld [vmem:[#allocation2 + $0x51] sm:$0xff] }
 0x20c   : > { %5915 = vmatprep.mubr.msk.bf16.mxu1 %vm7526_vm11, %v5161_v20  ;;  %5804 = vmatpush3.bf16.msra.mxu0 %v7137_v2  ;;  %vm7571_vm11 = vmpackc.low %vm1366_vm14, %vm6824_vm2  ;;  %v958_v2 = vand.u32 15, %v856_v14  ;;  %v7575_v48 = vpack.c.bf16 %v2041_v18, %v2040_v16  ;;  %v864_v20 = vadd.s32 152, %v7208_v34  ;;  %v866_v14 = vadd.s32 168, %v7208_v34  ;;  %v2048_v16 = vld [vmem:[#allocation2 + $0x89] sm:$0xff] }
 0x20d   : > { %5805 = vmatprep.subr.bf16.mxu0 %v7141_v3  ;;  %v8304_v24 = vsel %vm7571_vm11, 4294967295, %v8303_v24  ;;  %v972_v3 = vand.u32 15, %v858_v10  ;;  %v8309_v10 = vmov 0  ;;  %v7625_v18 = vpack.c.bf16 %v2995_v22, %v2994_v57 }
 0x20e   : > { %vm1368_vm5 = vcmp.le.s32.totalorder %v958_v2, 14  ;;  %v8311_v2 = vmov 0  ;;  %v1056_v22 = vand.u32 15, %v870_v4 }
 0x20f   : > { %vm1370_vm14 = vcmp.le.s32.totalorder %v972_v3, 14  ;;  %v1028_v3 = vand.u32 15, %v866_v14  ;;  %v872_v14 = vadd.s32 216, %v7208_v34 }
 0x210   : > { %5806 = vmatpush3.bf16.msra.mxu0 %v6584_v30  ;;  %v1014_v30 = vand.u32 15, %v864_v20  ;;  %v1042_v20 = vand.u32 15, %v868_v38  ;;  %v2056_v38 = vld [vmem:[#allocation2 + $0xc9] sm:$0xff] }
 0x211   : > { %5807 = vmatprep.subr.bf16.mxu0 %v6585_v49 }
 0x212   : > { %5776 = vmatmul.mubr.msk.bf16.gmra.mrb[36].mxu0 %vm7564_vm8, %v7568_v15 }
 0x213   : > { %5916 = vmatmul.mubr.msk.bf16.vlgmr.msra.gmra.mrb[16].mxu1 %vm7540_vm13, %v7549_v58  ;;  %5779 = vmatprep.mubr.msk.bf16.mxu0 %vm7571_vm11, %v7575_v48  ;;  %vm7593_vm13 = vmpackc.low %vm1368_vm5, %vm6824_vm2  ;;  %vm1372_vm5 = vcmp.le.s32.totalorder %v986_v29, 14  ;;  %v8313_v29 = vmov 0 }
 0x214   : > { %5948 = vmatpush3.bf16.msra.mxu1 %v7503_v13  ;;  %5919 = vmatprep.mubr.msk.bf16.mxu1 %vm7545_vm6, %v7568_v15  ;;  %v8305_v13 = vmov 0  ;;  %vm7600_vm6 = vmpackc.low %vm1370_vm14, %vm6824_vm2  ;;  %vm1374_vm14 = vcmp.le.s32.totalorder %v1000_v51, 14  ;;  %v2052_v51 = vld [vmem:[#allocation2 + $0xa9] sm:$0xff] }
 0x215   : > { %5949 = vmatprep.subr.bf16.mxu1 %v6553_v54  ;;  %5808 = vmatpush3.bf16.msra.mxu0 %v6585_v49  ;;  %v8306_v13 = vsel %vm7593_vm13, 4294967295, %v8305_v13  ;;  %v8308_v28 = vsel %vm7600_vm6, 4294967295, %v8307_v28  ;;  %v6557_v49 = vld [vmem:[#allocation8 + $0x1a8] sm:$0xff]  }
 0x216   : > { %5809 = vmatprep.subr.bf16.mxu0 %v6586_v45 }
 0x218   : > { %5950 = vmatpush3.bf16.msra.mxu1 %v6553_v54  ;;  %v7632_v54 = vpack.c.bf16 %v2049_v7, %v2048_v16  ;;  %v3002_v7 = vld [vmem:[#allocation2 + $0xb9] sm:$0xff]  ;;  %v874_v16 = vadd.s32 232, %v7208_v34 }
 0x219   : > { %5951 = vmatprep.subr.bf16.mxu1 %v6554_v63  ;;  %5810 = vmatpush3.bf16.msra.mxu0 %v6586_v45  ;;  %v2053_v45 = vld [vmem:[#allocation2 + $0xb1] sm:$0xff] }
 0x21a   : > { %5780 = vmatmul.mubr.msk.bf16.gmra.mrb[40].mxu0 %vm7593_vm13, %v7597_v25  ;;  %5811 = vmatprep.subr.bf16.mxu0 %v6587_v12  ;;  %v7660_v57 = vpack.c.bf16 %v2053_v45, %v2052_v51  ;;  %v876_v45 = vadd.s32 248, %v7208_v34  ;;  %v3007_v51 = vld [vmem:[#allocation2 + $0xe1] sm:$0xff]  ;;  %v3010_v34 = vld [vmem:[#allocation2 + $0xf9] sm:$0xff] }
 0x21b   : > { %5920 = vmatmul.mubr.msk.bf16.gmra.mrb[20].mxu1 %vm7564_vm8, %v7575_v48  ;;  %5783 = vmatprep.mubr.msk.bf16.mxu0 %vm7600_vm6, %v7604_v19  ;;  %vm7621_vm8 = vmpackc.low %vm1372_vm5, %vm6824_vm2  ;;  %vm1376_vm5 = vcmp.le.s32.totalorder %v1014_v30, 14  ;;  %v6560_v30 = vld [vmem:[#allocation8 + $0x1c0] sm:$0xff]  }
 0x21c   : > { %5923 = vmatprep.mubr.msk.bf16.mxu1 %vm7571_vm11, %v7597_v25  ;;  %5952 = vmatpush3.bf16.msra.mxu1 %v6554_v63  ;;  %v8310_v10 = vsel %vm7621_vm8, 4294967295, %v8309_v10  ;;  %vm7628_vm11 = vmpackc.low %vm1374_vm14, %vm6824_vm2  ;;  %v2999_v63 = vld [vmem:[#allocation2 + $0xa1] sm:$0xff]  ;;  %vm1378_vm14 = vcmp.le.s32.totalorder %v1028_v3, 14  ;;  %v2057_v3 = vld [vmem:[#allocation2 + $0xd1] sm:$0xff] }
 0x21d   : > { %5953 = vmatprep.subr.bf16.mxu1 %v6555_v21  ;;  %5812 = vmatpush3.bf16.msra.mxu0 %v6587_v12  ;;  %v8312_v2 = vsel %vm7628_vm11, 4294967295, %v8311_v2  ;;  %v7688_v4 = vpack.c.bf16 %v2057_v3, %v2056_v38  ;;  %v3011_v3 = vld [vmem:[#allocation2 + $0x101] sm:$0xff] }
 0x21e   : > { %5813 = vmatprep.subr.bf16.mxu0 %v6588_v9 }
 0x220   : > { %5954 = vmatpush3.bf16.msra.mxu1 %v6555_v21  ;;  %v7653_v21 = vpack.c.bf16 %v2999_v63, %v2998_v41  ;;  %v1070_v63 = vand.u32 15, %v872_v14  ;;  %v2060_v14 = vld [vmem:[#allocation2 + $0xe9] sm:$0xff] }
 0x221   : > { %5955 = vmatprep.subr.bf16.mxu1 %v6556_v31  ;;  %5814 = vmatpush3.bf16.msra.mxu0 %v6588_v9  ;;  %v3003_v9 = vld [vmem:[#allocation2 + $0xc1] sm:$0xff] }
 0x222   : > { %5784 = vmatmul.mubr.msk.bf16.gmra.mrb[44].mxu0 %vm7621_vm8, %v7625_v18  ;;  %5815 = vmatprep.subr.bf16.mxu0 %v6589_v50 }
 0x223   : > { %5924 = vmatmul.mubr.msk.bf16.gmra.mrb[24].mxu1 %vm7593_vm13, %v7604_v19  ;;  %5787 = vmatprep.mubr.msk.bf16.mxu0 %vm7628_vm11, %v7632_v54  ;;  %vm7649_vm13 = vmpackc.low %vm1376_vm5, %vm6824_vm2  ;;  %vm1380_vm5 = vcmp.le.s32.totalorder %v1042_v20, 14  ;;  %v2061_v20 = vld [vmem:[#allocation2 + $0xf1] sm:$0xff] }
 0x224   : > { %5927 = vmatprep.mubr.msk.bf16.mxu1 %vm7600_vm6, %v7625_v18  ;;  %5956 = vmatpush3.bf16.msra.mxu1 %v6556_v31  ;;  %v8314_v29 = vsel %vm7649_vm13, 4294967295, %v8313_v29  ;;  %vm7656_vm6 = vmpackc.low %vm1378_vm14, %vm6824_vm2  ;;  %v6559_v31 = vld [vmem:[#allocation8 + $0x1b8] sm:$0xff]   ;;  %vm1382_vm14 = vcmp.le.s32.totalorder %v1056_v22, 14 }
 0x225   : > { %5957 = vmatprep.subr.bf16.mxu1 %v6557_v49  ;;  %5816 = vmatpush3.bf16.msra.mxu0 %v6589_v50  ;;  %v7681_v50 = vpack.c.bf16 %v3003_v9, %v3002_v7  ;;  %v1098_v9 = vand.u32 15, %v876_v45  ;;  %v3013_v45 = vld [vmem:[#allocation2 + $0x111] sm:$0xff] }
 0x226   : > { %5817 = vmatprep.subr.bf16.mxu0 %v6590_v39 }
 0x228   : > { %5958 = vmatpush3.bf16.msra.mxu1 %v6557_v49 }
 0x229   : > { %5959 = vmatprep.subr.bf16.mxu1 %v6558_v43  ;;  %5818 = vmatpush3.bf16.msra.mxu0 %v6590_v39  ;;  %v3006_v39 = vld [vmem:[#allocation2 + $0xd9] sm:$0xff] }
 0x22a   : > { %5788 = vmatmul.mubr.msk.bf16.gmra.mrb[48].mxu0 %vm7649_vm13, %v7653_v21 }
 0x22b   : > { %5928 = vmatmul.mubr.msk.bf16.gmra.mrb[28].mxu1 %vm7621_vm8, %v7632_v54  ;;  %5791 = vmatprep.mubr.msk.bf16.mxu0 %vm7656_vm6, %v7660_v57  ;;  %vm7677_vm8 = vmpackc.low %vm1380_vm5, %vm6824_vm2  ;;  %vm1384_vm5 = vcmp.le.s32.totalorder %v1070_v63, 14  ;;  %v7734_v63 = vpack.c.bf16 %v3011_v3, %v3010_v34  ;;  %v3345_v34 = vld [vmem:[#allocation2 + $0xef] sm:$0xff]  ;;  %v3342_v3 = vld [vmem:[#allocation2 + $0xd7] sm:$0xff] }
 0x22c   : > { %5931 = vmatprep.mubr.msk.bf16.mxu1 %vm7628_vm11, %v7653_v21  ;;  %5960 = vmatpush3.bf16.msra.mxu1 %v6558_v43  ;;  %vm7684_vm11 = vmpackc.low %vm1382_vm14, %vm6824_vm2  ;;  %v1084_v43 = vand.u32 15, %v874_v16  ;;  %v7715_v16 = vpack.c.bf16 %v2061_v20, %v2060_v14  ;;  %v3338_v20 = vld [vmem:[#allocation2 + $0xb7] sm:$0xff] }
 0x22d   : > { %5961 = vmatprep.subr.bf16.mxu1 %v6559_v31  ;;  %vm7704_vm7 = vmpackc.low %vm1384_vm5, %vm6824_vm2  ;;  %vm1388_vm5 = vcmp.le.s32.totalorder %v1098_v9, 14  ;;  %v5244_v14 = vpack.c.bf16 %v3339_v0, %v3338_v20  ;;  %v3664_v20 = vld [vmem:[#allocation2 + $0x58] sm:$0xff] }
 0x22e   : > { %vm1386_vm14 = vcmp.le.s32.totalorder %v1084_v43, 14  ;;  %v3012_v43 = vld [vmem:[#allocation2 + $0x109] sm:$0xff] }
 0x230   : > { %5962 = vmatpush3.bf16.msra.mxu1 %v6559_v31  ;;  %v7708_v31 = vpack.c.bf16 %v3007_v51, %v3006_v39  ;;  %v7748_v39 = vpack.c.bf16 %v3013_v45, %v3012_v43  ;;  %v5250_v43 = vpack.c.bf16 %v3343_v53, %v3342_v3  ;;  %v5253_v45 = vpack.c.bf16 %v3345_v34, %v3344_v27  ;;  %v6572_v27 = vld [vmem:[#allocation8 + $0x220] sm:$0xff]   ;;  %v3669_v34 = vld [vmem:[#allocation2 + $0x80] sm:$0xff] }
 0x231   : > { %5995 = vmatprep.subr.bf16.mxu1 %v6560_v30  ;;  %v3671_v3 = vld [vmem:[#allocation2 + $0x90] sm:$0xff] }
 0x232   : > { %5792 = vmatmul.mubr.msk.bf16.gmra.mrb[52].mxu0 %vm7677_vm8, %v7681_v50 }
 0x233   : > { %5932 = vmatmul.mubr.msk.bf16.gmra.mrb[0].mxu1 %vm7649_vm13, %v7660_v57  ;;  %5795 = vmatprep.mubr.msk.bf16.mxu0 %vm7684_vm11, %v7688_v4  ;;  %vm7711_vm13 = vmpackc.low %vm1386_vm14, %vm6824_vm2 }
 0x234   : > { %5935 = vmatprep.mubr.msk.bf16.mxu1 %vm7656_vm6, %v7681_v50  ;;  %vm7730_vm14 = vmpackc.low %vm1388_vm5, %vm6824_vm2  ;;  %vm8327_vm2 = vnez %v8286_v33  ;;  %vm8328_vm5 = vnez %v8288_v37  ;;  %v6566_v33 = vld [vmem:[#allocation8 + $0x1f0] sm:$0xff]  }
 0x235   : > { %v3336_v37 = vld [vmem:[#allocation2 + $0xa7] sm:$0xff] }
 0x23a   : > { %5796 = vmatmul.mubr.msk.bf16.gmra.mrb[56].mxu0 %vm7704_vm7, %v7708_v31 }
 0x23b   : > { %5936 = vmatmul.mubr.msk.bf16.gmra.mrb[4].mxu1 %vm7677_vm8, %v7688_v4  ;;  %5799 = vmatprep.mubr.msk.bf16.mxu0 %vm7711_vm13, %v7715_v16 }
 0x23c   : > { %5939 = vmatprep.mubr.msk.bf16.mxu1 %vm7684_vm11, %v7708_v31 }
 0x242   : > { %5800 = vmatmul.mubr.msk.bf16.gmra.mrb[60].mxu0 %vm7730_vm14, %v7734_v63 }
 0x243   : > { %5940 = vmatmul.mubr.msk.bf16.gmra.mrb[8].mxu1 %vm7704_vm7, %v7715_v16  ;;  %5819 = vmatprep.mubr.msk.bf16.mxu0 %vm7376_vm15, %v7408_v59  ;;  %v6561_v59 = vld [vmem:[#allocation8 + $0x1c8] sm:$0xff]  }
 0x244   : > { %5943 = vmatprep.mubr.msk.bf16.mxu1 %vm7711_vm13, %v7734_v63 }
 0x24a   : > { %5820 = vmatmul.mubr.msk.bf16.vlgmr.msra.gmra.mrb[32].mxu0 %vm7401_vm9, %v7415_v5 }
 0x24b   : > { %5944 = vmatmul.mubr.msk.bf16.gmra.mrb[12].mxu1 %vm7730_vm14, %v7748_v39  ;;  %5823 = vmatprep.mubr.msk.bf16.mxu0 %vm7411_vm12, %v7437_v36 }
 0x24c   : > { %5963 = vmatprep.mubr.msk.bf16.mxu1 %vm7376_vm15, %v7415_v5  ;;  %v6563_v5 = vld [vmem:[#allocation8 + $0x1d8] sm:$0xff]   ;;  %vm8329_vm15 = vnez %v8262_v8  ;;  %v3350_v8 = vld [vmem:[#allocation2 + $0x117] sm:$0xff] }
 0x252   : > { %5824 = vmatmul.mubr.msk.bf16.gmra.mrb[36].mxu0 %vm8327_vm2, %v7444_v42 }
 0x253   : > { %5964 = vmatmul.mubr.msk.bf16.vlgmr.msra.gmra.mrb[16].mxu1 %vm7401_vm9, %v7437_v36  ;;  %5827 = vmatprep.mubr.msk.bf16.mxu0 %vm8328_vm5, %v7460_v56  ;;  %v3335_v36 = vld [vmem:[#allocation2 + $0x9f] sm:$0xff]  ;;  %vm8331_vm9 = vnez %v8270_v61 }
 0x254   : > { %5996 = vmatpush3.bf16.msra.mxu1 %v6560_v30  ;;  %5967 = vmatprep.mubr.msk.bf16.mxu1 %vm7411_vm12, %v7444_v42  ;;  %v3337_v42 = vld [vmem:[#allocation2 + $0xaf] sm:$0xff]  ;;  %vm8333_vm12 = vnez %v8278_v32  ;;  %v3661_v61 = vld [vmem:[#allocation2 + $0x40] sm:$0xff] }
 0x255   : > { %5997 = vmatprep.subr.bf16.mxu1 %v6561_v59  ;;  %v6567_v30 = vld [vmem:[#allocation8 + $0x1f8] sm:$0xff]   ;;  %v5241_v51 = vpack.c.bf16 %v3337_v42, %v3336_v37  ;;  %v6570_v32 = vld [vmem:[#allocation8 + $0x210] sm:$0xff]  }
 0x256   : > { %v3658_v37 = vld [vmem:[#allocation2 + $0x28] sm:$0xff] }
 0x258   : > { %5998 = vmatpush3.bf16.msra.mxu1 %v6561_v59  ;;  %v3347_v59 = vld [vmem:[#allocation2 + $0xff] sm:$0xff] }
 0x259   : > { %5999 = vmatprep.subr.bf16.mxu1 %v6562_v23 }
 0x25a   : > { %5828 = vmatmul.mubr.msk.bf16.gmra.mrb[40].mxu0 %vm7456_vm1, %v7467_v1 }
 0x25b   : > { %5968 = vmatmul.mubr.msk.bf16.gmra.mrb[20].mxu1 %vm8327_vm2, %v7460_v56  ;;  %5831 = vmatprep.mubr.msk.bf16.mxu0 %vm7463_vm10, %v7482_v40  ;;  %v3334_v56 = vld [vmem:[#allocation2 + $0x97] sm:$0xff]  ;;  %vm8337_vm2 = vnez %v8300_v55 }
 0x25c   : > { %5971 = vmatprep.mubr.msk.bf16.mxu1 %vm8328_vm5, %v7467_v1  ;;  %6000 = vmatpush3.bf16.msra.mxu1 %v6562_v23  ;;  %v5238_v1 = vpack.c.bf16 %v3335_v36, %v3334_v56  ;;  %v3348_v23 = vld [vmem:[#allocation2 + $0x107] sm:$0xff]  ;;  %v3659_v36 = vld [vmem:[#allocation2 + $0x30] sm:$0xff]  ;;  %vm8338_vm5 = vnez %v8302_v11  ;;  %v3994_v11 = vld [vmem:[#allocation2 + $0x119] sm:$0xff] }
 0x25d   : > { %6001 = vmatprep.subr.bf16.mxu1 %v6563_v5  ;;  %v3690_v42 = vpack.c.bf16 %v3659_v36, %v3658_v37  ;;  %v3663_v56 = vld [vmem:[#allocation2 + $0x50] sm:$0xff]  ;;  %v6575_v36 = vld [vmem:[#allocation8 + $0x238] sm:$0xff]   ;;  %v3677_v37 = vld [vmem:[#allocation2 + $0xc0] sm:$0xff] }
 0x260   : > { %6002 = vmatpush3.bf16.msra.mxu1 %v6563_v5  ;;  %v3349_v5 = vld [vmem:[#allocation2 + $0x10f] sm:$0xff] }
 0x261   : > { %6003 = vmatprep.subr.bf16.mxu1 %v6564_v47 }
 0x262   : > { %5832 = vmatmul.mubr.msk.bf16.gmra.mrb[44].mxu0 %vm7478_vm0, %v7484_v17 }
 0x263   : > { %5972 = vmatmul.mubr.msk.bf16.gmra.mrb[24].mxu1 %vm7456_vm1, %v7482_v40  ;;  %v3340_v40 = vld [vmem:[#allocation2 + $0xc7] sm:$0xff]  ;;  %vm8334_vm1 = vnez %v8280_v35 }
 0x264   : > { %5975 = vmatprep.mubr.msk.bf16.mxu1 %vm7463_vm10, %v7484_v17  ;;  %6004 = vmatpush3.bf16.msra.mxu1 %v6564_v47  ;;  %v3341_v17 = vld [vmem:[#allocation2 + $0xcf] sm:$0xff]  ;;  %v5256_v47 = vpack.c.bf16 %v3347_v59, %v3346_v44  ;;  %v6573_v59 = vld [vmem:[#allocation8 + $0x228] sm:$0xff]   ;;  %v3673_v44 = vld [vmem:[#allocation2 + $0xa0] sm:$0xff]  ;;  %vm8335_vm10 = vnez %v8296_v46 }
 0x265   : > { %6005 = vmatprep.subr.bf16.mxu1 %v6565_v60  ;;  %v5247_v9 = vpack.c.bf16 %v3341_v17, %v3340_v40  ;;  %v3665_v40 = vld [vmem:[#allocation2 + $0x60] sm:$0xff]  ;;  %v3667_v17 = vld [vmem:[#allocation2 + $0x70] sm:$0xff]  ;;  %v3666_v35 = vld [vmem:[#allocation2 + $0x68] sm:$0xff] }
 0x266   : > { %v3694_v53 = vpack.c.bf16 %v3667_v17, %v3666_v35  ;;  %v6578_v35 = vld [vmem:[#allocation9 + $0x10] sm:$0xff]  }
 0x268   : > { %6006 = vmatpush3.bf16.msra.mxu1 %v6565_v60  ;;  %v5259_v60 = vpack.c.bf16 %v3349_v5, %v3348_v23  ;;  %v6574_v5 = vld [vmem:[#allocation8 + $0x230] sm:$0xff]  }
 0x269   : > { %6007 = vmatprep.subr.bf16.mxu1 %v6566_v33 }
 0x26b   : > { %5976 = vmatmul.mubr.msk.bf16.gmra.mrb[28].mxu1 %vm7478_vm0, %v5238_v1  ;;  %v3660_v1 = vld [vmem:[#allocation2 + $0x38] sm:$0xff]  ;;  %vm8336_vm0 = vnez %v8298_v52 }
 0x26c   : > { %5979 = vmatprep.mubr.msk.bf16.mxu1 %vm7256_vm3, %v5241_v51  ;;  %6008 = vmatpush3.bf16.msra.mxu1 %v6566_v33  ;;  %vm8330_vm3 = vnez %v8264_v26  ;;  %v3351_v33 = vld [vmem:[#allocation2 + $0x11f] sm:$0xff]  ;;  %v3662_v51 = vld [vmem:[#allocation2 + $0x48] sm:$0xff] }
 0x26d   : > { %6009 = vmatprep.subr.bf16.mxu1 %v6567_v30  ;;  %v5262_v26 = vpack.c.bf16 %v3351_v33, %v3350_v8  ;;  %v3692_v0 = vpack.c.bf16 %v3663_v56, %v3662_v51  ;;  %v3674_v33 = vld [vmem:[#allocation2 + $0xa8] sm:$0xff]  ;;  %v3681_v51 = vld [vmem:[#allocation2 + $0xe0] sm:$0xff] }
 0x270   : > { %6010 = vmatpush3.bf16.msra.mxu1 %v6567_v30  ;;  %v3691_v30 = vpack.c.bf16 %v3661_v61, %v3660_v1  ;;  %v3676_v61 = vld [vmem:[#allocation2 + $0xb8] sm:$0xff]  ;;  %v3678_v1 = vld [vmem:[#allocation2 + $0xc8] sm:$0xff] }
 0x271   : > { %6043 = vmatprep.subr.bf16.mxu1 %v6568_v62  ;;  %v3699_v56 = vpack.c.bf16 %v3677_v37, %v3676_v61  ;;  %v7909_v37 = vld [vmem:[%s8201_s5] ss:$0 sm:$0xff] }
 0x273   : > { %5980 = vmatmul.mubr.msk.bf16.gmra.mrb[0].mxu1 %vm7269_vm4, %v5244_v14  ;;  %vm8332_vm4 = vnez %v8274_v6  ;;  %v6569_v6 = vld [vmem:[#allocation8 + $0x208] sm:$0xff]   ;;  %v3693_v14 = vpack.c.bf16 %v3665_v40, %v3664_v20  ;;  %v3682_v20 = vld [vmem:[#allocation2 + $0xe8] sm:$0xff] }
 0x274   : > { %5983 = vmatprep.mubr.msk.bf16.mxu1 %vm8329_vm15, %v5247_v9  ;;  %v6571_v9 = vld [vmem:[#allocation8 + $0x218] sm:$0xff]   ;;  %v6577_v40 = vld [vmem:[#allocation9 + $0x8] sm:$0xff]   ;;  %vm8339_vm15 = vnez %v8304_v24 }
 0x27b   : > { %5984 = vmatmul.mubr.msk.bf16.gmra.mrb[4].mxu1 %vm8330_vm3, %v5250_v43  ;;  %vm8340_vm3 = vnez %v8306_v13 }
 0x27c   : > { %5987 = vmatprep.mubr.msk.bf16.mxu1 %vm8331_vm9, %v5253_v45  ;;  %v3670_v45 = vld [vmem:[#allocation2 + $0x88] sm:$0xff]  ;;  %vm8341_vm9 = vnez %v8308_v28 }
 0x27d   : > { %v3696_v23 = vpack.c.bf16 %v3671_v3, %v3670_v45  ;;  %v6580_v45 = vld [vmem:[#allocation9 + $0x20] sm:$0xff]  }
 0x283   : > { %5988 = vmatmul.mubr.msk.bf16.gmra.mrb[8].mxu1 %vm8332_vm4, %v5256_v47  ;;  %v3675_v47 = vld [vmem:[#allocation2 + $0xb0] sm:$0xff]  ;;  %vm8342_vm4 = vnez %v8310_v10 }
 0x284   : > { %5991 = vmatprep.mubr.msk.bf16.mxu1 %vm8333_vm12, %v5259_v60  ;;  %v3672_v60 = vld [vmem:[#allocation2 + $0x98] sm:$0xff]  ;;  %vm8343_vm12 = vnez %v8312_v2 }
 0x285   : > { %v3697_v8 = vpack.c.bf16 %v3673_v44, %v3672_v60  ;;  %v6582_v44 = vld [vmem:[#allocation9 + $0x30] sm:$0xff]  }
 0x28b   : > { %5992 = vmatmul.mubr.msk.bf16.gmra.mrb[12].mxu1 %vm8334_vm1, %v5262_v26  ;;  %v3698_v26 = vpack.c.bf16 %v3675_v47, %v3674_v33  ;;  %vm8344_vm1 = vnez %v8314_v29  ;;  %v6583_v47 = vld [vmem:[#allocation9 + $0x38] sm:$0xff]  }
 0x28c   : > { %6011 = vmatprep.mubr.bf16.mxu1 %v3690_v42  ;;  %v3679_v42 = vld [vmem:[#allocation2 + $0xd0] sm:$0xff] }
 0x293   : > { %6012 = vmatmul.mubr.bf16.vlgmr.msra.gmra.mrb[16].mxu1 %v3691_v30  ;;  %v3700_v30 = vpack.c.bf16 %v3679_v42, %v3678_v1 }
 0x294   : > { %6044 = vmatpush3.bf16.msra.mxu1 %v6568_v62  ;;  %6015 = vmatprep.mubr.bf16.mxu1 %v3692_v0  ;;  %v3668_v62 = vld [vmem:[#allocation2 + $0x78] sm:$0xff] }
 0x295   : > { %6045 = vmatprep.subr.bf16.mxu1 %v6569_v6  ;;  %v3695_v43 = vpack.c.bf16 %v3669_v34, %v3668_v62  ;;  %v3680_v0 = vld [vmem:[#allocation2 + $0xd8] sm:$0xff]  ;;  %v6579_v34 = vld [vmem:[#allocation9 + $0x18] sm:$0xff]  }
 0x296   : > { %v3701_v17 = vpack.c.bf16 %v3681_v51, %v3680_v0  ;;  %v3686_v62 = vld [vmem:[#allocation2 + $0x108] sm:$0xff] }
 0x298   : > { %6046 = vmatpush3.bf16.msra.mxu1 %v6569_v6  ;;  %v3683_v6 = vld [vmem:[#allocation2 + $0xf0] sm:$0xff] }
 0x299   : > { %6047 = vmatprep.subr.bf16.mxu1 %v6570_v32 }
 0x29b   : > { %6016 = vmatmul.mubr.bf16.gmra.mrb[20].mxu1 %v3693_v14  ;;  %v3702_v14 = vpack.c.bf16 %v3683_v6, %v3682_v20 }
 0x29c   : > { %6019 = vmatprep.mubr.bf16.mxu1 %v3694_v53  ;;  %6048 = vmatpush3.bf16.msra.mxu1 %v6570_v32  ;;  %v6576_v32 = vld [vmem:[#allocation9] sm:$0xff]  }
 0x29d   : > { %6049 = vmatprep.subr.bf16.mxu1 %v6571_v9  ;;  %6091 = vmatprep.subr.bf16.mxu0 %v6576_v32  ;;  %v3687_v53 = vld [vmem:[#allocation2 + $0x110] sm:$0xff] }
 0x29e   : > { %6092 = vmatpush3.bf16.msra.mxu0 %v6576_v32 }
 0x29f   : > { %6093 = vmatprep.subr.bf16.mxu0 %v6577_v40 }
 0x2a0   : > { %6050 = vmatpush3.bf16.msra.mxu1 %v6571_v9  ;;  %v3685_v9 = vld [vmem:[#allocation2 + $0x100] sm:$0xff] }
 0x2a1   : > { %6051 = vmatprep.subr.bf16.mxu1 %v6572_v27 }
 0x2a2   : > { %6094 = vmatpush3.bf16.msra.mxu0 %v6577_v40 }
 0x2a3   : > { %6020 = vmatmul.mubr.bf16.gmra.mrb[24].mxu1 %v3695_v43  ;;  %6095 = vmatprep.subr.bf16.mxu0 %v6578_v35  ;;  %v3704_v43 = vpack.c.bf16 %v3687_v53, %v3686_v62 }
 0x2a4   : > { %6023 = vmatprep.mubr.bf16.mxu1 %v3696_v23  ;;  %6052 = vmatpush3.bf16.msra.mxu1 %v6572_v27  ;;  %v3684_v27 = vld [vmem:[#allocation2 + $0xf8] sm:$0xff] }
 0x2a5   : > { %6053 = vmatprep.subr.bf16.mxu1 %v6573_v59  ;;  %v3703_v3 = vpack.c.bf16 %v3685_v9, %v3684_v27 }
 0x2a6   : > { %6096 = vmatpush3.bf16.msra.mxu0 %v6578_v35 }
 0x2a7   : > { %6097 = vmatprep.subr.bf16.mxu0 %v6579_v34 }
 0x2a8   : > { %6054 = vmatpush3.bf16.msra.mxu1 %v6573_v59  ;;  %v6591_v59 = vld [vmem:[#allocation2 + $0x8] sm:$0xff] }
 0x2a9   : > { %6055 = vmatprep.subr.bf16.mxu1 %v6574_v5  ;;  %v3705_v23 = vpack.c.bf16 %v6591_v59, %v6591_v59 }
 0x2aa   : > { %6098 = vmatpush3.bf16.msra.mxu0 %v6579_v34 }
 0x2ab   : > { %6024 = vmatmul.mubr.bf16.gmra.mrb[28].mxu1 %v3697_v8  ;;  %6099 = vmatprep.subr.bf16.mxu0 %v6580_v45 }
 0x2ac   : > { %6027 = vmatprep.mubr.bf16.mxu1 %v3698_v26  ;;  %6056 = vmatpush3.bf16.msra.mxu1 %v6574_v5 }
 0x2ad   : > { %6057 = vmatprep.subr.bf16.mxu1 %v6575_v36 }
 0x2ae   : > { %6100 = vmatpush3.bf16.msra.mxu0 %v6580_v45 }
 0x2b0   : > { %6058 = vmatpush3.bf16.msra.mxu1 %v6575_v36 }
 0x2b3   : > { %6028 = vmatmul.mubr.bf16.gmra.mrb[0].mxu1 %v3699_v56  ;;  %v7914_v56 = vld [vmem:[%s8202_s6] ss:$0 sm:$0xff] }
 0x2b4   : > { %6031 = vmatprep.mubr.bf16.mxu1 %v3700_v30 }
 0x2bb   : > { %6032 = vmatmul.mubr.bf16.gmra.mrb[4].mxu1 %v3701_v17 }
 0x2bc   : > { %6035 = vmatprep.mubr.bf16.mxu1 %v3702_v14 }
 0x2c3   : > { %6036 = vmatmul.mubr.bf16.gmra.mrb[8].mxu1 %v3703_v3 }
 0x2c4   : > { %6039 = vmatprep.mubr.bf16.mxu1 %v3704_v43 }
 0x2cb   : > { %6040 = vmatmul.mubr.bf16.gmra.mrb[12].mxu1 %v3705_v23 }
 0x2cc   : > { %6059 = vmatprep.mubr.msk.bf16.mxu1 %vm8335_vm10, %v7549_v58 }
 0x2d3   : > { %6060 = vmatmul.mubr.msk.bf16.vlgmr.msra.gmra.mrb[16].mxu1 %vm8336_vm0, %v7568_v15  ;;  %v3995_v15 = vld [vmem:[#allocation2 + $0x121] sm:$0xff] }
 0x2d4   : > { %6063 = vmatprep.mubr.msk.bf16.mxu1 %vm8337_vm2, %v7575_v48  ;;  %v5326_v13 = vpack.c.bf16 %v3995_v15, %v3994_v11 }
 0x2db   : > { %6064 = vmatmul.mubr.msk.bf16.gmra.mrb[20].mxu1 %vm8338_vm5, %v7597_v25 }
 0x2dc   : > { %6067 = vmatprep.mubr.msk.bf16.mxu1 %vm8339_vm15, %v7604_v19 }
 0x2e3   : > { %6068 = vmatmul.mubr.msk.bf16.gmra.mrb[24].mxu1 %vm8340_vm3, %v7625_v18 }
 0x2e4   : > { %6071 = vmatprep.mubr.msk.bf16.mxu1 %vm8341_vm9, %v7632_v54 }
 0x2eb   : > { %6072 = vmatmul.mubr.msk.bf16.gmra.mrb[28].mxu1 %vm8342_vm4, %v7653_v21 }
 0x2ec   : > { %6075 = vmatprep.mubr.msk.bf16.mxu1 %vm8343_vm12, %v7660_v57 }
 0x2f3   : > { %6076 = vmatmul.mubr.msk.bf16.gmra.mrb[0].mxu1 %vm8344_vm1, %v7681_v50 }
 0x2f4   : > { %6079 = vmatprep.mubr.msk.bf16.mxu1 %vm7656_vm6, %v7688_v4 }
 0x2fb   : > { %6080 = vmatmul.mubr.msk.bf16.gmra.mrb[4].mxu1 %vm7677_vm8, %v7708_v31 }
 0x2fc   : > { %6083 = vmatprep.mubr.msk.bf16.mxu1 %vm7684_vm11, %v7715_v16  ;;  %v6581_v16 = vld [vmem:[#allocation9 + $0x28] sm:$0xff]  }
 0x2fd   : > { %v7852_v46 = vpop.f32.mrb[48].mxu0  ;;  %6101 = vmatprep.subr.bf16.mxu0 %v6581_v16 }
 0x2fe   : > { %v7854_v52 = vpop.f32.mrb[49].mxu0  ;;  %6102 = vmatpush3.bf16.msra.mxu0 %v6581_v16 }
 0x2ff   : > { %v7856_v55 = vpop.f32.mrb[50].mxu0  ;;  %6103 = vmatprep.subr.bf16.mxu0 %v6582_v44 }
 0x300   : > { %v7858_v58 = vpop.f32.mrb[51].mxu0 }
 0x302   : > { %6104 = vmatpush3.bf16.msra.mxu0 %v6582_v44 }
 0x303   : > { %6084 = vmatmul.mubr.msk.bf16.gmra.mrb[8].mxu1 %vm7704_vm7, %v7734_v63  ;;  %6105 = vmatprep.subr.bf16.mxu0 %v6583_v47 }
 0x304   : > { %6087 = vmatprep.mubr.msk.bf16.mxu1 %vm7711_vm13, %v7748_v39 }
 0x305   : > { %v7866_v24 = vpop.f32.mrb[52].mxu0 }
 0x306   : > { %v7868_v48 = vpop.f32.mrb[53].mxu0  ;;  %6106 = vmatpush3.bf16.msra.mxu0 %v6583_v47 }
 0x307   : > { %v7870_v25 = vpop.f32.mrb[54].mxu0 }
 0x308   : > { %v7872_v28 = vpop.f32.mrb[55].mxu0 }
 0x30b   : > { %6088 = vmatmul.mubr.msk.bf16.gmra.mrb[12].mxu1 %vm7730_vm14, %v5326_v13 }
 0x30d   : > { %v7876_v19 = vpop.f32.mrb[56].mxu0 }
 0x30e   : > { %v7878_v10 = vpop.f32.mrb[57].mxu0 }
 0x30f   : > { %v7880_v18 = vpop.f32.mrb[58].mxu0 }
 0x310   : > { %v7882_v2 = vpop.f32.mrb[59].mxu0 }
 0x315   : > { %v7884_v54 = vpop.f32.mrb[60].mxu0 }
 0x316   : > { %v7886_v29 = vpop.f32.mrb[61].mxu0 }
 0x317   : > { %v7888_v21 = vpop.f32.mrb[62].mxu0 }
 0x318   : > { %v7890_v12 = vpop.f32.mrb[63].mxu0 }
 0x31d   : > { %v5821_v57 = vpop.f32.mrb[32].mxu0 }
 0x31e   : > { %v2549_v49 = vpop.f32.mrb[33].mxu0 }
 0x31f   : > { %v5822_v50 = vpop.f32.mrb[34].mxu0 }
 0x320   : > { %v2552_v41 = vpop.f32.mrb[35].mxu0 }
 0x325   : > { %v5825_v4 = vpop.f32.mrb[36].mxu0 }
 0x326   : > { %v2565_v22 = vpop.f32.mrb[37].mxu0 }
 0x327   : > { %v5826_v31 = vpop.f32.mrb[38].mxu0 }
 0x328   : > { %v2568_v7 = vpop.f32.mrb[39].mxu0 }
 0x32d   : > { %v5829_v38 = vpop.f32.mrb[40].mxu0 }
 0x32e   : > { %v7892_v63 = vpop.f32.mrb[41].mxu0 }
 0x32f   : > { %v7894_v39 = vpop.f32.mrb[42].mxu0 }
 0x330   : > { %v7896_v5 = vpop.f32.mrb[43].mxu0 }
 0x335   : > { %v7898_v60 = vpop.f32.mrb[44].mxu0 }
 0x336   : > { %v7900_v8 = vpop.f32.mrb[45].mxu0 }
 0x337   : > { %v7902_v33 = vpop.f32.mrb[46].mxu0 }
 0x338   : > { %v7904_v36 = vpop.f32.mrb[47].mxu0 }
 0x3a6   : > { %v6061_v26 = vpop.f32.mrb[16].mxu1 }
 0x3a7   : > { %v6155_v42 = vadd.f32 %v6061_v26, %v5821_v57  ;;  %v4143_v61 = vpop.f32.mrb[17].mxu1 }
 0x3a8   : > { %v6156_v1 = vadd.f32 %v4143_v61, %v2549_v49  ;;  %v6062_v30 = vpop.f32.mrb[18].mxu1 }
 0x3a9   : > { %v4311_v51 = vmul.f32 %v6155_v42, %v7909_v37  ;;  %v6157_v6 = vadd.f32 %v6062_v30, %v5822_v50  ;;  %v4146_v0 = vpop.f32.mrb[19].mxu1 }
 0x3aa   : > { %v4309_v32 = vmul.f32 %v6156_v1, %v7909_v37  ;;  %v6158_v40 = vadd.f32 %v4146_v0, %v2552_v41 }
 0x3ab   : > { %v4350_v17 = vadd.f32 %v7914_v56, %v4311_v51  ;;  %v4312_v20 = vmul.f32 %v6157_v6, %v7909_v37 }
 0x3ac   : > { %v4348_v14 = vadd.f32 %v7914_v56, %v4309_v32  ;;  %v4310_v35 = vmul.f32 %v6158_v40, %v7909_v37 }
 0x3ad   : > { %v4351_v9 = vadd.f32 %v7914_v56, %v4312_v20  ;;  %v4382_v34 = vmax.f32 %v4350_v17, 0.0 }
 0x3ae   : > { %v4349_v53 = vadd.f32 %v7914_v56, %v4310_v35  ;;  %v6065_v27 = vpop.f32.mrb[20].mxu1  ;;  %v4380_v45 = vmax.f32 %v4348_v14, 0.0 }
 0x3af   : > { %v4383_v3 = vmax.f32 %v4351_v9, 0.0  ;;  %v6159_v62 = vadd.f32 %v6065_v27, %v5825_v4  ;;  %v4159_v43 = vpop.f32.mrb[21].mxu1 }
 0x3b0   : > { %v4381_v59 = vmax.f32 %v4349_v53, 0.0  ;;  %v6160_v23 = vadd.f32 %v4159_v43, %v2565_v22  ;;  %v6066_v11 = vpop.f32.mrb[22].mxu1 }
 0x3b1   : > { %v4413_v15 = vpack.c.bf16 %v4383_v3, %v4382_v34  ;;  %v4315_v13 = vmul.f32 %v6159_v62, %v7909_v37  ;;  %v6161_v57 = vadd.f32 %v6066_v11, %v5826_v31  ;;  %v4162_v49 = vpop.f32.mrb[23].mxu1 }
 0x3b2   : > { %v4313_v50 = vmul.f32 %v6160_v23, %v7909_v37  ;;  %v6162_v41 = vadd.f32 %v4162_v49, %v2568_v7  ;;  %v4412_v16 = vpack.c.bf16 %v4381_v59, %v4380_v45 }
 0x3b3   : > { %v4354_v44 = vadd.f32 %v7914_v56, %v4315_v13  ;;  %v4316_v47 = vmul.f32 %v6161_v57, %v7909_v37 }
 0x3b4   : > { %v4352_v4 = vadd.f32 %v7914_v56, %v4313_v50  ;;  %v4314_v26 = vmul.f32 %v6162_v41, %v7909_v37  ;;  %6107 = vmatprep.mubr.bf16.mxu0 %v4412_v16 }
 0x3b5   : > { %v4355_v22 = vadd.f32 %v7914_v56, %v4316_v47  ;;  %6108 = vmatmul.mubr.bf16.vlgmr.msra.gmra.mrb[64].mxu0 %v4413_v15  ;;  %v4386_v61 = vmax.f32 %v4354_v44, 0.0 }
 0x3b6   : > { %v4353_v42 = vadd.f32 %v7914_v56, %v4314_v26  ;;  %v6069_v31 = vpop.f32.mrb[24].mxu1  ;;  %v4384_v51 = vmax.f32 %v4352_v4, 0.0 }
 0x3b7   : > { %v4387_v1 = vmax.f32 %v4355_v22, 0.0  ;;  %v6163_v30 = vadd.f32 %v6069_v31, %v5829_v38  ;;  %v4175_v7 = vpop.f32.mrb[25].mxu1 }
 0x3b8   : > { %v4385_v6 = vmax.f32 %v4353_v42, 0.0  ;;  %v6164_v0 = vadd.f32 %v4175_v7, %v7892_v63  ;;  %v6070_v32 = vpop.f32.mrb[26].mxu1 }
 0x3b9   : > { %v4319_v40 = vmul.f32 %v6163_v30, %v7909_v37  ;;  %v6165_v17 = vadd.f32 %v6070_v32, %v7894_v39  ;;  %v4178_v20 = vpop.f32.mrb[27].mxu1  ;;  %v4415_v14 = vpack.c.bf16 %v4387_v1, %v4386_v61 }
 0x3ba   : > { %v4317_v35 = vmul.f32 %v6164_v0, %v7909_v37  ;;  %v6166_v9 = vadd.f32 %v4178_v20, %v7896_v5  ;;  %v4414_v53 = vpack.c.bf16 %v4385_v6, %v4384_v51 }
 0x3bb   : > { %v4358_v27 = vadd.f32 %v7914_v56, %v4319_v40  ;;  %v4320_v38 = vmul.f32 %v6165_v17, %v7909_v37 }
 0x3bc   : > { %v4356_v34 = vadd.f32 %v7914_v56, %v4317_v35  ;;  %v4318_v63 = vmul.f32 %v6166_v9, %v7909_v37  ;;  %6111 = vmatprep.mubr.bf16.mxu0 %v4414_v53 }
 0x3bd   : > { %v4359_v3 = vadd.f32 %v7914_v56, %v4320_v38  ;;  %6112 = vmatmul.mubr.bf16.gmra.mrb[68].mxu0 %v4415_v14  ;;  %v4390_v43 = vmax.f32 %v4358_v27, 0.0 }
 0x3be   : > { %v4357_v39 = vadd.f32 %v7914_v56, %v4318_v63  ;;  %v6073_v62 = vpop.f32.mrb[28].mxu1  ;;  %v4388_v23 = vmax.f32 %v4356_v34, 0.0 }
 0x3bf   : > { %v4391_v45 = vmax.f32 %v4359_v3, 0.0  ;;  %v6167_v5 = vadd.f32 %v6073_v62, %v7898_v60  ;;  %v4191_v59 = vpop.f32.mrb[29].mxu1 }
 0x3c0   : > { %v4389_v11 = vmax.f32 %v4357_v39, 0.0  ;;  %v6168_v15 = vadd.f32 %v4191_v59, %v7900_v8  ;;  %v6074_v13 = vpop.f32.mrb[30].mxu1 }
 0x3c1   : > { %v4323_v57 = vmul.f32 %v6167_v5, %v7909_v37  ;;  %v6169_v49 = vadd.f32 %v6074_v13, %v7902_v33  ;;  %v4194_v50 = vpop.f32.mrb[31].mxu1  ;;  %v4417_v41 = vpack.c.bf16 %v4391_v45, %v4390_v43 }
 0x3c2   : > { %v4321_v16 = vmul.f32 %v6168_v15, %v7909_v37  ;;  %v6170_v44 = vadd.f32 %v4194_v50, %v7904_v36  ;;  %v4416_v47 = vpack.c.bf16 %v4389_v11, %v4388_v23 }
 0x3c3   : > { %v4362_v4 = vadd.f32 %v7914_v56, %v4323_v57  ;;  %v4324_v60 = vmul.f32 %v6169_v49, %v7909_v37 }
 0x3c4   : > { %v4360_v26 = vadd.f32 %v7914_v56, %v4321_v16  ;;  %v4322_v8 = vmul.f32 %v6170_v44, %v7909_v37  ;;  %6115 = vmatprep.mubr.bf16.mxu0 %v4416_v47 }
 0x3c5   : > { %v4363_v22 = vadd.f32 %v7914_v56, %v4324_v60  ;;  %6116 = vmatmul.mubr.bf16.gmra.mrb[72].mxu0 %v4417_v41  ;;  %v4394_v31 = vmax.f32 %v4362_v4, 0.0 }
 0x3c6   : > { %v4361_v33 = vadd.f32 %v7914_v56, %v4322_v8  ;;  %v6077_v42 = vpop.f32.mrb[0].mxu1  ;;  %v4392_v30 = vmax.f32 %v4360_v26, 0.0 }
 0x3c7   : > { %v4395_v61 = vmax.f32 %v4363_v22, 0.0  ;;  %v6171_v36 = vadd.f32 %v6077_v42, %v7852_v46  ;;  %v4207_v1 = vpop.f32.mrb[1].mxu1 }
 0x3c8   : > { %v4393_v7 = vmax.f32 %v4361_v33, 0.0  ;;  %v6172_v51 = vadd.f32 %v4207_v1, %v7854_v52  ;;  %v6078_v6 = vpop.f32.mrb[2].mxu1 }
 0x3c9   : > { %v4327_v0 = vmul.f32 %v6171_v36, %v7909_v37  ;;  %v6173_v32 = vadd.f32 %v6078_v6, %v7856_v55  ;;  %v4210_v40 = vpop.f32.mrb[3].mxu1  ;;  %v4419_v17 = vpack.c.bf16 %v4395_v61, %v4394_v31 }
 0x3ca   : > { %v4325_v20 = vmul.f32 %v6172_v51, %v7909_v37  ;;  %v6174_v14 = vadd.f32 %v4210_v40, %v7858_v58  ;;  %v4418_v35 = vpack.c.bf16 %v4393_v7, %v4392_v30 }
 0x3cb   : > { %v4366_v9 = vadd.f32 %v7914_v56, %v4327_v0  ;;  %v4328_v46 = vmul.f32 %v6173_v32, %v7909_v37 }
 0x3cc   : > { %v4364_v53 = vadd.f32 %v7914_v56, %v4325_v20  ;;  %v4326_v52 = vmul.f32 %v6174_v14, %v7909_v37  ;;  %6119 = vmatprep.mubr.bf16.mxu0 %v4418_v35 }
 0x3cd   : > { %v4367_v27 = vadd.f32 %v7914_v56, %v4328_v46  ;;  %6120 = vmatmul.mubr.bf16.gmra.mrb[76].mxu0 %v4419_v17  ;;  %v4398_v34 = vmax.f32 %v4366_v9, 0.0 }
 0x3ce   : > { %v4365_v55 = vadd.f32 %v7914_v56, %v4326_v52  ;;  %v6081_v38 = vpop.f32.mrb[4].mxu1  ;;  %v4396_v39 = vmax.f32 %v4364_v53, 0.0 }
 0x3cf   : > { %v4399_v63 = vmax.f32 %v4367_v27, 0.0  ;;  %v6175_v58 = vadd.f32 %v6081_v38, %v7866_v24  ;;  %v4223_v3 = vpop.f32.mrb[5].mxu1 }
 0x3d0   : > { %v4397_v62 = vmax.f32 %v4365_v55, 0.0  ;;  %v6176_v43 = vadd.f32 %v4223_v3, %v7868_v48  ;;  %v6082_v45 = vpop.f32.mrb[6].mxu1 }
 0x3d1   : > { %v4331_v5 = vmul.f32 %v6175_v58, %v7909_v37  ;;  %v6177_v59 = vadd.f32 %v6082_v45, %v7870_v25  ;;  %v4226_v23 = vpop.f32.mrb[7].mxu1  ;;  %v4421_v11 = vpack.c.bf16 %v4399_v63, %v4398_v34 }
 0x3d2   : > { %v4329_v15 = vmul.f32 %v6176_v43, %v7909_v37  ;;  %v6178_v13 = vadd.f32 %v4226_v23, %v7872_v28  ;;  %v4420_v57 = vpack.c.bf16 %v4397_v62, %v4396_v39 }
 0x3d3   : > { %v4370_v49 = vadd.f32 %v7914_v56, %v4331_v5  ;;  %v4332_v24 = vmul.f32 %v6177_v59, %v7909_v37 }
 0x3d4   : > { %v4368_v50 = vadd.f32 %v7914_v56, %v4329_v15  ;;  %v4330_v48 = vmul.f32 %v6178_v13, %v7909_v37  ;;  %6123 = vmatprep.mubr.bf16.mxu0 %v4420_v57 }
 0x3d5   : > { %v4371_v41 = vadd.f32 %v7914_v56, %v4332_v24  ;;  %6124 = vmatmul.mubr.bf16.gmra.mrb[80].mxu0 %v4421_v11  ;;  %v4402_v44 = vmax.f32 %v4370_v49, 0.0 }
 0x3d6   : > { %v4369_v25 = vadd.f32 %v7914_v56, %v4330_v48  ;;  %v6085_v16 = vpop.f32.mrb[8].mxu1  ;;  %v4400_v60 = vmax.f32 %v4368_v50, 0.0 }
 0x3d7   : > { %v4403_v47 = vmax.f32 %v4371_v41, 0.0  ;;  %v6179_v28 = vadd.f32 %v6085_v16, %v7876_v19  ;;  %v4239_v4 = vpop.f32.mrb[9].mxu1  ;;  %v6592_v41 = vld [vmem:[%s7091_s12 + $0x10] sm:$0xff] }
 0x3d8   : > { %v4401_v26 = vmax.f32 %v4369_v25, 0.0  ;;  %v6180_v8 = vadd.f32 %v4239_v4, %v7878_v10  ;;  %v6086_v22 = vpop.f32.mrb[10].mxu1 }
 0x3d9   : > { %v4335_v33 = vmul.f32 %v6179_v28, %v7909_v37  ;;  %v6181_v42 = vadd.f32 %v6086_v22, %v7880_v18  ;;  %v4242_v31 = vpop.f32.mrb[11].mxu1  ;;  %v4423_v61 = vpack.c.bf16 %v4403_v47, %v4402_v44  ;;  %v6593_v44 = vld [vmem:[%s7091_s12] sm:$0xff]  ;;  %v6595_v22 = vld [vmem:[%s7091_s12 + $0x8] sm:$0xff] }
 0x3da   : > { %v4333_v36 = vmul.f32 %v6180_v8, %v7909_v37  ;;  %v6182_v1 = vadd.f32 %v4242_v31, %v7882_v2  ;;  %v4422_v30 = vpack.c.bf16 %v4401_v26, %v4400_v60  ;;  %v6594_v60 = vld [vmem:[%s7091_s12 + $0x18] sm:$0xff] }
 0x3db   : > { %v4374_v7 = vadd.f32 %v7914_v56, %v4335_v33  ;;  %v4336_v19 = vmul.f32 %v6181_v42, %v7909_v37 }
 0x3dc   : > { %v4372_v51 = vadd.f32 %v7914_v56, %v4333_v36  ;;  %v4334_v10 = vmul.f32 %v6182_v1, %v7909_v37  ;;  %6127 = vmatprep.mubr.bf16.mxu0 %v4422_v30 }
 0x3dd   : > { %v4375_v6 = vadd.f32 %v7914_v56, %v4336_v19  ;;  %6128 = vmatmul.mubr.bf16.gmra.mrb[84].mxu0 %v4423_v61  ;;  %v4406_v32 = vmax.f32 %v4374_v7, 0.0 }
 0x3de   : > { %v4373_v18 = vadd.f32 %v7914_v56, %v4334_v10  ;;  %v6089_v0 = vpop.f32.mrb[12].mxu1  ;;  %v4404_v20 = vmax.f32 %v4372_v51, 0.0 }
 0x3df   : > { %v4407_v40 = vmax.f32 %v4375_v6, 0.0  ;;  %v6183_v2 = vadd.f32 %v6089_v0, %v7884_v54  ;;  %v4255_v17 = vpop.f32.mrb[13].mxu1  ;;  %v6596_v0 = vld [vmem:[%s7091_s12 + $0x30] sm:$0xff] }
 0x3e0   : > { %v4405_v14 = vmax.f32 %v4373_v18, 0.0  ;;  %v6184_v35 = vadd.f32 %v4255_v17, %v7886_v29  ;;  %v6090_v9 = vpop.f32.mrb[14].mxu1 }
 0x3e1   : > { %v4339_v46 = vmul.f32 %v6183_v2, %v7909_v37  ;;  %v6185_v53 = vadd.f32 %v6090_v9, %v7888_v21  ;;  %v4258_v52 = vpop.f32.mrb[15].mxu1  ;;  %v4425_v27 = vpack.c.bf16 %v4407_v40, %v4406_v32  ;;  %v6597_v2 = vld [vmem:[%s7091_s12 + $0x20] sm:$0xff] }
 0x3e2   : > { %v4337_v55 = vmul.f32 %v6184_v35, %v7909_v37  ;;  %v6186_v38 = vadd.f32 %v4258_v52, %v7890_v12  ;;  %v4424_v34 = vpack.c.bf16 %v4405_v14, %v4404_v20  ;;  %v6598_v35 = vld [vmem:[%s7091_s12 + $0x38] sm:$0xff] }
 0x3e3   : > { %v4378_v63 = vadd.f32 %v7914_v56, %v4339_v46  ;;  %v4340_v54 = vmul.f32 %v6185_v53, %v7909_v37  ;;  %v6599_v53 = vld [vmem:[%s7091_s12 + $0x28] sm:$0xff] }
 0x3e4   : > { %v4376_v58 = vadd.f32 %v7914_v56, %v4337_v55  ;;  %v4338_v29 = vmul.f32 %v6186_v38, %v7909_v37  ;;  %6131 = vmatprep.mubr.bf16.mxu0 %v4424_v34  ;;  %v8006_v37 = vld [vmem:[%s8204_s8] ss:$0 sm:$0xff] }
 0x3e5   : > { %v4379_v3 = vadd.f32 %v7914_v56, %v4340_v54  ;;  %6132 = vmatmul.mubr.bf16.gmra.mrb[88].mxu0 %v4425_v27  ;;  %v4410_v39 = vmax.f32 %v4378_v63, 0.0 }
 0x3e6   : > { %v4377_v21 = vadd.f32 %v7914_v56, %v4338_v29  ;;  %v4408_v43 = vmax.f32 %v4376_v58, 0.0  ;;  %v8011_v56 = vld [vmem:[%s8345_s19] ss:$0 sm:$0xff] }
 0x3e7   : > { %v4411_v62 = vmax.f32 %v4379_v3, 0.0 }
 0x3e8   : > { %v4409_v45 = vmax.f32 %v4377_v21, 0.0 }
 0x3e9   : > { %v4427_v12 = vpack.c.bf16 %v4411_v62, %v4410_v39 }
 0x3ea   : > { %v4426_v5 = vpack.c.bf16 %v4409_v45, %v4408_v43  ;;  %v6600_v43 = vld [vmem:[%s7091_s12 + $0x50] sm:$0xff] }
 0x3ec   : > { %6135 = vmatprep.mubr.bf16.mxu0 %v4426_v5  ;;  %v6601_v5 = vld [vmem:[%s7091_s12 + $0x40] sm:$0xff] }
 0x3ed   : > { %6136 = vmatmul.mubr.bf16.gmra.mrb[92].mxu0 %v4427_v12 }
 0x488   : > { %v6109_v59 = vpop.f32.mrb[64].mxu0 }
 0x489   : > { %v4662_v23 = vmul.f32 %v6109_v59, %v8006_v37  ;;  %v4526_v11 = vpop.f32.mrb[65].mxu0 }
 0x48a   : > { %v4660_v15 = vmul.f32 %v8006_v37, %v4526_v11  ;;  %v6110_v13 = vpop.f32.mrb[66].mxu0 }
 0x48b   : > { %v4701_v57 = vadd.f32 %v8011_v56, %v4662_v23  ;;  %v4663_v49 = vmul.f32 %v6110_v13, %v8006_v37  ;;  %v4529_v24 = vpop.f32.mrb[67].mxu0 }
 0x48c   : > { %v4699_v50 = vadd.f32 %v8011_v56, %v4660_v15  ;;  %v4661_v48 = vmul.f32 %v8006_v37, %v4529_v24  ;;  %v6602_v15 = vld [vmem:[%s7091_s12 + $0x58] sm:$0xff] }
 0x48d   : > { %v4733_v25 = vadd.f32 %v6592_v41, %v4701_v57  ;;  %v4702_v16 = vadd.f32 %v8011_v56, %v4663_v49  ;;  %v6603_v49 = vld [vmem:[%s7091_s12 + $0x48] sm:$0xff] }
 0x48e   : > { %v4731_v47 = vadd.f32 %v6593_v44, %v4699_v50  ;;  %v4700_v28 = vadd.f32 %v8011_v56, %v4661_v48 }
 0x48f   : > { %v4765_v4 = vmax.f32 %v4733_v25, 0.0  ;;  %v4734_v26 = vadd.f32 %v6594_v60, %v4702_v16 }
 0x490   : > { %v4763_v8 = vmax.f32 %v4731_v47, 0.0  ;;  %v4732_v33 = vadd.f32 %v6595_v22, %v4700_v28  ;;  %v6113_v42 = vpop.f32.mrb[68].mxu0  ;;  %v6604_v22 = vld [vmem:[%s7091_s12 + $0x70] sm:$0xff] }
 0x491   : > { %4797 = vst [vmem:[%s8027_s21 + $0x10] sm:$0xff] %v4765_v4  ;;  %v4766_v31 = vmax.f32 %v4734_v26, 0.0  ;;  %v4666_v61 = vmul.f32 %v6113_v42, %v8006_v37  ;;  %v4542_v36 = vpop.f32.mrb[69].mxu0 }
 0x492   : > { %4795 = vst [vmem:[%s8027_s21] sm:$0xff] %v4763_v8  ;;  %v4764_v1 = vmax.f32 %v4732_v33, 0.0  ;;  %v4664_v30 = vmul.f32 %v8006_v37, %v4542_v36  ;;  %v6114_v7 = vpop.f32.mrb[70].mxu0 }
 0x493   : > { %4798 = vst [vmem:[%s8027_s21 + $0x18] sm:$0xff] %v4766_v31  ;;  %v4705_v19 = vadd.f32 %v8011_v56, %v4666_v61  ;;  %v4667_v51 = vmul.f32 %v6114_v7, %v8006_v37  ;;  %v4545_v10 = vpop.f32.mrb[71].mxu0  ;;  %v6605_v31 = vld [vmem:[%s7091_s12 + $0x60] sm:$0xff] }
 0x494   : > { %4796 = vst [vmem:[%s8027_s21 + $0x8] sm:$0xff] %v4764_v1  ;;  %v4703_v6 = vadd.f32 %v8011_v56, %v4664_v30  ;;  %v4665_v18 = vmul.f32 %v8006_v37, %v4545_v10  ;;  %v6606_v30 = vld [vmem:[%s7091_s12 + $0x78] sm:$0xff] }
 0x495   : > { %v4737_v32 = vadd.f32 %v6596_v0, %v4705_v19  ;;  %v4706_v40 = vadd.f32 %v8011_v56, %v4667_v51  ;;  %v6607_v51 = vld [vmem:[%s7091_s12 + $0x68] sm:$0xff] }
 0x496   : > { %v4735_v17 = vadd.f32 %v6597_v2, %v4703_v6  ;;  %v4704_v20 = vadd.f32 %v8011_v56, %v4665_v18 }
 0x497   : > { %v4769_v14 = vmax.f32 %v4737_v32, 0.0  ;;  %v4738_v9 = vadd.f32 %v6598_v35, %v4706_v40 }
 0x498   : > { %v4767_v46 = vmax.f32 %v4735_v17, 0.0  ;;  %v4736_v52 = vadd.f32 %v6599_v53, %v4704_v20  ;;  %v6117_v27 = vpop.f32.mrb[72].mxu0  ;;  %v6608_v53 = vld [vmem:[%s7091_s12 + $0x90] sm:$0xff] }
 0x499   : > { %4801 = vst [vmem:[%s8027_s21 + $0x30] sm:$0xff] %v4769_v14  ;;  %v4770_v55 = vmax.f32 %v4738_v9, 0.0  ;;  %v4670_v38 = vmul.f32 %v6117_v27, %v8006_v37  ;;  %v4558_v34 = vpop.f32.mrb[73].mxu0 }
 0x49a   : > { %4799 = vst [vmem:[%s8027_s21 + $0x20] sm:$0xff] %v4767_v46  ;;  %v4768_v63 = vmax.f32 %v4736_v52, 0.0  ;;  %v4668_v54 = vmul.f32 %v8006_v37, %v4558_v34  ;;  %v6118_v58 = vpop.f32.mrb[74].mxu0 }
 0x49b   : > { %4802 = vst [vmem:[%s8027_s21 + $0x38] sm:$0xff] %v4770_v55  ;;  %v4709_v29 = vadd.f32 %v8011_v56, %v4670_v38  ;;  %v4671_v3 = vmul.f32 %v6118_v58, %v8006_v37  ;;  %v4561_v21 = vpop.f32.mrb[75].mxu0  ;;  %v6609_v55 = vld [vmem:[%s7091_s12 + $0x80] sm:$0xff] }
 0x49c   : > { %4800 = vst [vmem:[%s8027_s21 + $0x28] sm:$0xff] %v4768_v63  ;;  %v4707_v39 = vadd.f32 %v8011_v56, %v4668_v54  ;;  %v4669_v62 = vmul.f32 %v8006_v37, %v4561_v21  ;;  %v6610_v54 = vld [vmem:[%s7091_s12 + $0x98] sm:$0xff] }
 0x49d   : > { %v4741_v45 = vadd.f32 %v6600_v43, %v4709_v29  ;;  %v4710_v12 = vadd.f32 %v8011_v56, %v4671_v3  ;;  %v6611_v3 = vld [vmem:[%s7091_s12 + $0x88] sm:$0xff] }
 0x49e   : > { %v4739_v59 = vadd.f32 %v6601_v5, %v4707_v39  ;;  %v4708_v23 = vadd.f32 %v8011_v56, %v4669_v62 }
 0x49f   : > { %v4773_v11 = vmax.f32 %v4741_v45, 0.0  ;;  %v4742_v13 = vadd.f32 %v6602_v15, %v4710_v12 }
 0x4a0   : > { %v4771_v57 = vmax.f32 %v4739_v59, 0.0  ;;  %v4740_v24 = vadd.f32 %v6603_v49, %v4708_v23  ;;  %v6121_v50 = vpop.f32.mrb[76].mxu0  ;;  %v6612_v49 = vld [vmem:[%s7091_s12 + $0xb0] sm:$0xff] }
 0x4a1   : > { %4805 = vst [vmem:[%s8027_s21 + $0x50] sm:$0xff] %v4773_v11  ;;  %v4774_v48 = vmax.f32 %v4742_v13, 0.0  ;;  %v4674_v41 = vmul.f32 %v6121_v50, %v8006_v37  ;;  %v4574_v25 = vpop.f32.mrb[77].mxu0 }
 0x4a2   : > { %4803 = vst [vmem:[%s8027_s21 + $0x40] sm:$0xff] %v4771_v57  ;;  %v4772_v16 = vmax.f32 %v4740_v24, 0.0  ;;  %v4672_v44 = vmul.f32 %v8006_v37, %v4574_v25  ;;  %v6122_v47 = vpop.f32.mrb[78].mxu0 }
 0x4a3   : > { %4806 = vst [vmem:[%s8027_s21 + $0x58] sm:$0xff] %v4774_v48  ;;  %v4713_v28 = vadd.f32 %v8011_v56, %v4674_v41  ;;  %v4675_v4 = vmul.f32 %v6122_v47, %v8006_v37  ;;  %v4577_v60 = vpop.f32.mrb[79].mxu0  ;;  %v6613_v48 = vld [vmem:[%s7091_s12 + $0xa0] sm:$0xff] }
 0x4a4   : > { %4804 = vst [vmem:[%s8027_s21 + $0x48] sm:$0xff] %v4772_v16  ;;  %v4711_v26 = vadd.f32 %v8011_v56, %v4672_v44  ;;  %v4673_v8 = vmul.f32 %v8006_v37, %v4577_v60  ;;  %v6614_v44 = vld [vmem:[%s7091_s12 + $0xb8] sm:$0xff] }
 0x4a5   : > { %v4745_v33 = vadd.f32 %v6604_v22, %v4713_v28  ;;  %v4714_v42 = vadd.f32 %v8011_v56, %v4675_v4  ;;  %v6615_v4 = vld [vmem:[%s7091_s12 + $0xa8] sm:$0xff] }
 0x4a6   : > { %v4743_v61 = vadd.f32 %v6605_v31, %v4711_v26  ;;  %v4712_v36 = vadd.f32 %v8011_v56, %v4673_v8 }
 0x4a7   : > { %v4777_v1 = vmax.f32 %v4745_v33, 0.0  ;;  %v4746_v7 = vadd.f32 %v6606_v30, %v4714_v42 }
 0x4a8   : > { %v4775_v19 = vmax.f32 %v4743_v61, 0.0  ;;  %v4744_v10 = vadd.f32 %v6607_v51, %v4712_v36  ;;  %v6125_v6 = vpop.f32.mrb[80].mxu0  ;;  %v6616_v51 = vld [vmem:[%s7091_s12 + $0xd0] sm:$0xff] }
 0x4a9   : > { %4809 = vst [vmem:[%s8027_s21 + $0x70] sm:$0xff] %v4777_v1  ;;  %v4778_v18 = vmax.f32 %v4746_v7, 0.0  ;;  %v4678_v0 = vmul.f32 %v6125_v6, %v8006_v37  ;;  %v4590_v32 = vpop.f32.mrb[81].mxu0 }
 0x4aa   : > { %4807 = vst [vmem:[%s8027_s21 + $0x60] sm:$0xff] %v4775_v19  ;;  %v4776_v40 = vmax.f32 %v4744_v10, 0.0  ;;  %v4676_v2 = vmul.f32 %v8006_v37, %v4590_v32  ;;  %v6126_v17 = vpop.f32.mrb[82].mxu0 }
 0x4ab   : > { %4810 = vst [vmem:[%s8027_s21 + $0x78] sm:$0xff] %v4778_v18  ;;  %v4717_v20 = vadd.f32 %v8011_v56, %v4678_v0  ;;  %v4679_v14 = vmul.f32 %v6126_v17, %v8006_v37  ;;  %v4593_v35 = vpop.f32.mrb[83].mxu0  ;;  %v6617_v18 = vld [vmem:[%s7091_s12 + $0xc0] sm:$0xff] }
 0x4ac   : > { %4808 = vst [vmem:[%s8027_s21 + $0x68] sm:$0xff] %v4776_v40  ;;  %v4715_v9 = vadd.f32 %v8011_v56, %v4676_v2  ;;  %v4677_v46 = vmul.f32 %v8006_v37, %v4593_v35  ;;  %v6618_v2 = vld [vmem:[%s7091_s12 + $0xd8] sm:$0xff] }
 0x4ad   : > { %v4749_v52 = vadd.f32 %v6608_v53, %v4717_v20  ;;  %v4718_v27 = vadd.f32 %v8011_v56, %v4679_v14  ;;  %v6619_v14 = vld [vmem:[%s7091_s12 + $0xc8] sm:$0xff] }
 0x4ae   : > { %v4747_v38 = vadd.f32 %v6609_v55, %v4715_v9  ;;  %v4716_v34 = vadd.f32 %v8011_v56, %v4677_v46 }
 0x4af   : > { %v4781_v63 = vmax.f32 %v4749_v52, 0.0  ;;  %v4750_v58 = vadd.f32 %v6610_v54, %v4718_v27 }
 0x4b0   : > { %v4779_v29 = vmax.f32 %v4747_v38, 0.0  ;;  %v4748_v21 = vadd.f32 %v6611_v3, %v4716_v34  ;;  %v6129_v39 = vpop.f32.mrb[84].mxu0  ;;  %v6620_v3 = vld [vmem:[%s7091_s12 + $0xf0] sm:$0xff] }
 0x4b1   : > { %4813 = vst [vmem:[%s8027_s21 + $0x90] sm:$0xff] %v4781_v63  ;;  %v4782_v62 = vmax.f32 %v4750_v58, 0.0  ;;  %v4682_v43 = vmul.f32 %v6129_v39, %v8006_v37  ;;  %v4606_v45 = vpop.f32.mrb[85].mxu0 }
 0x4b2   : > { %4811 = vst [vmem:[%s8027_s21 + $0x80] sm:$0xff] %v4779_v29  ;;  %v4780_v12 = vmax.f32 %v4748_v21, 0.0  ;;  %v4680_v5 = vmul.f32 %v8006_v37, %v4606_v45  ;;  %v6130_v59 = vpop.f32.mrb[86].mxu0 }
 0x4b3   : > { %4814 = vst [vmem:[%s8027_s21 + $0x98] sm:$0xff] %v4782_v62  ;;  %v4721_v23 = vadd.f32 %v8011_v56, %v4682_v43  ;;  %v4683_v11 = vmul.f32 %v6130_v59, %v8006_v37  ;;  %v4609_v15 = vpop.f32.mrb[87].mxu0  ;;  %v6621_v62 = vld [vmem:[%s7091_s12 + $0xe0] sm:$0xff] }
 0x4b4   : > { %4812 = vst [vmem:[%s8027_s21 + $0x88] sm:$0xff] %v4780_v12  ;;  %v4719_v13 = vadd.f32 %v8011_v56, %v4680_v5  ;;  %v4681_v57 = vmul.f32 %v8006_v37, %v4609_v15  ;;  %v6622_v5 = vld [vmem:[%s7091_s12 + $0xf8] sm:$0xff] }
 0x4b5   : > { %v4753_v24 = vadd.f32 %v6612_v49, %v4721_v23  ;;  %v4722_v50 = vadd.f32 %v8011_v56, %v4683_v11 }
 0x4b6   : > { %v4751_v41 = vadd.f32 %v6613_v48, %v4719_v13  ;;  %v4720_v25 = vadd.f32 %v8011_v56, %v4681_v57 }
 0x4b7   : > { %v4785_v16 = vmax.f32 %v4753_v24, 0.0  ;;  %v4754_v47 = vadd.f32 %v6614_v44, %v4722_v50 }
 0x4b8   : > { %v4783_v28 = vmax.f32 %v4751_v41, 0.0  ;;  %v4752_v60 = vadd.f32 %v6615_v4, %v4720_v25  ;;  %v6133_v26 = vpop.f32.mrb[88].mxu0 }
 0x4b9   : > { %4817 = vst [vmem:[%s8027_s21 + $0xb0] sm:$0xff] %v4785_v16  ;;  %v4786_v8 = vmax.f32 %v4754_v47, 0.0  ;;  %v4686_v22 = vmul.f32 %v6133_v26, %v8006_v37  ;;  %v4622_v33 = vpop.f32.mrb[89].mxu0 }
 0x4ba   : > { %4815 = vst [vmem:[%s8027_s21 + $0xa0] sm:$0xff] %v4783_v28  ;;  %v4784_v42 = vmax.f32 %v4752_v60, 0.0  ;;  %v4684_v31 = vmul.f32 %v8006_v37, %v4622_v33  ;;  %v6134_v61 = vpop.f32.mrb[90].mxu0 }
 0x4bb   : > { %4818 = vst [vmem:[%s8027_s21 + $0xb8] sm:$0xff] %v4786_v8  ;;  %v4725_v36 = vadd.f32 %v8011_v56, %v4686_v22  ;;  %v4687_v1 = vmul.f32 %v6134_v61, %v8006_v37  ;;  %v4625_v30 = vpop.f32.mrb[91].mxu0 }
 0x4bc   : > { %4816 = vst [vmem:[%s8027_s21 + $0xa8] sm:$0xff] %v4784_v42  ;;  %v4723_v7 = vadd.f32 %v8011_v56, %v4684_v31  ;;  %v4685_v19 = vmul.f32 %v8006_v37, %v4625_v30 }
 0x4bd   : > { %v4757_v10 = vadd.f32 %v6616_v51, %v4725_v36  ;;  %v4726_v6 = vadd.f32 %v8011_v56, %v4687_v1 }
 0x4be   : > { %v4755_v0 = vadd.f32 %v6617_v18, %v4723_v7  ;;  %v4724_v32 = vadd.f32 %v8011_v56, %v4685_v19 }
 0x4bf   : > { %v4789_v40 = vmax.f32 %v4757_v10, 0.0  ;;  %v4758_v17 = vadd.f32 %v6618_v2, %v4726_v6 }
 0x4c0   : > { %v4787_v20 = vmax.f32 %v4755_v0, 0.0  ;;  %v4756_v35 = vadd.f32 %v6619_v14, %v4724_v32  ;;  %v6137_v9 = vpop.f32.mrb[92].mxu0 }
 0x4c1   : > { %4821 = vst [vmem:[%s8027_s21 + $0xd0] sm:$0xff] %v4789_v40  ;;  %v4790_v46 = vmax.f32 %v4758_v17, 0.0  ;;  %v4690_v53 = vmul.f32 %v6137_v9, %v8006_v37  ;;  %v4638_v52 = vpop.f32.mrb[93].mxu0 }
 0x4c2   : > { %4819 = vst [vmem:[%s8027_s21 + $0xc0] sm:$0xff] %v4787_v20  ;;  %v4788_v27 = vmax.f32 %v4756_v35, 0.0  ;;  %v4688_v55 = vmul.f32 %v8006_v37, %v4638_v52  ;;  %v6138_v38 = vpop.f32.mrb[94].mxu0 }
 0x4c3   : > { %4822 = vst [vmem:[%s8027_s21 + $0xd8] sm:$0xff] %v4790_v46  ;;  %v4729_v34 = vadd.f32 %v8011_v56, %v4690_v53  ;;  %v4691_v63 = vmul.f32 %v6138_v38, %v8006_v37  ;;  %v4641_v54 = vpop.f32.mrb[95].mxu0 }
 0x4c4   : > { %4820 = vst [vmem:[%s8027_s21 + $0xc8] sm:$0xff] %v4788_v27  ;;  %v4727_v58 = vadd.f32 %v8011_v56, %v4688_v55  ;;  %v4689_v29 = vmul.f32 %v8006_v37, %v4641_v54  ;;  %v6623_v37 = vld [vmem:[%s7091_s12 + $0xe8] sm:$0xff]  ;;  %s6825_s12 = smov [#allocation11]  }
 0x4c5   : > { %v4761_v21 = vadd.f32 %v6620_v3, %v4729_v34  ;;  %v4730_v39 = vadd.f32 %v8011_v56, %v4691_v63  ;;  %s6742_s24 = sshll.u32 %s6825_s12, 4  ;;  %s6743_s24 = int_to_ptr.vmem [resolvable:$false] %s6742_s24 }
 0x4c6   : > { %v4759_v43 = vadd.f32 %v6621_v62, %v4727_v58  ;;  %v4728_v45 = vadd.f32 %v8011_v56, %v4689_v29  ;;  %s6744_s9 = scalar_lea.vmem %s6743_s24, 8192  ;;  %p6745_p12 = scmp.lt.s32.totalorder %s8149_s25, %s6743_s24 }
 0x4c7   : > { %v4793_v12 = vmax.f32 %v4761_v21, 0.0  ;;  %v4762_v59 = vadd.f32 %v6622_v5, %v4730_v39  ;;  %p6746_p1 = scmp.lt.s32.totalorder %s6744_s9, %s6738_s27 }
 0x4c8   : > { %v4791_v23 = vmax.f32 %v4759_v43, 0.0  ;;  %v4760_v11 = vadd.f32 %v6623_v37, %v4728_v45 }
 0x4c9   : > { %4825 = vst [vmem:[%s8027_s21 + $0xf0] sm:$0xff] %v4793_v12  ;;  %v4794_v15 = vmax.f32 %v4762_v59, 0.0  ;;  %p6747_p2 = por %p6746_p1, %p6745_p12 }
 0x4ca   : > { %4823 = vst [vmem:[%s8027_s21 + $0xe0] sm:$0xff] %v4791_v23  ;;  %v4792_v56 = vmax.f32 %v4760_v11, 0.0 }
 0x4cb   : > { %4826 = vst [vmem:[%s8027_s21 + $0xf8] sm:$0xff] %v4794_v15  ;;  %p6748_p4 = pnand %p6747_p2, %p6741_p7 }
 0x4cc   : > { %4824 = vst [vmem:[%s8027_s21 + $0xe8] sm:$0xff] %v4792_v56 }
 0x4cd   : > { %6751 = shalt.err (!%p6748_p4)
}
 0x4ce   : > { %s6752_s10 = scalar_lea.hbm %s8147_s11, 4096  ;;  %s6756_s21 = scalar_lea.hbm %s8346_s26, 8192 }
 0x4cf   : > { %p6753_p9 = scmp.ne.s32.totalorder %s8147_s11, %s6752_s10  ;;  %p6757_p8 = scmp.lt.u32.totalorder %s8147_s11, %s8346_s26 }
 0x4d0   : > { %p6758_p13 = scmp.lt.u32.totalorder %s6756_s21, %s6752_s10  ;;  %p6760_p10 = scmp.lt.u32.totalorder %s6752_s10, %s8147_s11 }
 0x4d1   : > { %p6754_p0 = pnand %p6753_p9, %p7037_p5 }
 0x4d2   : > { %p6759_p6 = por %p6758_p13, %p6757_p8 }
 0x4d3   : > { %p6755_p11 = pneg %p6754_p0 }
 0x4d4   : > { %p6761_p3 = por %p6760_p10, %p6759_p6 }
 0x4d6   : > { %p6762_p7 = pnand %p6761_p3, %p6755_p11 }
 0x4d8   : > { %6765 = shalt.err (!%p6762_p7)
}
 0x4d9   : > { %s6826_s23 = smov 128   ;;  %s6827_s27 = smov 8  }
 0x4da   : > { %6425 = dma.vmem_to_hbm [thread:$0]  (%p7037_p5), %s8149_s25, 4096, %s8147_s11, %s4828_s17, %s6826_s23, %s6826_s23, %s6827_s27  }
 0x4db PF: > { %s8347_s12 = sld [smem:[#allocation16_spill]]  ;;  %s8348_s24 = sld [smem:[#allocation17_spill]] }
 0x4dc   : > { %p8350_p1 = scmp.ge.s32.totalorder %s6812_s16, 2 }
 0x4e1   : > { %s4856_s9 = sand.u32 1, %s8347_s12   ;;  %p8349_p12 = scmp.ne.s32.totalorder %s8348_s24, 0 }
 0x4e2   : > { %s4857_s10 = scalar_lea.sflag [#allocation5], %s4856_s9 }
 0x4e3   : > { %p6442_p2 = pnand %p8350_p1, %p8349_p12 }
 0x4e5   : > { %6795 = dma.done.wait (!%p6442_p2), %s4857_s10, 4096  }
 0x4e6   : > { %6797 = vsyncadd (!%p6442_p2), %s4857_s10, 4294963200  ;;  %s8351_s30 = smov %s7033_s13  ;;  %p25_p4 = scmp.ge.s32.totalorder %s7023_s22, 4  }
 0x4e7   : > { %s8352_s13 = smov %s6804_s14  ;;  %s8353_s14 = smov %s6808_s15 }
 0x4e8   : > { %s8354_s15 = smov %s8351_s30  ;;  %s8355_s16 = smov %s7023_s22 }
 0x4e9   :  { %27 = sbr.rel (!%p25_p4) target bundleno = 10 (0xa), region = 125 }
 0x4f0   :  { %4862 = vsyncpa [#allocation4], 1 }
 0x4f1   :  { %4864 = vsyncpa [#allocation4 + $0x1], 1 }
 0x4f2   :  { %4865 = vsyncpa [#allocation7], 1 }
 0x4f3   :  { %4866 = vsyncpa [#allocation10], 1 }
 0x4f4   :  { %4867 = vsyncpa [#allocation5], 1 }
 0x4f5   :  { %4869 = vsyncpa [#allocation5 + $0x1], 1 }

</bundles_post_ra>
